<compile_context>
chip_gen: v5e
topology: v5e:2x2
jax: 0.10.0
libtpu: 0.0.40
codegen_flags: <defaults>
</compile_context>

<pallas_src>
import functools

import jax
import jax.numpy as jnp
from jax.experimental import pallas as pl
from jax.experimental.pallas import tpu as pltpu


def _round_up(x, m):
    return ((x + m - 1) // m) * m


def _pad_axis(a, axis, new_size, value=0.0):
    if a.shape[axis] == new_size:
        return a
    pad = [(0, 0)] * a.ndim
    pad[axis] = (0, new_size - a.shape[axis])
    return jnp.pad(a, pad, constant_values=value)


def _largest_divisor_leq(n, cap):
    cap = max(1, min(n, cap))
    for d in range(cap, 0, -1):
        if n % d == 0:
            return d
    return 1


def _vmem_limit_bytes():
    # ~3/4 of the physical per-core VMEM (96 MiB on v5e/v6e, 48 MiB on v7x),
    # so we never request the full physical VMEM; conservative fallback if the
    # hardware query is unavailable.
    try:
        cap = int(pltpu.get_tpu_info().vmem_capacity_bytes)
        return max(32 * 1024 * 1024, (cap * 3) // 4)
    except Exception:
        return 48 * 1024 * 1024


# ---------------------------------------------------------------------------
# Stage A: fused input-projection + GRU recurrence (sequential over time)
# ---------------------------------------------------------------------------
def _gru_fused_kernel(x_ref, wih_ref, bih_ref, whh_ref, bhh_ref, hout_ref,
                      h_ref, *, hidden_pad, time_chunk, unroll):
    """x_ref:   (TT, Bb, D)   bf16  embeddings for this (batch, time) chunk
    wih_ref: (D, 3Hp)      bf16  input->hidden weights (pre-transposed, gates r,z,n)
    bih_ref: (1, 3Hp)      f32
    whh_ref: (Hp, 3Hp)     bf16  hidden->hidden weights (pre-transposed)
    bhh_ref: (1, 3Hp)      f32
    hout_ref:(TT, Bb, Hp)  bf16  hidden states for this chunk (halved HBM traffic)
    h_ref:   (Bb, Hp)      f32   persistent VMEM scratch, recurrence state
    """
    Hp = hidden_pad

    @pl.when(pl.program_id(1) == 0)
    def _():
        h_ref[...] = jnp.zeros_like(h_ref)

    # TODO(synk): verify from the bundle dump that Mosaic keeps the W_hh push
    # hoisted out of the unrolled loop; otherwise drive the MXU explicitly
    # with pltpu.matmul_push_rhs / matmul_acc_lhs / matmul_pop.
    def step(s, carry):
        h = h_ref[...]                                        # (Bb, Hp) f32
        gi = jnp.dot(x_ref[s], wih_ref[...],
                     preferred_element_type=jnp.float32) + bih_ref[...]
        gh = jnp.dot(h.astype(jnp.bfloat16), whh_ref[...],
                     preferred_element_type=jnp.float32) + bhh_ref[...]
        r = jax.nn.sigmoid(gi[:, 0:Hp] + gh[:, 0:Hp])
        z = jax.nn.sigmoid(gi[:, Hp:2 * Hp] + gh[:, Hp:2 * Hp])
        n = jnp.tanh(gi[:, 2 * Hp:3 * Hp] + r * gh[:, 2 * Hp:3 * Hp])
        h_new = (1.0 - z) * n + z * h
        h_ref[...] = h_new
        hout_ref[s] = h_new.astype(hout_ref.dtype)
        return carry

    jax.lax.fori_loop(0, time_chunk, step, 0, unroll=unroll)


# ---------------------------------------------------------------------------
# Stage B: selu + FC + log_softmax (parallel, lane-dense output)
# ---------------------------------------------------------------------------
def _fc_logsoftmax_kernel(h_ref, wfc_ref, bfc_ref, out_ref):
    # h_ref: (RM, Hp) bf16; wfc_ref: (Hp, Lp) bf16; bfc_ref: (1, Lp) f32
    # Padded classes carry a -1e30 bias so they vanish in the f32 softmax.
    o = jax.nn.selu(h_ref[...].astype(jnp.float32))
    y = jnp.dot(o.astype(jnp.bfloat16), wfc_ref[...],
                preferred_element_type=jnp.float32) + bfc_ref[...]
    m = jnp.max(y, axis=-1, keepdims=True)
    lse = jnp.log(jnp.sum(jnp.exp(y - m), axis=-1, keepdims=True)) + m
    out_ref[...] = y - lse


# ---------------------------------------------------------------------------
# Wrapper
# ---------------------------------------------------------------------------
def rnn_forward(loc, tim, params, *, time_chunk=16, batch_blocks=1):
    """loc, tim: int32 (B, T).  Returns log-softmax scores (B, T, loc_size)."""
    emb_loc = params["emb_loc"]      # (loc_size + 1, loc_emb)
    emb_tim = params["emb_tim"]      # (tim_size + 1, tim_emb)
    w_ih = params["w_ih"]            # (3H, D)  torch layout
    w_hh = params["w_hh"]            # (3H, H)
    b_ih = params["b_ih"]            # (3H,)
    b_hh = params["b_hh"]            # (3H,)
    w_fc = params["w_fc"]            # (L, H)   torch layout
    b_fc = params["b_fc"]            # (L,)

    B, T = loc.shape
    H = w_hh.shape[1]
    L = w_fc.shape[0]

    # hardware-aligned padded sizes
    Bp = _round_up(B, 8)             # sublane
    Hp = _round_up(H, 128)           # lane (gate boundaries on 128 multiples)
    Lp = _round_up(L, 128)
    TT = max(1, min(int(time_chunk), T))   # time steps per serial grid step
    Tp = _round_up(T, TT)
    vmem_limit = _vmem_limit_bytes()

    # optional batch split of the serial stage (useful on v7x's 2 TensorCores)
    nb = max(1, int(batch_blocks))
    if Bp % nb != 0 or (Bp // nb) % 8 != 0:
        nb = 1
    Bb = Bp // nb

    # cap unroll at large Hp to avoid vreg spills
    unroll = True if Hp < 512 else min(TT, 8)

    # --- embeddings: bf16 tables, gathered directly into time-major bf16 x --
    emb_loc_b = emb_loc.astype(jnp.bfloat16)
    emb_tim_b = emb_tim.astype(jnp.bfloat16)
    loc_t = _pad_axis(_pad_axis(jnp.transpose(loc), 0, Tp, 0), 1, Bp, 0)
    tim_t = _pad_axis(_pad_axis(jnp.transpose(tim), 0, Tp, 0), 1, Bp, 0)
    loc_e = jnp.take(emb_loc_b, loc_t, axis=0)             # (Tp, Bp, loc_emb)
    tim_e = jnp.take(emb_tim_b, tim_t, axis=0)             # (Tp, Bp, tim_emb)
    x = jnp.concatenate([loc_e, tim_e], axis=2)            # (Tp, Bp, D) bf16
    D = x.shape[2]
    # TODO(synk): dropout is a no-op in eval mode; training-mode dropout omitted.

    # --- weight repacking: pad each gate block to Hp and pre-transpose ------
    wih3 = _pad_axis(w_ih.reshape(3, H, D), 1, Hp)                    # (3,Hp,D)
    wih_t = jnp.transpose(wih3, (2, 0, 1)).reshape(D, 3 * Hp).astype(jnp.bfloat16)
    bih2 = _pad_axis(b_ih.reshape(3, H), 1, Hp).reshape(1, 3 * Hp).astype(jnp.float32)

    whh3 = _pad_axis(_pad_axis(w_hh.reshape(3, H, H), 1, Hp), 2, Hp)  # (3,Hp,Hp)
    whh_t = jnp.transpose(whh3, (2, 0, 1)).reshape(Hp, 3 * Hp).astype(jnp.bfloat16)
    bhh2 = _pad_axis(b_hh.reshape(3, H), 1, Hp).reshape(1, 3 * Hp).astype(jnp.float32)

    wfc_t = jnp.transpose(_pad_axis(_pad_axis(w_fc, 0, Lp), 1, Hp)).astype(jnp.bfloat16)
    bfc2 = _pad_axis(b_fc, 0, Lp, value=-1e30).reshape(1, Lp).astype(jnp.float32)

    # --- Stage A: fused input projection + GRU recurrence -------------------
    h_all = pl.pallas_call(
        functools.partial(_gru_fused_kernel, hidden_pad=Hp, time_chunk=TT,
                          unroll=unroll),
        out_shape=jax.ShapeDtypeStruct((Tp, Bp, Hp), jnp.bfloat16),
        grid_spec=pltpu.PrefetchScalarGridSpec(
            num_scalar_prefetch=0,
            grid=(nb, Tp // TT),
            in_specs=[
                pl.BlockSpec((TT, Bb, D), lambda b, t: (t, b, 0)),
                pl.BlockSpec((D, 3 * Hp), lambda b, t: (0, 0)),
                pl.BlockSpec((1, 3 * Hp), lambda b, t: (0, 0)),
                pl.BlockSpec((Hp, 3 * Hp), lambda b, t: (0, 0)),
                pl.BlockSpec((1, 3 * Hp), lambda b, t: (0, 0)),
            ],
            out_specs=pl.BlockSpec((TT, Bb, Hp), lambda b, t: (t, b, 0)),
            scratch_shapes=[pltpu.VMEM((Bb, Hp), jnp.float32)],
        ),
        compiler_params=pltpu.CompilerParams(
            dimension_semantics=("parallel", "arbitrary"),  # batch-parallel, time-serial
            vmem_limit_bytes=vmem_limit),
    )(x, wih_t, bih2, whh_t, bhh2)

    # --- Stage B: selu + FC + log_softmax (parallel, lane-dense) ------------
    # Large row tiles (~512 rows, capped so the f32 output block stays small),
    # decoupled from Bp*TT; RM must divide R so no partial blocks exist.
    R = Tp * Bp
    target_rows = min(512, max(8, (8 * 1024 * 1024) // (4 * Lp)))
    RM = Bp * _largest_divisor_leq(Tp, max(1, target_rows // Bp))
    # TODO(synk): for very large vocab (Lp*Hp weight >> VMEM), tile W_fc along
    # L with a second grid axis and a two-pass log-softmax (and single-buffer
    # the invariant weight block); here the full (Hp, Lp) weight is resident.
    h_flat = h_all.reshape(R, Hp)
    scores_flat = pl.pallas_call(
        _fc_logsoftmax_kernel,
        out_shape=jax.ShapeDtypeStruct((R, Lp), jnp.float32),
        grid_spec=pltpu.PrefetchScalarGridSpec(
            num_scalar_prefetch=0,
            grid=(R // RM,),
            in_specs=[
                pl.BlockSpec((RM, Hp), lambda i: (i, 0)),
                pl.BlockSpec((Hp, Lp), lambda i: (0, 0)),
                pl.BlockSpec((1, Lp), lambda i: (0, 0)),
            ],
            out_specs=pl.BlockSpec((RM, Lp), lambda i: (i, 0)),
        ),
        compiler_params=pltpu.CompilerParams(
            dimension_semantics=("parallel",),
            vmem_limit_bytes=vmem_limit),
    )(h_flat, wfc_t, bfc2)

    scores = scores_flat.reshape(Tp, Bp, Lp)[:T, :B, :L]
    # batch_first layout to match the PyTorch module (small tensor transpose).
    return jnp.transpose(scores, (1, 0, 2))


# ---------------------------------------------------------------------------
# Pure-JAX reference (f32) for correctness checking
# ---------------------------------------------------------------------------
def rnn_forward_reference(loc, tim, params):
    emb_loc, emb_tim = params["emb_loc"], params["emb_tim"]
    w_ih, w_hh = params["w_ih"], params["w_hh"]
    b_ih, b_hh = params["b_ih"], params["b_hh"]
    w_fc, b_fc = params["w_fc"], params["b_fc"]
    H = w_hh.shape[1]

    x = jnp.concatenate(
        [jnp.take(emb_loc, loc, axis=0), jnp.take(emb_tim, tim, axis=0)], axis=2)
    B, T, _ = x.shape

    def step(h, x_t):
        gi = x_t @ w_ih.T + b_ih
        gh = h @ w_hh.T + b_hh
        r = jax.nn.sigmoid(gi[:, :H] + gh[:, :H])
        z = jax.nn.sigmoid(gi[:, H:2 * H] + gh[:, H:2 * H])
        n = jnp.tanh(gi[:, 2 * H:] + r * gh[:, 2 * H:])
        h_new = (1.0 - z) * n + z * h
        return h_new, h_new

    h0 = jnp.zeros((B, H), jnp.float32)
    _, outs = jax.lax.scan(step, h0, jnp.transpose(x, (1, 0, 2)))
    out = jnp.transpose(outs, (1, 0, 2))            # (B, T, H)
    out = jax.nn.selu(out)
    y = out @ w_fc.T + b_fc
    return jax.nn.log_softmax(y, axis=2)


def make_params(key, loc_size, tim_size, loc_emb_size, tim_emb_size, hidden_size):
    D = loc_emb_size + tim_emb_size
    H = hidden_size
    ks = jax.random.split(key, 8)
    scale = 0.1
    return {
        "emb_loc": scale * jax.random.normal(ks[0], (loc_size + 1, loc_emb_size), jnp.float32),
        "emb_tim": scale * jax.random.normal(ks[1], (tim_size + 1, tim_emb_size), jnp.float32),
        "w_ih": scale * jax.random.normal(ks[2], (3 * H, D), jnp.float32),
        "w_hh": scale * jax.random.normal(ks[3], (3 * H, H), jnp.float32),
        "b_ih": scale * jax.random.normal(ks[4], (3 * H,), jnp.float32),
        "b_hh": scale * jax.random.normal(ks[5], (3 * H,), jnp.float32),
        "w_fc": scale * jax.random.normal(ks[6], (loc_size, H), jnp.float32),
        "b_fc": scale * jax.random.normal(ks[7], (loc_size,), jnp.float32),
    }


if __name__ == "__main__":
    # Small synthetic config (args.rnn_type == 'GRU').
    loc_size, tim_size = 32, 12
    loc_emb_size, tim_emb_size = 16, 8
    hidden_size = 32
    B, T = 2, 8

    key = jax.random.PRNGKey(0)
    k_p, k_loc, k_tim = jax.random.split(key, 3)
    params = make_params(k_p, loc_size, tim_size, loc_emb_size, tim_emb_size, hidden_size)

    loc = jax.random.randint(k_loc, (B, T), 0, loc_size + 1, dtype=jnp.int32)
    tim = jax.random.randint(k_tim, (B, T), 0, tim_size + 1, dtype=jnp.int32)

    score = jax.block_until_ready(rnn_forward(loc, tim, params))
    ref = jax.block_until_ready(rnn_forward_reference(loc, tim, params))

    assert score.shape == (B, T, loc_size), score.shape
    err = float(jnp.max(jnp.abs(score - ref)))
    # bf16 matmul operands + bf16 hidden writeback vs f32 reference
    assert err < 3e-2, err

    print("KERNEL_OK")
</pallas_src>

<mosaic_0001>
module attributes {stable_mosaic.version = 11 : i64} {
  func.func @_gru_fused_kernel(%arg0: i32, %arg1: i32, %arg2: memref<8x8x24xbf16, #tpu.memory_space<vmem>>, %arg3: memref<24x384xbf16, #tpu.memory_space<vmem>>, %arg4: memref<1x384xf32, #tpu.memory_space<vmem>>, %arg5: memref<128x384xbf16, #tpu.memory_space<vmem>>, %arg6: memref<1x384xf32, #tpu.memory_space<vmem>>, %arg7: memref<8x8x128xbf16, #tpu.memory_space<vmem>>, %arg8: memref<8x128xf32, #tpu.memory_space<vmem>>) attributes {dimension_semantics = [#tpu.dimension_semantics<parallel>, #tpu.dimension_semantics<arbitrary>], iteration_bounds = array<i64: 1, 1>, scalar_prefetch = 0 : i64, scratch_operands = 1 : i64, tpu.core_type = #tpu.core_type<tc>, window_params = [{transform_indices = @transform_0, window_bounds = array<i64: 8, 8, 24>}, {pipeline_mode = #tpu.pipeline_mode<synchronous>, transform_indices = @transform_1, window_bounds = array<i64: 24, 384>}, {pipeline_mode = #tpu.pipeline_mode<synchronous>, transform_indices = @transform_2, window_bounds = array<i64: 1, 384>}, {pipeline_mode = #tpu.pipeline_mode<synchronous>, transform_indices = @transform_3, window_bounds = array<i64: 128, 384>}, {pipeline_mode = #tpu.pipeline_mode<synchronous>, transform_indices = @transform_4, window_bounds = array<i64: 1, 384>}, {transform_indices = @transform_5, window_bounds = array<i64: 8, 8, 128>}]} {
    %c0_i32 = arith.constant 0 : i32
    %0 = arith.cmpi eq, %arg1, %c0_i32 : i32
    %1 = arith.extui %0 : i1 to i32
    %c0_i32_0 = arith.constant 0 : i32
    %2 = arith.cmpi ne, %1, %c0_i32_0 : i32
    scf.if %2 {
      %cst_168 = arith.constant 0.000000e+00 : f32
      %379 = vector.broadcast %cst_168 : f32 to vector<8x128xf32>
      %c0_169 = arith.constant 0 : index
      %c0_170 = arith.constant 0 : index
      %380 = vector.load %arg8[%c0_169, %c0_170] : memref<8x128xf32, #tpu.memory_space<vmem>>, vector<8x128xf32>
      tpu.vector_store %arg8[%c0_169, %c0_170], %379 {strides = array<i32>} : memref<8x128xf32, #tpu.memory_space<vmem>>, vector<8x128xf32>,
    } else {
    }
    %c0_i32_1 = arith.constant 0 : i32
    %c0 = arith.constant 0 : index
    %c0_2 = arith.constant 0 : index
    %3 = vector.load %arg8[%c0, %c0_2] : memref<8x128xf32, #tpu.memory_space<vmem>>, vector<8x128xf32>
    %4 = arith.index_cast %c0_i32_1 : i32 to index
    %c0_3 = arith.constant 0 : index
    %c0_4 = arith.constant 0 : index
    %5 = vector.load %arg2[%4, %c0_3, %c0_4] : memref<8x8x24xbf16, #tpu.memory_space<vmem>>, vector<1x8x24xbf16>
    %6 = vector.shape_cast %5 : vector<1x8x24xbf16> to vector<8x24xbf16>
    %c0_5 = arith.constant 0 : index
    %c0_6 = arith.constant 0 : index
    %7 = vector.load %arg3[%c0_5, %c0_6] : memref<24x384xbf16, #tpu.memory_space<vmem>>, vector<24x384xbf16>
    %cst = arith.constant dense<0.000000e+00> : vector<8x384xf32>
    %8 = tpu.matmul %6, %7, %cst {dimension_numbers = #tpu.dot_dimension_numbers<[1], [0], [0], [1], [0, 0, 1, 1], [], []>} : vector<8x24xbf16>, vector<24x384xbf16>, vector<8x384xf32> -> vector<8x384xf32>
    %c0_7 = arith.constant 0 : index
    %c0_8 = arith.constant 0 : index
    %9 = vector.load %arg4[%c0_7, %c0_8] : memref<1x384xf32, #tpu.memory_space<vmem>>, vector<1x384xf32>
    %10 = vector.broadcast %9 : vector<1x384xf32> to vector<8x384xf32>
    %11 = arith.addf %8, %10 : vector<8x384xf32>
    %12 = arith.truncf %3 : vector<8x128xf32> to vector<8x128xbf16>
    %c0_9 = arith.constant 0 : index
    %c0_10 = arith.constant 0 : index
    %13 = vector.load %arg5[%c0_9, %c0_10] : memref<128x384xbf16, #tpu.memory_space<vmem>>, vector<128x384xbf16>
    %cst_11 = arith.constant dense<0.000000e+00> : vector<8x384xf32>
    %14 = tpu.matmul %12, %13, %cst_11 {dimension_numbers = #tpu.dot_dimension_numbers<[1], [0], [0], [1], [0, 0, 1, 1], [], []>} : vector<8x128xbf16>, vector<128x384xbf16>, vector<8x384xf32> -> vector<8x384xf32>
    %c0_12 = arith.constant 0 : index
    %c0_13 = arith.constant 0 : index
    %15 = vector.load %arg6[%c0_12, %c0_13] : memref<1x384xf32, #tpu.memory_space<vmem>>, vector<1x384xf32>
    %16 = vector.broadcast %15 : vector<1x384xf32> to vector<8x384xf32>
    %17 = arith.addf %14, %16 : vector<8x384xf32>
    %18 = vector.extract_strided_slice %11 {offsets = [0, 0], sizes = [8, 128], strides = [1, 1]} : vector<8x384xf32> to vector<8x128xf32>
    %19 = vector.extract_strided_slice %17 {offsets = [0, 0], sizes = [8, 128], strides = [1, 1]} : vector<8x384xf32> to vector<8x128xf32>
    %20 = arith.addf %18, %19 : vector<8x128xf32>
    %21 = arith.negf %20 : vector<8x128xf32>
    %22 = math.exp %21 : vector<8x128xf32>
    %cst_14 = arith.constant 1.000000e+00 : f32
    %23 = vector.broadcast %cst_14 : f32 to vector<8x128xf32>
    %24 = arith.addf %23, %22 : vector<8x128xf32>
    %25 = arith.divf %23, %24 : vector<8x128xf32>
    %26 = vector.extract_strided_slice %11 {offsets = [0, 128], sizes = [8, 128], strides = [1, 1]} : vector<8x384xf32> to vector<8x128xf32>
    %27 = vector.extract_strided_slice %17 {offsets = [0, 128], sizes = [8, 128], strides = [1, 1]} : vector<8x384xf32> to vector<8x128xf32>
    %28 = arith.addf %26, %27 : vector<8x128xf32>
    %29 = arith.negf %28 : vector<8x128xf32>
    %30 = math.exp %29 : vector<8x128xf32>
    %cst_15 = arith.constant 1.000000e+00 : f32
    %31 = vector.broadcast %cst_15 : f32 to vector<8x128xf32>
    %32 = arith.addf %31, %30 : vector<8x128xf32>
    %33 = arith.divf %31, %32 : vector<8x128xf32>
    %34 = vector.extract_strided_slice %11 {offsets = [0, 256], sizes = [8, 128], strides = [1, 1]} : vector<8x384xf32> to vector<8x128xf32>
    %35 = vector.extract_strided_slice %17 {offsets = [0, 256], sizes = [8, 128], strides = [1, 1]} : vector<8x384xf32> to vector<8x128xf32>
    %36 = arith.mulf %25, %35 : vector<8x128xf32>
    %37 = arith.addf %34, %36 : vector<8x128xf32>
    %38 = math.tanh %37 : vector<8x128xf32>
    %cst_16 = arith.constant 1.000000e+00 : f32
    %39 = vector.broadcast %cst_16 : f32 to vector<8x128xf32>
    %40 = arith.subf %39, %33 : vector<8x128xf32>
    %41 = arith.mulf %40, %38 : vector<8x128xf32>
    %42 = arith.mulf %33, %3 : vector<8x128xf32>
    %43 = arith.addf %41, %42 : vector<8x128xf32>
    %c0_17 = arith.constant 0 : index
    %c0_18 = arith.constant 0 : index
    %44 = vector.load %arg8[%c0_17, %c0_18] : memref<8x128xf32, #tpu.memory_space<vmem>>, vector<8x128xf32>
    tpu.vector_store %arg8[%c0_17, %c0_18], %43 {strides = array<i32>} : memref<8x128xf32, #tpu.memory_space<vmem>>, vector<8x128xf32>,
    %45 = arith.truncf %43 : vector<8x128xf32> to vector<8x128xbf16>
    %46 = arith.index_cast %c0_i32_1 : i32 to index
    %c0_19 = arith.constant 0 : index
    %c0_20 = arith.constant 0 : index
    %47 = vector.load %arg7[%46, %c0_19, %c0_20] : memref<8x8x128xbf16, #tpu.memory_space<vmem>>, vector<1x8x128xbf16>
    %48 = vector.shape_cast %47 : vector<1x8x128xbf16> to vector<8x128xbf16>
    %49 = vector.shape_cast %45 : vector<8x128xbf16> to vector<1x8x128xbf16>
    tpu.vector_store %arg7[%46, %c0_19, %c0_20], %49 {strides = array<i32>} : memref<8x8x128xbf16, #tpu.memory_space<vmem>>, vector<1x8x128xbf16>,
    %c1_i32 = arith.constant 1 : i32
    %c0_21 = arith.constant 0 : index
    %c0_22 = arith.constant 0 : index
    %50 = vector.load %arg8[%c0_21, %c0_22] : memref<8x128xf32, #tpu.memory_space<vmem>>, vector<8x128xf32>
    %51 = arith.index_cast %c1_i32 : i32 to index
    %c0_23 = arith.constant 0 : index
    %c0_24 = arith.constant 0 : index
    %52 = vector.load %arg2[%51, %c0_23, %c0_24] : memref<8x8x24xbf16, #tpu.memory_space<vmem>>, vector<1x8x24xbf16>
    %53 = vector.shape_cast %52 : vector<1x8x24xbf16> to vector<8x24xbf16>
    %c0_25 = arith.constant 0 : index
    %c0_26 = arith.constant 0 : index
    %54 = vector.load %arg3[%c0_25, %c0_26] : memref<24x384xbf16, #tpu.memory_space<vmem>>, vector<24x384xbf16>
    %cst_27 = arith.constant dense<0.000000e+00> : vector<8x384xf32>
    %55 = tpu.matmul %53, %54, %cst_27 {dimension_numbers = #tpu.dot_dimension_numbers<[1], [0], [0], [1], [0, 0, 1, 1], [], []>} : vector<8x24xbf16>, vector<24x384xbf16>, vector<8x384xf32> -> vector<8x384xf32>
    %c0_28 = arith.constant 0 : index
    %c0_29 = arith.constant 0 : index
    %56 = vector.load %arg4[%c0_28, %c0_29] : memref<1x384xf32, #tpu.memory_space<vmem>>, vector<1x384xf32>
    %57 = vector.broadcast %56 : vector<1x384xf32> to vector<8x384xf32>
    %58 = arith.addf %55, %57 : vector<8x384xf32>
    %59 = arith.truncf %50 : vector<8x128xf32> to vector<8x128xbf16>
    %c0_30 = arith.constant 0 : index
    %c0_31 = arith.constant 0 : index
    %60 = vector.load %arg5[%c0_30, %c0_31] : memref<128x384xbf16, #tpu.memory_space<vmem>>, vector<128x384xbf16>
    %cst_32 = arith.constant dense<0.000000e+00> : vector<8x384xf32>
    %61 = tpu.matmul %59, %60, %cst_32 {dimension_numbers = #tpu.dot_dimension_numbers<[1], [0], [0], [1], [0, 0, 1, 1], [], []>} : vector<8x128xbf16>, vector<128x384xbf16>, vector<8x384xf32> -> vector<8x384xf32>
    %c0_33 = arith.constant 0 : index
    %c0_34 = arith.constant 0 : index
    %62 = vector.load %arg6[%c0_33, %c0_34] : memref<1x384xf32, #tpu.memory_space<vmem>>, vector<1x384xf32>
    %63 = vector.broadcast %62 : vector<1x384xf32> to vector<8x384xf32>
    %64 = arith.addf %61, %63 : vector<8x384xf32>
    %65 = vector.extract_strided_slice %58 {offsets = [0, 0], sizes = [8, 128], strides = [1, 1]} : vector<8x384xf32> to vector<8x128xf32>
    %66 = vector.extract_strided_slice %64 {offsets = [0, 0], sizes = [8, 128], strides = [1, 1]} : vector<8x384xf32> to vector<8x128xf32>
    %67 = arith.addf %65, %66 : vector<8x128xf32>
    %68 = arith.negf %67 : vector<8x128xf32>
    %69 = math.exp %68 : vector<8x128xf32>
    %cst_35 = arith.constant 1.000000e+00 : f32
    %70 = vector.broadcast %cst_35 : f32 to vector<8x128xf32>
    %71 = arith.addf %70, %69 : vector<8x128xf32>
    %72 = arith.divf %70, %71 : vector<8x128xf32>
    %73 = vector.extract_strided_slice %58 {offsets = [0, 128], sizes = [8, 128], strides = [1, 1]} : vector<8x384xf32> to vector<8x128xf32>
    %74 = vector.extract_strided_slice %64 {offsets = [0, 128], sizes = [8, 128], strides = [1, 1]} : vector<8x384xf32> to vector<8x128xf32>
    %75 = arith.addf %73, %74 : vector<8x128xf32>
    %76 = arith.negf %75 : vector<8x128xf32>
    %77 = math.exp %76 : vector<8x128xf32>
    %cst_36 = arith.constant 1.000000e+00 : f32
    %78 = vector.broadcast %cst_36 : f32 to vector<8x128xf32>
    %79 = arith.addf %78, %77 : vector<8x128xf32>
    %80 = arith.divf %78, %79 : vector<8x128xf32>
    %81 = vector.extract_strided_slice %58 {offsets = [0, 256], sizes = [8, 128], strides = [1, 1]} : vector<8x384xf32> to vector<8x128xf32>
    %82 = vector.extract_strided_slice %64 {offsets = [0, 256], sizes = [8, 128], strides = [1, 1]} : vector<8x384xf32> to vector<8x128xf32>
    %83 = arith.mulf %72, %82 : vector<8x128xf32>
    %84 = arith.addf %81, %83 : vector<8x128xf32>
    %85 = math.tanh %84 : vector<8x128xf32>
    %cst_37 = arith.constant 1.000000e+00 : f32
    %86 = vector.broadcast %cst_37 : f32 to vector<8x128xf32>
    %87 = arith.subf %86, %80 : vector<8x128xf32>
    %88 = arith.mulf %87, %85 : vector<8x128xf32>
    %89 = arith.mulf %80, %50 : vector<8x128xf32>
    %90 = arith.addf %88, %89 : vector<8x128xf32>
    %c0_38 = arith.constant 0 : index
    %c0_39 = arith.constant 0 : index
    %91 = vector.load %arg8[%c0_38, %c0_39] : memref<8x128xf32, #tpu.memory_space<vmem>>, vector<8x128xf32>
    tpu.vector_store %arg8[%c0_38, %c0_39], %90 {strides = array<i32>} : memref<8x128xf32, #tpu.memory_space<vmem>>, vector<8x128xf32>,
    %92 = arith.truncf %90 : vector<8x128xf32> to vector<8x128xbf16>
    %93 = arith.index_cast %c1_i32 : i32 to index
    %c0_40 = arith.constant 0 : index
    %c0_41 = arith.constant 0 : index
    %94 = vector.load %arg7[%93, %c0_40, %c0_41] : memref<8x8x128xbf16, #tpu.memory_space<vmem>>, vector<1x8x128xbf16>
    %95 = vector.shape_cast %94 : vector<1x8x128xbf16> to vector<8x128xbf16>
    %96 = vector.shape_cast %92 : vector<8x128xbf16> to vector<1x8x128xbf16>
    tpu.vector_store %arg7[%93, %c0_40, %c0_41], %96 {strides = array<i32>} : memref<8x8x128xbf16, #tpu.memory_space<vmem>>, vector<1x8x128xbf16>,
    %c2_i32 = arith.constant 2 : i32
    %c0_42 = arith.constant 0 : index
    %c0_43 = arith.constant 0 : index
    %97 = vector.load %arg8[%c0_42, %c0_43] : memref<8x128xf32, #tpu.memory_space<vmem>>, vector<8x128xf32>
    %98 = arith.index_cast %c2_i32 : i32 to index
    %c0_44 = arith.constant 0 : index
    %c0_45 = arith.constant 0 : index
    %99 = vector.load %arg2[%98, %c0_44, %c0_45] : memref<8x8x24xbf16, #tpu.memory_space<vmem>>, vector<1x8x24xbf16>
    %100 = vector.shape_cast %99 : vector<1x8x24xbf16> to vector<8x24xbf16>
    %c0_46 = arith.constant 0 : index
    %c0_47 = arith.constant 0 : index
    %101 = vector.load %arg3[%c0_46, %c0_47] : memref<24x384xbf16, #tpu.memory_space<vmem>>, vector<24x384xbf16>
    %cst_48 = arith.constant dense<0.000000e+00> : vector<8x384xf32>
    %102 = tpu.matmul %100, %101, %cst_48 {dimension_numbers = #tpu.dot_dimension_numbers<[1], [0], [0], [1], [0, 0, 1, 1], [], []>} : vector<8x24xbf16>, vector<24x384xbf16>, vector<8x384xf32> -> vector<8x384xf32>
    %c0_49 = arith.constant 0 : index
    %c0_50 = arith.constant 0 : index
    %103 = vector.load %arg4[%c0_49, %c0_50] : memref<1x384xf32, #tpu.memory_space<vmem>>, vector<1x384xf32>
    %104 = vector.broadcast %103 : vector<1x384xf32> to vector<8x384xf32>
    %105 = arith.addf %102, %104 : vector<8x384xf32>
    %106 = arith.truncf %97 : vector<8x128xf32> to vector<8x128xbf16>
    %c0_51 = arith.constant 0 : index
    %c0_52 = arith.constant 0 : index
    %107 = vector.load %arg5[%c0_51, %c0_52] : memref<128x384xbf16, #tpu.memory_space<vmem>>, vector<128x384xbf16>
    %cst_53 = arith.constant dense<0.000000e+00> : vector<8x384xf32>
    %108 = tpu.matmul %106, %107, %cst_53 {dimension_numbers = #tpu.dot_dimension_numbers<[1], [0], [0], [1], [0, 0, 1, 1], [], []>} : vector<8x128xbf16>, vector<128x384xbf16>, vector<8x384xf32> -> vector<8x384xf32>
    %c0_54 = arith.constant 0 : index
    %c0_55 = arith.constant 0 : index
    %109 = vector.load %arg6[%c0_54, %c0_55] : memref<1x384xf32, #tpu.memory_space<vmem>>, vector<1x384xf32>
    %110 = vector.broadcast %109 : vector<1x384xf32> to vector<8x384xf32>
    %111 = arith.addf %108, %110 : vector<8x384xf32>
    %112 = vector.extract_strided_slice %105 {offsets = [0, 0], sizes = [8, 128], strides = [1, 1]} : vector<8x384xf32> to vector<8x128xf32>
    %113 = vector.extract_strided_slice %111 {offsets = [0, 0], sizes = [8, 128], strides = [1, 1]} : vector<8x384xf32> to vector<8x128xf32>
    %114 = arith.addf %112, %113 : vector<8x128xf32>
    %115 = arith.negf %114 : vector<8x128xf32>
    %116 = math.exp %115 : vector<8x128xf32>
    %cst_56 = arith.constant 1.000000e+00 : f32
    %117 = vector.broadcast %cst_56 : f32 to vector<8x128xf32>
    %118 = arith.addf %117, %116 : vector<8x128xf32>
    %119 = arith.divf %117, %118 : vector<8x128xf32>
    %120 = vector.extract_strided_slice %105 {offsets = [0, 128], sizes = [8, 128], strides = [1, 1]} : vector<8x384xf32> to vector<8x128xf32>
    %121 = vector.extract_strided_slice %111 {offsets = [0, 128], sizes = [8, 128], strides = [1, 1]} : vector<8x384xf32> to vector<8x128xf32>
    %122 = arith.addf %120, %121 : vector<8x128xf32>
    %123 = arith.negf %122 : vector<8x128xf32>
    %124 = math.exp %123 : vector<8x128xf32>
    %cst_57 = arith.constant 1.000000e+00 : f32
    %125 = vector.broadcast %cst_57 : f32 to vector<8x128xf32>
    %126 = arith.addf %125, %124 : vector<8x128xf32>
    %127 = arith.divf %125, %126 : vector<8x128xf32>
    %128 = vector.extract_strided_slice %105 {offsets = [0, 256], sizes = [8, 128], strides = [1, 1]} : vector<8x384xf32> to vector<8x128xf32>
    %129 = vector.extract_strided_slice %111 {offsets = [0, 256], sizes = [8, 128], strides = [1, 1]} : vector<8x384xf32> to vector<8x128xf32>
    %130 = arith.mulf %119, %129 : vector<8x128xf32>
    %131 = arith.addf %128, %130 : vector<8x128xf32>
    %132 = math.tanh %131 : vector<8x128xf32>
    %cst_58 = arith.constant 1.000000e+00 : f32
    %133 = vector.broadcast %cst_58 : f32 to vector<8x128xf32>
    %134 = arith.subf %133, %127 : vector<8x128xf32>
    %135 = arith.mulf %134, %132 : vector<8x128xf32>
    %136 = arith.mulf %127, %97 : vector<8x128xf32>
    %137 = arith.addf %135, %136 : vector<8x128xf32>
    %c0_59 = arith.constant 0 : index
    %c0_60 = arith.constant 0 : index
    %138 = vector.load %arg8[%c0_59, %c0_60] : memref<8x128xf32, #tpu.memory_space<vmem>>, vector<8x128xf32>
    tpu.vector_store %arg8[%c0_59, %c0_60], %137 {strides = array<i32>} : memref<8x128xf32, #tpu.memory_space<vmem>>, vector<8x128xf32>,
    %139 = arith.truncf %137 : vector<8x128xf32> to vector<8x128xbf16>
    %140 = arith.index_cast %c2_i32 : i32 to index
    %c0_61 = arith.constant 0 : index
    %c0_62 = arith.constant 0 : index
    %141 = vector.load %arg7[%140, %c0_61, %c0_62] : memref<8x8x128xbf16, #tpu.memory_space<vmem>>, vector<1x8x128xbf16>
    %142 = vector.shape_cast %141 : vector<1x8x128xbf16> to vector<8x128xbf16>
    %143 = vector.shape_cast %139 : vector<8x128xbf16> to vector<1x8x128xbf16>
    tpu.vector_store %arg7[%140, %c0_61, %c0_62], %143 {strides = array<i32>} : memref<8x8x128xbf16, #tpu.memory_space<vmem>>, vector<1x8x128xbf16>,
    %c3_i32 = arith.constant 3 : i32
    %c0_63 = arith.constant 0 : index
    %c0_64 = arith.constant 0 : index
    %144 = vector.load %arg8[%c0_63, %c0_64] : memref<8x128xf32, #tpu.memory_space<vmem>>, vector<8x128xf32>
    %145 = arith.index_cast %c3_i32 : i32 to index
    %c0_65 = arith.constant 0 : index
    %c0_66 = arith.constant 0 : index
    %146 = vector.load %arg2[%145, %c0_65, %c0_66] : memref<8x8x24xbf16, #tpu.memory_space<vmem>>, vector<1x8x24xbf16>
    %147 = vector.shape_cast %146 : vector<1x8x24xbf16> to vector<8x24xbf16>
    %c0_67 = arith.constant 0 : index
    %c0_68 = arith.constant 0 : index
    %148 = vector.load %arg3[%c0_67, %c0_68] : memref<24x384xbf16, #tpu.memory_space<vmem>>, vector<24x384xbf16>
    %cst_69 = arith.constant dense<0.000000e+00> : vector<8x384xf32>
    %149 = tpu.matmul %147, %148, %cst_69 {dimension_numbers = #tpu.dot_dimension_numbers<[1], [0], [0], [1], [0, 0, 1, 1], [], []>} : vector<8x24xbf16>, vector<24x384xbf16>, vector<8x384xf32> -> vector<8x384xf32>
    %c0_70 = arith.constant 0 : index
    %c0_71 = arith.constant 0 : index
    %150 = vector.load %arg4[%c0_70, %c0_71] : memref<1x384xf32, #tpu.memory_space<vmem>>, vector<1x384xf32>
    %151 = vector.broadcast %150 : vector<1x384xf32> to vector<8x384xf32>
    %152 = arith.addf %149, %151 : vector<8x384xf32>
    %153 = arith.truncf %144 : vector<8x128xf32> to vector<8x128xbf16>
    %c0_72 = arith.constant 0 : index
    %c0_73 = arith.constant 0 : index
    %154 = vector.load %arg5[%c0_72, %c0_73] : memref<128x384xbf16, #tpu.memory_space<vmem>>, vector<128x384xbf16>
    %cst_74 = arith.constant dense<0.000000e+00> : vector<8x384xf32>
    %155 = tpu.matmul %153, %154, %cst_74 {dimension_numbers = #tpu.dot_dimension_numbers<[1], [0], [0], [1], [0, 0, 1, 1], [], []>} : vector<8x128xbf16>, vector<128x384xbf16>, vector<8x384xf32> -> vector<8x384xf32>
    %c0_75 = arith.constant 0 : index
    %c0_76 = arith.constant 0 : index
    %156 = vector.load %arg6[%c0_75, %c0_76] : memref<1x384xf32, #tpu.memory_space<vmem>>, vector<1x384xf32>
    %157 = vector.broadcast %156 : vector<1x384xf32> to vector<8x384xf32>
    %158 = arith.addf %155, %157 : vector<8x384xf32>
    %159 = vector.extract_strided_slice %152 {offsets = [0, 0], sizes = [8, 128], strides = [1, 1]} : vector<8x384xf32> to vector<8x128xf32>
    %160 = vector.extract_strided_slice %158 {offsets = [0, 0], sizes = [8, 128], strides = [1, 1]} : vector<8x384xf32> to vector<8x128xf32>
    %161 = arith.addf %159, %160 : vector<8x128xf32>
    %162 = arith.negf %161 : vector<8x128xf32>
    %163 = math.exp %162 : vector<8x128xf32>
    %cst_77 = arith.constant 1.000000e+00 : f32
    %164 = vector.broadcast %cst_77 : f32 to vector<8x128xf32>
    %165 = arith.addf %164, %163 : vector<8x128xf32>
    %166 = arith.divf %164, %165 : vector<8x128xf32>
    %167 = vector.extract_strided_slice %152 {offsets = [0, 128], sizes = [8, 128], strides = [1, 1]} : vector<8x384xf32> to vector<8x128xf32>
    %168 = vector.extract_strided_slice %158 {offsets = [0, 128], sizes = [8, 128], strides = [1, 1]} : vector<8x384xf32> to vector<8x128xf32>
    %169 = arith.addf %167, %168 : vector<8x128xf32>
    %170 = arith.negf %169 : vector<8x128xf32>
    %171 = math.exp %170 : vector<8x128xf32>
    %cst_78 = arith.constant 1.000000e+00 : f32
    %172 = vector.broadcast %cst_78 : f32 to vector<8x128xf32>
    %173 = arith.addf %172, %171 : vector<8x128xf32>
    %174 = arith.divf %172, %173 : vector<8x128xf32>
    %175 = vector.extract_strided_slice %152 {offsets = [0, 256], sizes = [8, 128], strides = [1, 1]} : vector<8x384xf32> to vector<8x128xf32>
    %176 = vector.extract_strided_slice %158 {offsets = [0, 256], sizes = [8, 128], strides = [1, 1]} : vector<8x384xf32> to vector<8x128xf32>
    %177 = arith.mulf %166, %176 : vector<8x128xf32>
    %178 = arith.addf %175, %177 : vector<8x128xf32>
    %179 = math.tanh %178 : vector<8x128xf32>
    %cst_79 = arith.constant 1.000000e+00 : f32
    %180 = vector.broadcast %cst_79 : f32 to vector<8x128xf32>
    %181 = arith.subf %180, %174 : vector<8x128xf32>
    %182 = arith.mulf %181, %179 : vector<8x128xf32>
    %183 = arith.mulf %174, %144 : vector<8x128xf32>
    %184 = arith.addf %182, %183 : vector<8x128xf32>
    %c0_80 = arith.constant 0 : index
    %c0_81 = arith.constant 0 : index
    %185 = vector.load %arg8[%c0_80, %c0_81] : memref<8x128xf32, #tpu.memory_space<vmem>>, vector<8x128xf32>
    tpu.vector_store %arg8[%c0_80, %c0_81], %184 {strides = array<i32>} : memref<8x128xf32, #tpu.memory_space<vmem>>, vector<8x128xf32>,
    %186 = arith.truncf %184 : vector<8x128xf32> to vector<8x128xbf16>
    %187 = arith.index_cast %c3_i32 : i32 to index
    %c0_82 = arith.constant 0 : index
    %c0_83 = arith.constant 0 : index
    %188 = vector.load %arg7[%187, %c0_82, %c0_83] : memref<8x8x128xbf16, #tpu.memory_space<vmem>>, vector<1x8x128xbf16>
    %189 = vector.shape_cast %188 : vector<1x8x128xbf16> to vector<8x128xbf16>
    %190 = vector.shape_cast %186 : vector<8x128xbf16> to vector<1x8x128xbf16>
    tpu.vector_store %arg7[%187, %c0_82, %c0_83], %190 {strides = array<i32>} : memref<8x8x128xbf16, #tpu.memory_space<vmem>>, vector<1x8x128xbf16>,
    %c4_i32 = arith.constant 4 : i32
    %c0_84 = arith.constant 0 : index
    %c0_85 = arith.constant 0 : index
    %191 = vector.load %arg8[%c0_84, %c0_85] : memref<8x128xf32, #tpu.memory_space<vmem>>, vector<8x128xf32>
    %192 = arith.index_cast %c4_i32 : i32 to index
    %c0_86 = arith.constant 0 : index
    %c0_87 = arith.constant 0 : index
    %193 = vector.load %arg2[%192, %c0_86, %c0_87] : memref<8x8x24xbf16, #tpu.memory_space<vmem>>, vector<1x8x24xbf16>
    %194 = vector.shape_cast %193 : vector<1x8x24xbf16> to vector<8x24xbf16>
    %c0_88 = arith.constant 0 : index
    %c0_89 = arith.constant 0 : index
    %195 = vector.load %arg3[%c0_88, %c0_89] : memref<24x384xbf16, #tpu.memory_space<vmem>>, vector<24x384xbf16>
    %cst_90 = arith.constant dense<0.000000e+00> : vector<8x384xf32>
    %196 = tpu.matmul %194, %195, %cst_90 {dimension_numbers = #tpu.dot_dimension_numbers<[1], [0], [0], [1], [0, 0, 1, 1], [], []>} : vector<8x24xbf16>, vector<24x384xbf16>, vector<8x384xf32> -> vector<8x384xf32>
    %c0_91 = arith.constant 0 : index
    %c0_92 = arith.constant 0 : index
    %197 = vector.load %arg4[%c0_91, %c0_92] : memref<1x384xf32, #tpu.memory_space<vmem>>, vector<1x384xf32>
    %198 = vector.broadcast %197 : vector<1x384xf32> to vector<8x384xf32>
    %199 = arith.addf %196, %198 : vector<8x384xf32>
    %200 = arith.truncf %191 : vector<8x128xf32> to vector<8x128xbf16>
    %c0_93 = arith.constant 0 : index
    %c0_94 = arith.constant 0 : index
    %201 = vector.load %arg5[%c0_93, %c0_94] : memref<128x384xbf16, #tpu.memory_space<vmem>>, vector<128x384xbf16>
    %cst_95 = arith.constant dense<0.000000e+00> : vector<8x384xf32>
    %202 = tpu.matmul %200, %201, %cst_95 {dimension_numbers = #tpu.dot_dimension_numbers<[1], [0], [0], [1], [0, 0, 1, 1], [], []>} : vector<8x128xbf16>, vector<128x384xbf16>, vector<8x384xf32> -> vector<8x384xf32>
    %c0_96 = arith.constant 0 : index
    %c0_97 = arith.constant 0 : index
    %203 = vector.load %arg6[%c0_96, %c0_97] : memref<1x384xf32, #tpu.memory_space<vmem>>, vector<1x384xf32>
    %204 = vector.broadcast %203 : vector<1x384xf32> to vector<8x384xf32>
    %205 = arith.addf %202, %204 : vector<8x384xf32>
    %206 = vector.extract_strided_slice %199 {offsets = [0, 0], sizes = [8, 128], strides = [1, 1]} : vector<8x384xf32> to vector<8x128xf32>
    %207 = vector.extract_strided_slice %205 {offsets = [0, 0], sizes = [8, 128], strides = [1, 1]} : vector<8x384xf32> to vector<8x128xf32>
    %208 = arith.addf %206, %207 : vector<8x128xf32>
    %209 = arith.negf %208 : vector<8x128xf32>
    %210 = math.exp %209 : vector<8x128xf32>
    %cst_98 = arith.constant 1.000000e+00 : f32
    %211 = vector.broadcast %cst_98 : f32 to vector<8x128xf32>
    %212 = arith.addf %211, %210 : vector<8x128xf32>
    %213 = arith.divf %211, %212 : vector<8x128xf32>
    %214 = vector.extract_strided_slice %199 {offsets = [0, 128], sizes = [8, 128], strides = [1, 1]} : vector<8x384xf32> to vector<8x128xf32>
    %215 = vector.extract_strided_slice %205 {offsets = [0, 128], sizes = [8, 128], strides = [1, 1]} : vector<8x384xf32> to vector<8x128xf32>
    %216 = arith.addf %214, %215 : vector<8x128xf32>
    %217 = arith.negf %216 : vector<8x128xf32>
    %218 = math.exp %217 : vector<8x128xf32>
    %cst_99 = arith.constant 1.000000e+00 : f32
    %219 = vector.broadcast %cst_99 : f32 to vector<8x128xf32>
    %220 = arith.addf %219, %218 : vector<8x128xf32>
    %221 = arith.divf %219, %220 : vector<8x128xf32>
    %222 = vector.extract_strided_slice %199 {offsets = [0, 256], sizes = [8, 128], strides = [1, 1]} : vector<8x384xf32> to vector<8x128xf32>
    %223 = vector.extract_strided_slice %205 {offsets = [0, 256], sizes = [8, 128], strides = [1, 1]} : vector<8x384xf32> to vector<8x128xf32>
    %224 = arith.mulf %213, %223 : vector<8x128xf32>
    %225 = arith.addf %222, %224 : vector<8x128xf32>
    %226 = math.tanh %225 : vector<8x128xf32>
    %cst_100 = arith.constant 1.000000e+00 : f32
    %227 = vector.broadcast %cst_100 : f32 to vector<8x128xf32>
    %228 = arith.subf %227, %221 : vector<8x128xf32>
    %229 = arith.mulf %228, %226 : vector<8x128xf32>
    %230 = arith.mulf %221, %191 : vector<8x128xf32>
    %231 = arith.addf %229, %230 : vector<8x128xf32>
    %c0_101 = arith.constant 0 : index
    %c0_102 = arith.constant 0 : index
    %232 = vector.load %arg8[%c0_101, %c0_102] : memref<8x128xf32, #tpu.memory_space<vmem>>, vector<8x128xf32>
    tpu.vector_store %arg8[%c0_101, %c0_102], %231 {strides = array<i32>} : memref<8x128xf32, #tpu.memory_space<vmem>>, vector<8x128xf32>,
    %233 = arith.truncf %231 : vector<8x128xf32> to vector<8x128xbf16>
    %234 = arith.index_cast %c4_i32 : i32 to index
    %c0_103 = arith.constant 0 : index
    %c0_104 = arith.constant 0 : index
    %235 = vector.load %arg7[%234, %c0_103, %c0_104] : memref<8x8x128xbf16, #tpu.memory_space<vmem>>, vector<1x8x128xbf16>
    %236 = vector.shape_cast %235 : vector<1x8x128xbf16> to vector<8x128xbf16>
    %237 = vector.shape_cast %233 : vector<8x128xbf16> to vector<1x8x128xbf16>
    tpu.vector_store %arg7[%234, %c0_103, %c0_104], %237 {strides = array<i32>} : memref<8x8x128xbf16, #tpu.memory_space<vmem>>, vector<1x8x128xbf16>,
    %c5_i32 = arith.constant 5 : i32
    %c0_105 = arith.constant 0 : index
    %c0_106 = arith.constant 0 : index
    %238 = vector.load %arg8[%c0_105, %c0_106] : memref<8x128xf32, #tpu.memory_space<vmem>>, vector<8x128xf32>
    %239 = arith.index_cast %c5_i32 : i32 to index
    %c0_107 = arith.constant 0 : index
    %c0_108 = arith.constant 0 : index
    %240 = vector.load %arg2[%239, %c0_107, %c0_108] : memref<8x8x24xbf16, #tpu.memory_space<vmem>>, vector<1x8x24xbf16>
    %241 = vector.shape_cast %240 : vector<1x8x24xbf16> to vector<8x24xbf16>
    %c0_109 = arith.constant 0 : index
    %c0_110 = arith.constant 0 : index
    %242 = vector.load %arg3[%c0_109, %c0_110] : memref<24x384xbf16, #tpu.memory_space<vmem>>, vector<24x384xbf16>
    %cst_111 = arith.constant dense<0.000000e+00> : vector<8x384xf32>
    %243 = tpu.matmul %241, %242, %cst_111 {dimension_numbers = #tpu.dot_dimension_numbers<[1], [0], [0], [1], [0, 0, 1, 1], [], []>} : vector<8x24xbf16>, vector<24x384xbf16>, vector<8x384xf32> -> vector<8x384xf32>
    %c0_112 = arith.constant 0 : index
    %c0_113 = arith.constant 0 : index
    %244 = vector.load %arg4[%c0_112, %c0_113] : memref<1x384xf32, #tpu.memory_space<vmem>>, vector<1x384xf32>
    %245 = vector.broadcast %244 : vector<1x384xf32> to vector<8x384xf32>
    %246 = arith.addf %243, %245 : vector<8x384xf32>
    %247 = arith.truncf %238 : vector<8x128xf32> to vector<8x128xbf16>
    %c0_114 = arith.constant 0 : index
    %c0_115 = arith.constant 0 : index
    %248 = vector.load %arg5[%c0_114, %c0_115] : memref<128x384xbf16, #tpu.memory_space<vmem>>, vector<128x384xbf16>
    %cst_116 = arith.constant dense<0.000000e+00> : vector<8x384xf32>
    %249 = tpu.matmul %247, %248, %cst_116 {dimension_numbers = #tpu.dot_dimension_numbers<[1], [0], [0], [1], [0, 0, 1, 1], [], []>} : vector<8x128xbf16>, vector<128x384xbf16>, vector<8x384xf32> -> vector<8x384xf32>
    %c0_117 = arith.constant 0 : index
    %c0_118 = arith.constant 0 : index
    %250 = vector.load %arg6[%c0_117, %c0_118] : memref<1x384xf32, #tpu.memory_space<vmem>>, vector<1x384xf32>
    %251 = vector.broadcast %250 : vector<1x384xf32> to vector<8x384xf32>
    %252 = arith.addf %249, %251 : vector<8x384xf32>
    %253 = vector.extract_strided_slice %246 {offsets = [0, 0], sizes = [8, 128], strides = [1, 1]} : vector<8x384xf32> to vector<8x128xf32>
    %254 = vector.extract_strided_slice %252 {offsets = [0, 0], sizes = [8, 128], strides = [1, 1]} : vector<8x384xf32> to vector<8x128xf32>
    %255 = arith.addf %253, %254 : vector<8x128xf32>
    %256 = arith.negf %255 : vector<8x128xf32>
    %257 = math.exp %256 : vector<8x128xf32>
    %cst_119 = arith.constant 1.000000e+00 : f32
    %258 = vector.broadcast %cst_119 : f32 to vector<8x128xf32>
    %259 = arith.addf %258, %257 : vector<8x128xf32>
    %260 = arith.divf %258, %259 : vector<8x128xf32>
    %261 = vector.extract_strided_slice %246 {offsets = [0, 128], sizes = [8, 128], strides = [1, 1]} : vector<8x384xf32> to vector<8x128xf32>
    %262 = vector.extract_strided_slice %252 {offsets = [0, 128], sizes = [8, 128], strides = [1, 1]} : vector<8x384xf32> to vector<8x128xf32>
    %263 = arith.addf %261, %262 : vector<8x128xf32>
    %264 = arith.negf %263 : vector<8x128xf32>
    %265 = math.exp %264 : vector<8x128xf32>
    %cst_120 = arith.constant 1.000000e+00 : f32
    %266 = vector.broadcast %cst_120 : f32 to vector<8x128xf32>
    %267 = arith.addf %266, %265 : vector<8x128xf32>
    %268 = arith.divf %266, %267 : vector<8x128xf32>
    %269 = vector.extract_strided_slice %246 {offsets = [0, 256], sizes = [8, 128], strides = [1, 1]} : vector<8x384xf32> to vector<8x128xf32>
    %270 = vector.extract_strided_slice %252 {offsets = [0, 256], sizes = [8, 128], strides = [1, 1]} : vector<8x384xf32> to vector<8x128xf32>
    %271 = arith.mulf %260, %270 : vector<8x128xf32>
    %272 = arith.addf %269, %271 : vector<8x128xf32>
    %273 = math.tanh %272 : vector<8x128xf32>
    %cst_121 = arith.constant 1.000000e+00 : f32
    %274 = vector.broadcast %cst_121 : f32 to vector<8x128xf32>
    %275 = arith.subf %274, %268 : vector<8x128xf32>
    %276 = arith.mulf %275, %273 : vector<8x128xf32>
    %277 = arith.mulf %268, %238 : vector<8x128xf32>
    %278 = arith.addf %276, %277 : vector<8x128xf32>
    %c0_122 = arith.constant 0 : index
    %c0_123 = arith.constant 0 : index
    %279 = vector.load %arg8[%c0_122, %c0_123] : memref<8x128xf32, #tpu.memory_space<vmem>>, vector<8x128xf32>
    tpu.vector_store %arg8[%c0_122, %c0_123], %278 {strides = array<i32>} : memref<8x128xf32, #tpu.memory_space<vmem>>, vector<8x128xf32>,
    %280 = arith.truncf %278 : vector<8x128xf32> to vector<8x128xbf16>
    %281 = arith.index_cast %c5_i32 : i32 to index
    %c0_124 = arith.constant 0 : index
    %c0_125 = arith.constant 0 : index
    %282 = vector.load %arg7[%281, %c0_124, %c0_125] : memref<8x8x128xbf16, #tpu.memory_space<vmem>>, vector<1x8x128xbf16>
    %283 = vector.shape_cast %282 : vector<1x8x128xbf16> to vector<8x128xbf16>
    %284 = vector.shape_cast %280 : vector<8x128xbf16> to vector<1x8x128xbf16>
    tpu.vector_store %arg7[%281, %c0_124, %c0_125], %284 {strides = array<i32>} : memref<8x8x128xbf16, #tpu.memory_space<vmem>>, vector<1x8x128xbf16>,
    %c6_i32 = arith.constant 6 : i32
    %c0_126 = arith.constant 0 : index
    %c0_127 = arith.constant 0 : index
    %285 = vector.load %arg8[%c0_126, %c0_127] : memref<8x128xf32, #tpu.memory_space<vmem>>, vector<8x128xf32>
    %286 = arith.index_cast %c6_i32 : i32 to index
    %c0_128 = arith.constant 0 : index
    %c0_129 = arith.constant 0 : index
    %287 = vector.load %arg2[%286, %c0_128, %c0_129] : memref<8x8x24xbf16, #tpu.memory_space<vmem>>, vector<1x8x24xbf16>
    %288 = vector.shape_cast %287 : vector<1x8x24xbf16> to vector<8x24xbf16>
    %c0_130 = arith.constant 0 : index
    %c0_131 = arith.constant 0 : index
    %289 = vector.load %arg3[%c0_130, %c0_131] : memref<24x384xbf16, #tpu.memory_space<vmem>>, vector<24x384xbf16>
    %cst_132 = arith.constant dense<0.000000e+00> : vector<8x384xf32>
    %290 = tpu.matmul %288, %289, %cst_132 {dimension_numbers = #tpu.dot_dimension_numbers<[1], [0], [0], [1], [0, 0, 1, 1], [], []>} : vector<8x24xbf16>, vector<24x384xbf16>, vector<8x384xf32> -> vector<8x384xf32>
    %c0_133 = arith.constant 0 : index
    %c0_134 = arith.constant 0 : index
    %291 = vector.load %arg4[%c0_133, %c0_134] : memref<1x384xf32, #tpu.memory_space<vmem>>, vector<1x384xf32>
    %292 = vector.broadcast %291 : vector<1x384xf32> to vector<8x384xf32>
    %293 = arith.addf %290, %292 : vector<8x384xf32>
    %294 = arith.truncf %285 : vector<8x128xf32> to vector<8x128xbf16>
    %c0_135 = arith.constant 0 : index
    %c0_136 = arith.constant 0 : index
    %295 = vector.load %arg5[%c0_135, %c0_136] : memref<128x384xbf16, #tpu.memory_space<vmem>>, vector<128x384xbf16>
    %cst_137 = arith.constant dense<0.000000e+00> : vector<8x384xf32>
    %296 = tpu.matmul %294, %295, %cst_137 {dimension_numbers = #tpu.dot_dimension_numbers<[1], [0], [0], [1], [0, 0, 1, 1], [], []>} : vector<8x128xbf16>, vector<128x384xbf16>, vector<8x384xf32> -> vector<8x384xf32>
    %c0_138 = arith.constant 0 : index
    %c0_139 = arith.constant 0 : index
    %297 = vector.load %arg6[%c0_138, %c0_139] : memref<1x384xf32, #tpu.memory_space<vmem>>, vector<1x384xf32>
    %298 = vector.broadcast %297 : vector<1x384xf32> to vector<8x384xf32>
    %299 = arith.addf %296, %298 : vector<8x384xf32>
    %300 = vector.extract_strided_slice %293 {offsets = [0, 0], sizes = [8, 128], strides = [1, 1]} : vector<8x384xf32> to vector<8x128xf32>
    %301 = vector.extract_strided_slice %299 {offsets = [0, 0], sizes = [8, 128], strides = [1, 1]} : vector<8x384xf32> to vector<8x128xf32>
    %302 = arith.addf %300, %301 : vector<8x128xf32>
    %303 = arith.negf %302 : vector<8x128xf32>
    %304 = math.exp %303 : vector<8x128xf32>
    %cst_140 = arith.constant 1.000000e+00 : f32
    %305 = vector.broadcast %cst_140 : f32 to vector<8x128xf32>
    %306 = arith.addf %305, %304 : vector<8x128xf32>
    %307 = arith.divf %305, %306 : vector<8x128xf32>
    %308 = vector.extract_strided_slice %293 {offsets = [0, 128], sizes = [8, 128], strides = [1, 1]} : vector<8x384xf32> to vector<8x128xf32>
    %309 = vector.extract_strided_slice %299 {offsets = [0, 128], sizes = [8, 128], strides = [1, 1]} : vector<8x384xf32> to vector<8x128xf32>
    %310 = arith.addf %308, %309 : vector<8x128xf32>
    %311 = arith.negf %310 : vector<8x128xf32>
    %312 = math.exp %311 : vector<8x128xf32>
    %cst_141 = arith.constant 1.000000e+00 : f32
    %313 = vector.broadcast %cst_141 : f32 to vector<8x128xf32>
    %314 = arith.addf %313, %312 : vector<8x128xf32>
    %315 = arith.divf %313, %314 : vector<8x128xf32>
    %316 = vector.extract_strided_slice %293 {offsets = [0, 256], sizes = [8, 128], strides = [1, 1]} : vector<8x384xf32> to vector<8x128xf32>
    %317 = vector.extract_strided_slice %299 {offsets = [0, 256], sizes = [8, 128], strides = [1, 1]} : vector<8x384xf32> to vector<8x128xf32>
    %318 = arith.mulf %307, %317 : vector<8x128xf32>
    %319 = arith.addf %316, %318 : vector<8x128xf32>
    %320 = math.tanh %319 : vector<8x128xf32>
    %cst_142 = arith.constant 1.000000e+00 : f32
    %321 = vector.broadcast %cst_142 : f32 to vector<8x128xf32>
    %322 = arith.subf %321, %315 : vector<8x128xf32>
    %323 = arith.mulf %322, %320 : vector<8x128xf32>
    %324 = arith.mulf %315, %285 : vector<8x128xf32>
    %325 = arith.addf %323, %324 : vector<8x128xf32>
    %c0_143 = arith.constant 0 : index
    %c0_144 = arith.constant 0 : index
    %326 = vector.load %arg8[%c0_143, %c0_144] : memref<8x128xf32, #tpu.memory_space<vmem>>, vector<8x128xf32>
    tpu.vector_store %arg8[%c0_143, %c0_144], %325 {strides = array<i32>} : memref<8x128xf32, #tpu.memory_space<vmem>>, vector<8x128xf32>,
    %327 = arith.truncf %325 : vector<8x128xf32> to vector<8x128xbf16>
    %328 = arith.index_cast %c6_i32 : i32 to index
    %c0_145 = arith.constant 0 : index
    %c0_146 = arith.constant 0 : index
    %329 = vector.load %arg7[%328, %c0_145, %c0_146] : memref<8x8x128xbf16, #tpu.memory_space<vmem>>, vector<1x8x128xbf16>
    %330 = vector.shape_cast %329 : vector<1x8x128xbf16> to vector<8x128xbf16>
    %331 = vector.shape_cast %327 : vector<8x128xbf16> to vector<1x8x128xbf16>
    tpu.vector_store %arg7[%328, %c0_145, %c0_146], %331 {strides = array<i32>} : memref<8x8x128xbf16, #tpu.memory_space<vmem>>, vector<1x8x128xbf16>,
    %c7_i32 = arith.constant 7 : i32
    %c0_147 = arith.constant 0 : index
    %c0_148 = arith.constant 0 : index
    %332 = vector.load %arg8[%c0_147, %c0_148] : memref<8x128xf32, #tpu.memory_space<vmem>>, vector<8x128xf32>
    %333 = arith.index_cast %c7_i32 : i32 to index
    %c0_149 = arith.constant 0 : index
    %c0_150 = arith.constant 0 : index
    %334 = vector.load %arg2[%333, %c0_149, %c0_150] : memref<8x8x24xbf16, #tpu.memory_space<vmem>>, vector<1x8x24xbf16>
    %335 = vector.shape_cast %334 : vector<1x8x24xbf16> to vector<8x24xbf16>
    %c0_151 = arith.constant 0 : index
    %c0_152 = arith.constant 0 : index
    %336 = vector.load %arg3[%c0_151, %c0_152] : memref<24x384xbf16, #tpu.memory_space<vmem>>, vector<24x384xbf16>
    %cst_153 = arith.constant dense<0.000000e+00> : vector<8x384xf32>
    %337 = tpu.matmul %335, %336, %cst_153 {dimension_numbers = #tpu.dot_dimension_numbers<[1], [0], [0], [1], [0, 0, 1, 1], [], []>} : vector<8x24xbf16>, vector<24x384xbf16>, vector<8x384xf32> -> vector<8x384xf32>
    %c0_154 = arith.constant 0 : index
    %c0_155 = arith.constant 0 : index
    %338 = vector.load %arg4[%c0_154, %c0_155] : memref<1x384xf32, #tpu.memory_space<vmem>>, vector<1x384xf32>
    %339 = vector.broadcast %338 : vector<1x384xf32> to vector<8x384xf32>
    %340 = arith.addf %337, %339 : vector<8x384xf32>
    %341 = arith.truncf %332 : vector<8x128xf32> to vector<8x128xbf16>
    %c0_156 = arith.constant 0 : index
    %c0_157 = arith.constant 0 : index
    %342 = vector.load %arg5[%c0_156, %c0_157] : memref<128x384xbf16, #tpu.memory_space<vmem>>, vector<128x384xbf16>
    %cst_158 = arith.constant dense<0.000000e+00> : vector<8x384xf32>
    %343 = tpu.matmul %341, %342, %cst_158 {dimension_numbers = #tpu.dot_dimension_numbers<[1], [0], [0], [1], [0, 0, 1, 1], [], []>} : vector<8x128xbf16>, vector<128x384xbf16>, vector<8x384xf32> -> vector<8x384xf32>
    %c0_159 = arith.constant 0 : index
    %c0_160 = arith.constant 0 : index
    %344 = vector.load %arg6[%c0_159, %c0_160] : memref<1x384xf32, #tpu.memory_space<vmem>>, vector<1x384xf32>
    %345 = vector.broadcast %344 : vector<1x384xf32> to vector<8x384xf32>
    %346 = arith.addf %343, %345 : vector<8x384xf32>
    %347 = vector.extract_strided_slice %340 {offsets = [0, 0], sizes = [8, 128], strides = [1, 1]} : vector<8x384xf32> to vector<8x128xf32>
    %348 = vector.extract_strided_slice %346 {offsets = [0, 0], sizes = [8, 128], strides = [1, 1]} : vector<8x384xf32> to vector<8x128xf32>
    %349 = arith.addf %347, %348 : vector<8x128xf32>
    %350 = arith.negf %349 : vector<8x128xf32>
    %351 = math.exp %350 : vector<8x128xf32>
    %cst_161 = arith.constant 1.000000e+00 : f32
    %352 = vector.broadcast %cst_161 : f32 to vector<8x128xf32>
    %353 = arith.addf %352, %351 : vector<8x128xf32>
    %354 = arith.divf %352, %353 : vector<8x128xf32>
    %355 = vector.extract_strided_slice %340 {offsets = [0, 128], sizes = [8, 128], strides = [1, 1]} : vector<8x384xf32> to vector<8x128xf32>
    %356 = vector.extract_strided_slice %346 {offsets = [0, 128], sizes = [8, 128], strides = [1, 1]} : vector<8x384xf32> to vector<8x128xf32>
    %357 = arith.addf %355, %356 : vector<8x128xf32>
    %358 = arith.negf %357 : vector<8x128xf32>
    %359 = math.exp %358 : vector<8x128xf32>
    %cst_162 = arith.constant 1.000000e+00 : f32
    %360 = vector.broadcast %cst_162 : f32 to vector<8x128xf32>
    %361 = arith.addf %360, %359 : vector<8x128xf32>
    %362 = arith.divf %360, %361 : vector<8x128xf32>
    %363 = vector.extract_strided_slice %340 {offsets = [0, 256], sizes = [8, 128], strides = [1, 1]} : vector<8x384xf32> to vector<8x128xf32>
    %364 = vector.extract_strided_slice %346 {offsets = [0, 256], sizes = [8, 128], strides = [1, 1]} : vector<8x384xf32> to vector<8x128xf32>
    %365 = arith.mulf %354, %364 : vector<8x128xf32>
    %366 = arith.addf %363, %365 : vector<8x128xf32>
    %367 = math.tanh %366 : vector<8x128xf32>
    %cst_163 = arith.constant 1.000000e+00 : f32
    %368 = vector.broadcast %cst_163 : f32 to vector<8x128xf32>
    %369 = arith.subf %368, %362 : vector<8x128xf32>
    %370 = arith.mulf %369, %367 : vector<8x128xf32>
    %371 = arith.mulf %362, %332 : vector<8x128xf32>
    %372 = arith.addf %370, %371 : vector<8x128xf32>
    %c0_164 = arith.constant 0 : index
    %c0_165 = arith.constant 0 : index
    %373 = vector.load %arg8[%c0_164, %c0_165] : memref<8x128xf32, #tpu.memory_space<vmem>>, vector<8x128xf32>
    tpu.vector_store %arg8[%c0_164, %c0_165], %372 {strides = array<i32>} : memref<8x128xf32, #tpu.memory_space<vmem>>, vector<8x128xf32>,
    %374 = arith.truncf %372 : vector<8x128xf32> to vector<8x128xbf16>
    %375 = arith.index_cast %c7_i32 : i32 to index
    %c0_166 = arith.constant 0 : index
    %c0_167 = arith.constant 0 : index
    %376 = vector.load %arg7[%375, %c0_166, %c0_167] : memref<8x8x128xbf16, #tpu.memory_space<vmem>>, vector<1x8x128xbf16>
    %377 = vector.shape_cast %376 : vector<1x8x128xbf16> to vector<8x128xbf16>
    %378 = vector.shape_cast %374 : vector<8x128xbf16> to vector<1x8x128xbf16>
    tpu.vector_store %arg7[%375, %c0_166, %c0_167], %378 {strides = array<i32>} : memref<8x8x128xbf16, #tpu.memory_space<vmem>>, vector<1x8x128xbf16>,
    %c8_i32 = arith.constant 8 : i32
    return
  }
  func.func @transform_0(%arg0: i32, %arg1: i32) -> (i32, i32, i32) {
    %c0_i32 = arith.constant 0 : i32
    %c0_i32_0 = arith.constant 0 : i32
    return %arg1, %arg0, %c0_i32 : i32, i32, i32
  }
  func.func @transform_1(%arg0: i32, %arg1: i32) -> (i32, i32) {
    %c0_i32 = arith.constant 0 : i32
    %c0_i32_0 = arith.constant 0 : i32
    %c0_i32_1 = arith.constant 0 : i32
    return %c0_i32, %c0_i32_0 : i32, i32
  }
  func.func @transform_2(%arg0: i32, %arg1: i32) -> (i32, i32) {
    %c0_i32 = arith.constant 0 : i32
    %c0_i32_0 = arith.constant 0 : i32
    %c0_i32_1 = arith.constant 0 : i32
    return %c0_i32, %c0_i32_0 : i32, i32
  }
  func.func @transform_3(%arg0: i32, %arg1: i32) -> (i32, i32) {
    %c0_i32 = arith.constant 0 : i32
    %c0_i32_0 = arith.constant 0 : i32
    %c0_i32_1 = arith.constant 0 : i32
    return %c0_i32, %c0_i32_0 : i32, i32
  }
  func.func @transform_4(%arg0: i32, %arg1: i32) -> (i32, i32) {
    %c0_i32 = arith.constant 0 : i32
    %c0_i32_0 = arith.constant 0 : i32
    %c0_i32_1 = arith.constant 0 : i32
    return %c0_i32, %c0_i32_0 : i32, i32
  }
  func.func @transform_5(%arg0: i32, %arg1: i32) -> (i32, i32, i32) {
    %c0_i32 = arith.constant 0 : i32
    %c0_i32_0 = arith.constant 0 : i32
    return %arg1, %arg0, %c0_i32 : i32, i32, i32
  }
}

</mosaic_0001>

<bundles_post_ra>
// kernel: tpu_custom_call.1
= control target key start
LH: loop header
LB: loop body
LE: loop exit
PB: predicated region body
PF: predicated region fallthrough
CT: control target
= control target key end

     0   :  { %10 = vsyncpa [#allocation4], 0  ;;  %s4633_s0 = inlined_call_operand.hbm [shape: bf16[8,8,24], index: 0, kind: input, shape index: {}]   ;;  %s4634_s1 = inlined_call_operand.hbm [shape: bf16[24,384], index: 1, kind: input, shape index: {}]   ;;  %s4635_s2 = inlined_call_operand.hbm [shape: f32[1,384], index: 2, kind: input, shape index: {}]   ;;  %s4636_s3 = inlined_call_operand.hbm [shape: bf16[128,384], index: 3, kind: input, shape index: {}]   ;;  %s4637_s4 = inlined_call_operand.vmem [shape: f32[1,384], index: 4, kind: input, shape index: {}]   ;;  %s4638_s5 = inlined_call_operand.hbm [shape: bf16[8,8,128], index: 5, kind: output, shape index: {}]  }
   0x1   :  { %11 = vsyncpa [#allocation7], 0 }
   0x2   :  { %12 = vsyncpa [#allocation10], 0  ;;  %s31_s20 = sshll.u32 %s4634_s1, 4  ;;  %s32_s20 = int_to_ptr.hbm [resolvable:$true] %s31_s20 }
   0x3   :  { %13 = vsyncpa [#allocation5], 0  ;;  %s4255_s21 = smov [#allocation6]   ;;  %s18_s25 = sshll.u32 %s4633_s0, 4  ;;  %s19_s25 = int_to_ptr.hbm [resolvable:$true] %s18_s25 }
   0x4   :  { %s33_s22 = sshll.u32 %s4255_s21, 4  ;;  %s4256_s26 = smov 192   ;;  %s34_s22 = int_to_ptr.vmem [resolvable:$true] %s33_s22 }
   0x5   :  { %s4257_s27 = smov 12   ;;  %s4258_s28 = smov [#allocation3]  }
   0x6   :  { %39 = dma.hbm_to_vmem [thread:$0]  %s32_s20, 576, %s34_s22, [#allocation7], %s4256_s26, %s4256_s26, %s4257_s27  }
   0x7   :  { %s20_s29 = sshll.u32 %s4258_s28, 4  ;;  %s4259_s30 = smov 64   ;;  %s21_s29 = int_to_ptr.vmem [resolvable:$true] %s20_s29 }
   0x8   :  { %s4260_s6 = smov 4   ;;  %s45_s8 = sshll.u32 %s4635_s2, 4  ;;  %s46_s8 = int_to_ptr.hbm [resolvable:$true] %s45_s8 }
   0x9   :  { %26 = dma.hbm_to_vmem [thread:$0]  %s19_s25, 512, %s21_s29, [#allocation4], %s4259_s30, %s4259_s30, %s4260_s6  }
   0xa   :  { %s4261_s9 = smov [#allocation8]   ;;  %s55_s12 = sshll.u32 %s4636_s3, 4  ;;  %s56_s12 = int_to_ptr.hbm [resolvable:$true] %s55_s12 }
   0xb   :  { %s47_s0 = sshll.u32 %s4261_s9, 4  ;;  %s4262_s13 = smov [#allocation9]   ;;  %s48_s0 = int_to_ptr.vmem [resolvable:$true] %s47_s0 }
   0xc   :  { %50 = dma.hbm_to_vmem [thread:$0]  %s46_s8, 48, %s48_s0, [#allocation7]  }
   0xd   :  { %s57_s14 = sshll.u32 %s4262_s13, 4  ;;  %s58_s14 = int_to_ptr.vmem [resolvable:$true] %s57_s14 }
   0xe   :  { %63 = dma.hbm_to_vmem [thread:$0]  %s56_s12, 3072, %s58_s14, [#allocation10], %s4256_s26, %s4256_s26, %s4257_s27  }
   0xf   :  { %4247 = dma.done.wait [#allocation4], 512  }
  0x10   :  { %4248 = vsyncadd [#allocation4], 4294966784 }
  0x11   :  { %4249 = dma.done.wait [#allocation7], 624  }
  0x12   :  { %4250 = vsyncadd [#allocation7], 4294966672 }
  0x13   :  { %4251 = dma.done.wait [#allocation10], 3072  }
  0x14   :  { %4252 = vsyncadd [#allocation10], 4294964224  ;;  %v3018_v0 = vld [vmem:[#allocation9 + $0xa8] sm:$0xf]  ;;  %v3846_v1 = vld [vmem:[#allocation9 + $0xb0] sm:$0xf0] }
  0x15   :  { %v94_v2 = vld [vmem:[#allocation6 + $0x18] sm:$0xff]  ;;  %v3019_v3 = vor.u32 %v3846_v1, %v3018_v0  ;;  %v3843_v6 = vld [vmem:[#allocation9 + $0x98] sm:$0xf0]  ;;  %vm132_vm0 = vcmask 1043456   ;;  %v2919_v10 = vld [vmem:[#allocation6] sm:$0xf] }
  0x16   :  { %v116_v4 = vunpack.c.l.b16 %v94_v2  ;;  %v3006_v5 = vld [vmem:[#allocation9 + $0x90] sm:$0xf]  ;;  %v117_v7 = vunpack.c.h.b16 %v94_v2  ;;  %v3822_v11 = vld [vmem:[#allocation6 + $0x8] sm:$0xf0]  ;;  %v2994_v12 = vld [vmem:[#allocation9 + $0x78] sm:$0xf] }
  0x17   :  { %350 = vmatpush.bf16.msra.mxu3 %v3019_v3  ;;  %v3007_v9 = vor.u32 %v3843_v6, %v3006_v5  ;;  %v3840_v14 = vld [vmem:[#allocation9 + $0x80] sm:$0xf0]  ;;  %v3845_v15 = vld [vmem:[#allocation9 + $0xac] sm:$0xf]  ;;  %v3020_v16 = vld [vmem:[#allocation9 + $0xb4] sm:$0xf0]  ;;  %v2920_v19 = vor.u32 %v3822_v11, %v2919_v10 }
  0x18   :  { %v122_v8 = vpack.c.b16 %v116_v4, %v116_v4  ;;  %v123_v13 = vpack.c.b16 %v117_v7, %v117_v7  ;;  %v2995_v20 = vor.u32 %v3840_v14, %v2994_v12  ;;  %v3023_v21 = vor.u32 %v3845_v15, %v3020_v16  ;;  %v2982_v22 = vld [vmem:[#allocation9 + $0x60] sm:$0xf]  ;;  %v3837_v23 = vld [vmem:[#allocation9 + $0x68] sm:$0xf0]  ;;  %v3842_v24 = vld [vmem:[#allocation9 + $0x94] sm:$0xf] }
  0x19   :  { %v3008_v25 = vld [vmem:[#allocation9 + $0x9c] sm:$0xf0]  ;;  %v3821_v26 = vld [vmem:[#allocation6 + $0x4] sm:$0xf]  ;;  %v4318_v27 = vld [vmem:[#allocation3] sm:$0xf]  ;;  %v2983_v29 = vor.u32 %v3837_v23, %v2982_v22 }
  0x1a   :  { %v4311_v17 = vsel %vm132_vm0, %v122_v8, 0  ;;  %v4314_v18 = vsel %vm132_vm0, %v123_v13, 0  ;;  %vm128_vm1 = vcmask 195584   ;;  %v2921_v28 = vld [vmem:[#allocation6 + $0xc] sm:$0xf0]  ;;  %v3011_v30 = vor.u32 %v3842_v24, %v3008_v25  ;;  %s2902_s8 = sshll.u32 %s4638_s5, 4  ;;  %s2903_s8 = int_to_ptr.hbm [resolvable:$true] %s2902_s8 }
  0x1b   :  { %148 = vmatpush.bf16.msra.mxu0 %v4311_v17  ;;  %161 = vmatpush.bf16.msra.mxu1 %v4314_v18  ;;  %v2970_v31 = vld [vmem:[#allocation9 + $0x48] sm:$0xf]  ;;  %v3834_v32 = vld [vmem:[#allocation9 + $0x50] sm:$0xf0]  ;;  %v2924_v33 = vor.u32 %v3821_v26, %v2921_v28  ;;  %v3026_v34 = vld [vmem:[#allocation9 + $0xb0] sm:$0xf] }
  0x1c   :  { %351 = vmatpush.bf16.msra.mxu3 %v3007_v9  ;;  %v3839_v35 = vld [vmem:[#allocation9 + $0x7c] sm:$0xf]  ;;  %v2996_v36 = vld [vmem:[#allocation9 + $0x84] sm:$0xf0]  ;;  %v3014_v39 = vld [vmem:[#allocation9 + $0x98] sm:$0xf]  ;;  %v2971_v41 = vor.u32 %v3834_v32, %v2970_v31 }
  0x1d   :  { %v3847_v37 = vld [vmem:[#allocation9 + $0xb8] sm:$0xf0]  ;;  %v3844_v40 = vld [vmem:[#allocation9 + $0xa0] sm:$0xf0]  ;;  %v2999_v42 = vor.u32 %v3839_v35, %v2996_v36  ;;  %v2958_v43 = vld [vmem:[#allocation9 + $0x30] sm:$0xf] }
  0x1e   :  { %v3027_v38 = vor.u32 %v3847_v37, %v3026_v34  ;;  %v3831_v44 = vld [vmem:[#allocation9 + $0x38] sm:$0xf0]  ;;  %v3836_v45 = vld [vmem:[#allocation9 + $0x64] sm:$0xf]  ;;  %v2984_v46 = vld [vmem:[#allocation9 + $0x6c] sm:$0xf0]  ;;  %v3015_v47 = vor.u32 %v3844_v40, %v3014_v39 }
  0x1f   :  { %149 = vmatpush.bf16.msra.mxu0 %v2920_v19  ;;  %162 = vmatpush.bf16.msra.mxu1 %v2924_v33  ;;  %v95_v48 = vld [vmem:[#allocation6 + $0x20] sm:$0xf]  ;;  %v3002_v49 = vld [vmem:[#allocation9 + $0x80] sm:$0xf]  ;;  %v3841_v50 = vld [vmem:[#allocation9 + $0x88] sm:$0xf0]  ;;  %v2959_v52 = vor.u32 %v3831_v44, %v2958_v43  ;;  %v2987_v53 = vor.u32 %v3836_v45, %v2984_v46 }
  0x20   :  { %352 = vmatpush.bf16.msra.mxu3 %v2995_v20  ;;  %v118_v51 = vunpack.c.l.b16 %v95_v48  ;;  %v2946_v54 = vld [vmem:[#allocation9 + $0x18] sm:$0xf]  ;;  %v2927_v56 = vld [vmem:[#allocation6 + $0x8] sm:$0xf]  ;;  %v3823_v57 = vld [vmem:[#allocation6 + $0x10] sm:$0xf0]  ;;  %v3003_v61 = vor.u32 %v3841_v50, %v3002_v49 }
  0x21   :  { %v3828_v58 = vld [vmem:[#allocation9 + $0x20] sm:$0xf0]  ;;  %v3833_v59 = vld [vmem:[#allocation9 + $0x4c] sm:$0xf]  ;;  %v2972_v60 = vld [vmem:[#allocation9 + $0x54] sm:$0xf0]  ;;  %v2928_v1 = vor.u32 %v3823_v57, %v2927_v56 }
  0x22   :  { %2929 = vmatmul.msk.bf16.vlgmr.msra.gmra.mxu0 %vm128_vm1, %v4318_v27  ;;  %2930 = vmatmul.msk.bf16.vlgmr.msra.gmra.mxu1 %vm128_vm1, %v4318_v27  ;;  %v124_v55 = vpack.c.b16 %v118_v51, %v118_v51  ;;  %v2990_v62 = vld [vmem:[#allocation9 + $0x68] sm:$0xf]  ;;  %v3838_v63 = vld [vmem:[#allocation9 + $0x70] sm:$0xf0]  ;;  %v2947_v2 = vor.u32 %v3828_v58, %v2946_v54  ;;  %v2975_v3 = vor.u32 %v3833_v59, %v2972_v60  ;;  %v2934_v4 = vld [vmem:[#allocation9] sm:$0xf] }
  0x23   :  { %363 = vmatpush.bf16.msrb.mxu0 %v3023_v21  ;;  %376 = vmatpush.bf16.msrb.mxu1 %v3027_v38  ;;  %v3825_v5 = vld [vmem:[#allocation9 + $0x8] sm:$0xf0]  ;;  %v3830_v6 = vld [vmem:[#allocation9 + $0x34] sm:$0xf]  ;;  %v2960_v7 = vld [vmem:[#allocation9 + $0x3c] sm:$0xf0]  ;;  %v2991_v8 = vor.u32 %v3838_v63, %v2990_v62 }
  0x24   :  { %353 = vmatpush.bf16.msra.mxu3 %v2983_v29  ;;  %v140_v0 = vsel %vm132_vm0, %v124_v55, 0  ;;  %v2978_v9 = vld [vmem:[#allocation9 + $0x50] sm:$0xf]  ;;  %v3835_v10 = vld [vmem:[#allocation9 + $0x58] sm:$0xf0]  ;;  %v2935_v11 = vor.u32 %v3825_v5, %v2934_v4  ;;  %v2963_v12 = vor.u32 %v3830_v6, %v2960_v7  ;;  %v4263_v26 = vmov 0.0|0.0  }
  0x25   :  { %174 = vmatpush.bf16.msra.mxu2 %v140_v0  ;;  %v3827_v13 = vld [vmem:[#allocation9 + $0x1c] sm:$0xf]  ;;  %v2948_v14 = vld [vmem:[#allocation9 + $0x24] sm:$0xf0]  ;;  %v2979_v15 = vor.u32 %v3835_v10, %v2978_v9  ;;  %v2966_v16 = vld [vmem:[#allocation9 + $0x38] sm:$0xf] }
  0x26   :  { %v3832_v19 = vld [vmem:[#allocation9 + $0x40] sm:$0xf0]  ;;  %v2951_v20 = vor.u32 %v3827_v13, %v2948_v14  ;;  %v2936_v22 = vld [vmem:[#allocation9 + $0xc] sm:$0xf0]  ;;  %v2954_v24 = vld [vmem:[#allocation9 + $0x20] sm:$0xf] }
  0x27   :  { %364 = vmatpush.bf16.msrb.mxu0 %v3011_v30  ;;  %377 = vmatpush.bf16.msrb.mxu1 %v3015_v47  ;;  %v3824_v21 = vld [vmem:[#allocation9 + $0x4] sm:$0xf]  ;;  %v2967_v23 = vor.u32 %v3832_v19, %v2966_v16  ;;  %v3829_v25 = vld [vmem:[#allocation9 + $0x28] sm:$0xf0]  ;;  %v2942_v30 = vld [vmem:[#allocation9 + $0x8] sm:$0xf] }
  0x28   :  { %354 = vmatpush.bf16.msra.mxu3 %v2971_v41  ;;  %v2939_v28 = vor.u32 %v3824_v21, %v2936_v22  ;;  %v2955_v29 = vor.u32 %v3829_v25, %v2954_v24  ;;  %v3826_v31 = vld [vmem:[#allocation9 + $0x10] sm:$0xf0]  ;;  %v3032_v34 = vld [vmem:[#allocation6] sm:$0xf]  ;;  %v3849_v35 = vld [vmem:[#allocation6 + $0x8] sm:$0xf0] }
  0x29   :  { %175 = vmatpush.bf16.msra.mxu2 %v2928_v1  ;;  %v3033_v36 = vor.u32 %v3849_v35, %v3032_v34  ;;  %v3848_v38 = vld [vmem:[#allocation6 + $0x4] sm:$0xf]  ;;  %v3034_v39 = vld [vmem:[#allocation6 + $0xc] sm:$0xf0]  ;;  %v3872_v43 = vld [vmem:[#allocation9 + $0xac] sm:$0xf] }
  0x2a   :  { %v3037_v40 = vor.u32 %v3848_v38, %v3034_v39  ;;  %v3131_v41 = vld [vmem:[#allocation9 + $0xa8] sm:$0xf]  ;;  %v4333_v45 = vld [vmem:[#allocation3 + $0x4] sm:$0xf]  ;;  %v3133_v47 = vld [vmem:[#allocation9 + $0xb4] sm:$0xf0] }
  0x2b   :  { %365 = vmatpush.bf16.msrb.mxu0 %v2999_v42  ;;  %378 = vmatpush.bf16.msrb.mxu1 %v3003_v61  ;;  %v3873_v42 = vld [vmem:[#allocation9 + $0xb0] sm:$0xf0]  ;;  %v3139_v48 = vld [vmem:[#allocation9 + $0xb0] sm:$0xf]  ;;  %v3136_v49 = vor.u32 %v3872_v43, %v3133_v47  ;;  %v3874_v50 = vld [vmem:[#allocation9 + $0xb8] sm:$0xf0] }
  0x2c   :  { %355 = vmatpush.bf16.msra.mxu3 %v2959_v52  ;;  %2931 = vmatmul.msk.bf16.vlgmr.msra.gmra.mxu2 %vm128_vm1, %v4318_v27  ;;  %v2943_v27 = vor.u32 %v3826_v31, %v2942_v30  ;;  %v3132_v46 = vor.u32 %v3873_v42, %v3131_v41  ;;  %v3140_v51 = vor.u32 %v3874_v50, %v3139_v48  ;;  %v3119_v52 = vld [vmem:[#allocation9 + $0x90] sm:$0xf]  ;;  %v3869_v54 = vld [vmem:[#allocation9 + $0x94] sm:$0xf]  ;;  %v3121_v56 = vld [vmem:[#allocation9 + $0x9c] sm:$0xf0] }
  0x2d   :  { %498 = vmatpush.bf16.msrb.mxu2 %v4311_v17  ;;  %v3127_v57 = vld [vmem:[#allocation9 + $0x98] sm:$0xf]  ;;  %v3871_v58 = vld [vmem:[#allocation9 + $0xa0] sm:$0xf0]  ;;  %v3124_v59 = vor.u32 %v3869_v54, %v3121_v56  ;;  %v4337_v61 = vld [vmem:[#allocation8] sm:$0x7] }
  0x2e   :  { %v3128_v60 = vor.u32 %v3871_v58, %v3127_v57  ;;  %v4342_v62 = vld [vmem:[%s4637_s4] sm:$0x7]  ;;  %v3867_v0 = vld [vmem:[#allocation9 + $0x80] sm:$0xf0]  ;;  %v3866_v1 = vld [vmem:[#allocation9 + $0x7c] sm:$0xf] }
  0x2f   :  { %366 = vmatpush.bf16.msrb.mxu0 %v2987_v53  ;;  %379 = vmatpush.bf16.msrb.mxu1 %v2991_v8  ;;  %v3870_v53 = vld [vmem:[#allocation9 + $0x98] sm:$0xf0]  ;;  %v3107_v63 = vld [vmem:[#allocation9 + $0x78] sm:$0xf]  ;;  %v3115_v4 = vld [vmem:[#allocation9 + $0x80] sm:$0xf] }
  0x30   :  { %356 = vmatpush.bf16.msra.mxu3 %v2947_v2  ;;  %v3120_v55 = vor.u32 %v3870_v53, %v3119_v52  ;;  %v3108_v2 = vor.u32 %v3867_v0, %v3107_v63  ;;  %v3868_v5 = vld [vmem:[#allocation9 + $0x88] sm:$0xf0]  ;;  %v98_v9 = vperm.slane %v4337_v61, 0  ;;  %v216_v10 = vperm.slane %v4342_v62, 0  ;;  %v3097_v16 = vld [vmem:[#allocation9 + $0x6c] sm:$0xf0] }
  0x31   :  { %499 = vmatpush.bf16.msrb.mxu2 %v3033_v36  ;;  %v3116_v8 = vor.u32 %v3868_v5, %v3115_v4  ;;  %v3864_v13 = vld [vmem:[#allocation9 + $0x68] sm:$0xf0]  ;;  %v3103_v19 = vld [vmem:[#allocation9 + $0x68] sm:$0xf]  ;;  %v3865_v22 = vld [vmem:[#allocation9 + $0x70] sm:$0xf0] }
  0x32   :  { %v3104_v24 = vor.u32 %v3865_v22, %v3103_v19  ;;  %v3861_v30 = vld [vmem:[#allocation9 + $0x50] sm:$0xf0]  ;;  %v3860_v31 = vld [vmem:[#allocation9 + $0x4c] sm:$0xf]  ;;  %v3085_v35 = vld [vmem:[#allocation9 + $0x54] sm:$0xf0] }
  0x33   :  { %367 = vmatpush.bf16.msrb.mxu0 %v2975_v3  ;;  %380 = vmatpush.bf16.msrb.mxu1 %v2979_v15  ;;  %v3109_v3 = vld [vmem:[#allocation9 + $0x84] sm:$0xf0]  ;;  %v3863_v15 = vld [vmem:[#allocation9 + $0x64] sm:$0xf]  ;;  %v3091_v36 = vld [vmem:[#allocation9 + $0x50] sm:$0xf] }
  0x34   :  { %357 = vmatpush.bf16.msra.mxu3 %v2935_v11  ;;  %v3112_v7 = vor.u32 %v3866_v1, %v3109_v3  ;;  %v99_v11 = vperm.slane %v4337_v61, 1  ;;  %v3100_v21 = vor.u32 %v3863_v15, %v3097_v16  ;;  %v3071_v43 = vld [vmem:[#allocation9 + $0x30] sm:$0xf]  ;;  %v3857_v47 = vld [vmem:[#allocation9 + $0x34] sm:$0xf] }
  0x35   :  { %511 = vmatpush.bf16.msra.mxu2 %v4314_v18  ;;  %v3073_v48 = vld [vmem:[#allocation9 + $0x3c] sm:$0xf0]  ;;  %v3859_v53 = vld [vmem:[#allocation9 + $0x40] sm:$0xf0]  ;;  %v3059_v56 = vld [vmem:[#allocation9 + $0x18] sm:$0xf] }
  0x36   :  { %v3076_v52 = vor.u32 %v3857_v47, %v3073_v48  ;;  %v3855_v57 = vld [vmem:[#allocation9 + $0x20] sm:$0xf0]  ;;  %v3854_v58 = vld [vmem:[#allocation9 + $0x1c] sm:$0xf]  ;;  %v3061_v63 = vld [vmem:[#allocation9 + $0x24] sm:$0xf0] }
  0x37   :  { %368 = vmatpush.bf16.msrb.mxu0 %v2963_v12  ;;  %358 = vmatmul.bf16.vlgmr.msra.gmra.mxu3 %v4263_v26  ;;  %v3095_v12 = vld [vmem:[#allocation9 + $0x60] sm:$0xf]  ;;  %v3856_v1 = vld [vmem:[#allocation9 + $0x28] sm:$0xf0] }
  0x38   :  { %381 = vmatpush.bf16.msrb.mxu1 %v2967_v23  ;;  %v3096_v14 = vor.u32 %v3864_v13, %v3095_v12  ;;  %v3067_v0 = vld [vmem:[#allocation9 + $0x20] sm:$0xf]  ;;  %v3852_v5 = vld [vmem:[#allocation9 + $0x8] sm:$0xf0]  ;;  %v3853_v12 = vld [vmem:[#allocation9 + $0x10] sm:$0xf0] }
  0x39   :  { %512 = vmatpush.bf16.msra.mxu2 %v3037_v40  ;;  %v3068_v3 = vor.u32 %v3856_v1, %v3067_v0  ;;  %v3047_v4 = vld [vmem:[#allocation9] sm:$0xf]  ;;  %v3145_v0 = vld [vmem:[#allocation6] sm:$0xf]  ;;  %v3876_v1 = vld [vmem:[#allocation6 + $0x8] sm:$0xf0] }
  0x3b   :  { %369 = vmatpush.bf16.msrb.mxu0 %v2951_v20  ;;  %v217_v20 = vperm.slane %v4342_v62, 1 }
  0x3c   :  { %382 = vmatpush.bf16.msrb.mxu1 %v2955_v29  ;;  %3042 = vmatmul.msk.bf16.vlgmr.msrb.gmra.mxu2 %vm128_vm1, %v4333_v45  ;;  %v3083_v29 = vld [vmem:[#allocation9 + $0x48] sm:$0xf] }
  0x3d   :  { %726 = vmatpush.bf16.msrb.mxu2 %v3140_v51  ;;  %v3084_v34 = vor.u32 %v3861_v30, %v3083_v29 }
  0x3f   :  { %370 = vmatpush.bf16.msrb.mxu0 %v2939_v28 }
  0x40   :  { %383 = vmatpush.bf16.msrb.mxu1 %v2943_v27 }
  0x41   :  { %727 = vmatpush.bf16.msrb.mxu2 %v3128_v60  ;;  %v3060_v60 = vor.u32 %v3855_v57, %v3059_v56 }
  0x42   :  { %371 = vmatmul.bf16.vlgmr.msrb.gmra.mxu0 %v4263_v26 }
  0x43   :  { %384 = vmatmul.bf16.vlgmr.msrb.gmra.mxu1 %v4263_v26  ;;  %700 = vmatpush.bf16.msra.mxu0 %v3132_v46 }
  0x44   :  { %713 = vmatpush.bf16.msra.mxu1 %v3136_v49  ;;  %v3079_v49 = vld [vmem:[#allocation9 + $0x38] sm:$0xf] }
  0x45   :  { %728 = vmatpush.bf16.msrb.mxu2 %v3116_v8 }
  0x47   :  { %701 = vmatpush.bf16.msra.mxu0 %v3120_v55  ;;  %v3080_v55 = vor.u32 %v3859_v53, %v3079_v49 }
  0x48   :  { %714 = vmatpush.bf16.msra.mxu1 %v3124_v59 }
  0x49   :  { %729 = vmatpush.bf16.msrb.mxu2 %v3104_v24 }
  0x4b   :  { %702 = vmatpush.bf16.msra.mxu0 %v3108_v2  ;;  %v3064_v2 = vor.u32 %v3854_v58, %v3061_v63 }
  0x4c   :  { %715 = vmatpush.bf16.msra.mxu1 %v3112_v7  ;;  %3043 = vmatmul.msk.bf16.vlgmr.msra.gmra.mxu2 %vm128_vm1, %v4333_v45  ;;  %v3851_v7 = vld [vmem:[#allocation9 + $0x4] sm:$0xf] }
  0x4f   :  { %703 = vmatpush.bf16.msra.mxu0 %v3096_v14 }
  0x50   :  { %716 = vmatpush.bf16.msra.mxu1 %v3100_v21  ;;  %v447_v21 = vld [vmem:[#allocation6 + $0x20] sm:$0xf] }
  0x51   :  { %v470_v22 = vunpack.c.l.b16 %v447_v21  ;;  %v3252_v21 = vld [vmem:[#allocation9 + $0xb0] sm:$0xf] }
  0x53   :  { %704 = vmatpush.bf16.msra.mxu0 %v3084_v34  ;;  %v476_v24 = vpack.c.b16 %v470_v22, %v470_v22 }
  0x55   :  { %v490_v30 = vsel %vm132_vm0, %v476_v24, 0  ;;  %v3897_v24 = vld [vmem:[#allocation9 + $0x98] sm:$0xf0] }
  0x56   :  { %524 = vmatpush.bf16.msrb.mxu3 %v490_v30  ;;  %v3898_v30 = vld [vmem:[#allocation9 + $0xa0] sm:$0xf0] }
  0x9f   :  { %v4328_v32 = vpop.f32.mrf.mxu0  ;;  %v4330_v33 = vpop.f32.mrf.mxu1 }
  0xa0   :  { %v152_v25 = vadd.f32 %v4328_v32, %v98_v9  ;;  %v165_v28 = vadd.f32 %v4330_v33, %v99_v11  ;;  %v3088_v32 = vor.u32 %v3860_v31, %v3085_v35  ;;  %v3048_v9 = vor.u32 %v3852_v5, %v3047_v4  ;;  %v3055_v11 = vld [vmem:[#allocation9 + $0x8] sm:$0xf]  ;;  %v3875_v5 = vld [vmem:[#allocation6 + $0x4] sm:$0xf] }
  0xa1   :  { %v3056_v15 = vor.u32 %v3853_v12, %v3055_v11  ;;  %v3244_v11 = vld [vmem:[#allocation9 + $0xa8] sm:$0xf]  ;;  %v3900_v12 = vld [vmem:[#allocation9 + $0xb0] sm:$0xf0] }
  0xa2   :  { %717 = vmatpush.bf16.msra.mxu1 %v3088_v32 }
  0xa6   :  { %718 = vmatpush.bf16.msra.mxu1 %v3076_v52 }
  0xa7   :  { %v153_v37 = vpop.f32.mrf.mxu0  ;;  %v166_v44 = vpop.f32.mrf.mxu1 }
  0xa8   :  { %v3862_v37 = vld [vmem:[#allocation9 + $0x58] sm:$0xf0] }
  0xa9   :  { %v3092_v41 = vor.u32 %v3862_v37, %v3091_v36  ;;  %v3858_v44 = vld [vmem:[#allocation9 + $0x38] sm:$0xf0]  ;;  %v100_v37 = vperm.slane %v4337_v61, 2 }
  0xaa   :  { %v3072_v46 = vor.u32 %v3858_v44, %v3071_v43  ;;  %719 = vmatpush.bf16.msra.mxu1 %v3064_v2  ;;  %v3146_v2 = vor.u32 %v3876_v1, %v3145_v0  ;;  %v3196_v1 = vld [vmem:[#allocation9 + $0x48] sm:$0xf] }
  0xab   :  { %730 = vmatpush.bf16.msrb.mxu2 %v3092_v41 }
  0xac   :  { %705 = vmatpush.bf16.msra.mxu0 %v3072_v46 }
  0xaf   :  { %v4344_v6 = vpop.f32.mrf.mxu2  ;;  %731 = vmatpush.bf16.msrb.mxu2 %v3080_v55 }
  0xb0   :  { %706 = vmatpush.bf16.msra.mxu0 %v3060_v60  ;;  %v178_v43 = vadd.f32 %v4344_v6, %v100_v37  ;;  %v798_v60 = vld [vmem:[#allocation6 + $0x20] sm:$0xf] }
  0xb1   :  { %v821_v63 = vunpack.c.l.b16 %v798_v60  ;;  %v3220_v37 = vld [vmem:[#allocation9 + $0x78] sm:$0xf] }
  0xb3   :  { %732 = vmatpush.bf16.msrb.mxu2 %v3068_v3  ;;  %v827_v3 = vpack.c.b16 %v821_v63, %v821_v63 }
  0xb4   :  { %707 = vmatpush.bf16.msra.mxu0 %v3048_v9 }
  0xb5   :  { %v841_v4 = vsel %vm132_vm0, %v827_v3, 0  ;;  %v3887_v3 = vld [vmem:[#allocation9 + $0x4c] sm:$0xf] }
  0xb7   :  { %v179_v40 = vpop.f32.mrf.mxu2  ;;  %733 = vmatpush.bf16.msrb.mxu2 %v3056_v15  ;;  %v3245_v15 = vor.u32 %v3900_v12, %v3244_v11 }
  0xba   :  { %v359_v23 = vpop.f32.mrf.mxu3 }
  0xbb   :  { %v360_v26 = vadd.f32 %v359_v23, %v216_v10  ;;  %v3049_v10 = vld [vmem:[#allocation9 + $0xc] sm:$0xf0] }
  0xbc   :  { %v3052_v14 = vor.u32 %v3851_v7, %v3049_v10  ;;  %v3147_v7 = vld [vmem:[#allocation6 + $0xc] sm:$0xf0]  ;;  %v3877_v10 = vld [vmem:[#allocation6 + $0x10] sm:$0xf0] }
  0xbd   :  { %v389_v38 = vadd.f32 %v360_v26, %v152_v25  ;;  %v3040_v25 = vld [vmem:[#allocation6 + $0x8] sm:$0xf]  ;;  %v3850_v26 = vld [vmem:[#allocation6 + $0x10] sm:$0xf0]  ;;  %v3150_v9 = vor.u32 %v3875_v5, %v3147_v7  ;;  %v3198_v5 = vld [vmem:[#allocation9 + $0x54] sm:$0xf0] }
  0xbe   :  { %720 = vmatpush.bf16.msra.mxu1 %v3052_v14  ;;  %v3041_v35 = vor.u32 %v3850_v26, %v3040_v25  ;;  %v3896_v25 = vld [vmem:[#allocation9 + $0x94] sm:$0xf]  ;;  %v3204_v7 = vld [vmem:[#allocation9 + $0x50] sm:$0xf] }
  0xbf   :  { %v372_v27 = vpop.f32.mrf.mxu0  ;;  %v3028_v33 = vmul.f32 -1.442695, %v389_v38 }
  0xc0   :  { %v373_v39 = vadd.f32 %v372_v27, %v217_v20  ;;  %v385_v51 = vpop.f32.mrf.mxu1  ;;  %v218_v27 = vperm.slane %v4342_v62, 2  ;;  %525 = vmatpush.bf16.msrb.mxu3 %v3041_v35  ;;  %v4382_v35 = vld [vmem:[%s4637_s4] sm:$0x7] }
  0xc1   :  { %4047 = vpow2.f32 %v3028_v33 }
  0xc2   :  { %v409_v42 = vadd.f32 %v373_v39, %v165_v28  ;;  %v361_v54 = vpop.f32.mrf.mxu3  ;;  %v386_v41 = vadd.f32 %v385_v51, %v218_v27  ;;  %875 = vmatpush.bf16.msrb.mxu1 %v841_v4 }
  0xc3   :  { %3044 = vmatmul.msk.bf16.vlgmr.msrb.gmra.mxu3 %vm128_vm1, %v4333_v45  ;;  %v4365_v45 = vpop.f32.mrf.mxu2 }
  0xc4   :  { %v3029_v50 = vmul.f32 -1.442695, %v409_v42  ;;  %849 = vmatpush.bf16.msra.mxu3 %v4311_v17 }
  0xc6   :  { %4049 = vpow2.f32 %v3029_v50 }
  0xc7   :  { %v374_v59 = vpop.f32.mrf.mxu0  ;;  %v4048_v8 = vpop.eup %4047 }
  0xc8   :  { %v393_v13 = vadd.f32 1.0, %v4048_v8  ;;  %v387_v19 = vpop.f32.mrf.mxu1  ;;  %850 = vmatpush.bf16.msra.mxu3 %v3146_v2  ;;  %v3153_v8 = vld [vmem:[#allocation6 + $0x8] sm:$0xf]  ;;  %v3888_v2 = vld [vmem:[#allocation9 + $0x50] sm:$0xf0] }
  0xc9   :  { %v3154_v14 = vor.u32 %v3877_v10, %v3153_v8  ;;  %v3246_v19 = vld [vmem:[#allocation9 + $0xb4] sm:$0xf0]  ;;  %v3197_v4 = vor.u32 %v3888_v2, %v3196_v1  ;;  %v3889_v8 = vld [vmem:[#allocation9 + $0x58] sm:$0xf0]  ;;  %v3201_v10 = vor.u32 %v3887_v3, %v3198_v5 }
  0xca   :  { %4051 = vrcp.f32 %v393_v13  ;;  %v405_v36 = vand.u32 2147483648, %v393_v13  ;;  %v403_v40 = vand.u32 2147483647, %v393_v13  ;;  %vm399_vm3 = vweird.f32 %v393_v13 }
  0xcb   :  { %v503_v57 = vpop.f32.mrf.mxu2  ;;  %876 = vmatpush.bf16.msrb.mxu1 %v3154_v14  ;;  %v3184_v14 = vld [vmem:[#allocation9 + $0x30] sm:$0xf] }
  0xcc   :  { %v4050_v16 = vpop.eup %4049  ;;  %v406_v42 = vor.u32 1.1754944e-38, %v405_v36  ;;  %vm404_vm5 = vcmp.eq.f32.partialorder %v403_v40, 8.507059e+37  ;;  %862 = vmatpush.bf16.msrb.mxu3 %v4314_v18  ;;  %v3901_v18 = vld [vmem:[#allocation9 + $0xb8] sm:$0xf0] }
  0xcd   :  { %v413_v20 = vadd.f32 1.0, %v4050_v16  ;;  %v3899_v16 = vld [vmem:[#allocation9 + $0xac] sm:$0xf]  ;;  %v3253_v22 = vor.u32 %v3901_v18, %v3252_v21 }
  0xcf   :  { %4053 = vrcp.f32 %v413_v20  ;;  %vm419_vm6 = vweird.f32 %v413_v20  ;;  %v425_v46 = vand.u32 2147483648, %v413_v20  ;;  %v423_v48 = vand.u32 2147483647, %v413_v20 }
  0xd0   :  { %v4052_v23 = vpop.eup %4051  ;;  %863 = vmatpush.bf16.msrb.mxu3 %v3150_v9 }
  0xd1   :  { %v395_v28 = vmul.f32 %v4052_v23, %v393_v13  ;;  %vm400_vm2 = vweird.f32 %v4052_v23  ;;  %v426_v51 = vor.u32 1.1754944e-38, %v425_v46  ;;  %vm424_vm9 = vcmp.eq.f32.partialorder %v423_v48, 8.507059e+37  ;;  %v4371_v13 = vld [vmem:[#allocation3 + $0x8] sm:$0xf]  ;;  %v3891_v48 = vld [vmem:[#allocation9 + $0x68] sm:$0xf0] }
  0xd2   :  { %vm401_vm4 = vmor %vm399_vm3, %vm400_vm2  ;;  %v567_v46 = vperm.slane %v4382_v35, 1 }
  0xd3   :  { %v396_v34 = vsub.f32 1.0, %v395_v28  ;;  %v4367_v58 = vpop.f32.mrf.mxu2  ;;  %3155 = vmatmul.msk.bf16.vlgmr.msra.gmra.mxu3 %vm128_vm1, %v4371_v13  ;;  %v3234_v28 = vld [vmem:[#allocation9 + $0x9c] sm:$0xf0] }
  0xd4   :  { %1077 = vmatpush.bf16.msra.mxu3 %v3253_v22  ;;  %v3192_v22 = vld [vmem:[#allocation9 + $0x38] sm:$0xf] }
  0xd5   :  { %v4054_v29 = vpop.eup %4053  ;;  %v397_v39 = vmul.f32 %v4052_v23, %v396_v34  ;;  %v4377_v34 = vld [vmem:[#allocation8] sm:$0x7] }
  0xd6   :  { %v415_v31 = vmul.f32 %v4054_v29, %v413_v20  ;;  %vm420_vm7 = vweird.f32 %v4054_v29  ;;  %v3249_v20 = vor.u32 %v3899_v16, %v3246_v19  ;;  %v3884_v16 = vld [vmem:[#allocation9 + $0x34] sm:$0xf]  ;;  %v3186_v19 = vld [vmem:[#allocation9 + $0x3c] sm:$0xf0] }
  0xd7   :  { %v398_v33 = vadd.f32 %v4052_v23, %v397_v39  ;;  %vm421_vm8 = vmor %vm419_vm6, %vm420_vm7  ;;  %v3893_v39 = vld [vmem:[#allocation9 + $0x7c] sm:$0xf]  ;;  %v3189_v18 = vor.u32 %v3884_v16, %v3186_v19 }
  0xd8   :  { %v416_v38 = vsub.f32 1.0, %v415_v31  ;;  %1064 = vmatpush.bf16.msra.mxu2 %v3249_v20  ;;  %v3237_v31 = vor.u32 %v3896_v25, %v3234_v28  ;;  %v3882_v28 = vld [vmem:[#allocation9 + $0x20] sm:$0xf0] }
  0xd9   :  { %v402_v62 = vsel %vm401_vm4, %v4052_v23, %v398_v33  ;;  %v3232_v23 = vld [vmem:[#allocation9 + $0x90] sm:$0xf]  ;;  %v3895_v33 = vld [vmem:[#allocation9 + $0x88] sm:$0xf0] }
  0xda   :  { %v417_v32 = vmul.f32 %v4054_v29, %v416_v38  ;;  %v407_v44 = vsel %vm404_vm5, %v406_v42, %v402_v62  ;;  %v3233_v26 = vor.u32 %v3897_v24, %v3232_v23  ;;  %v3894_v38 = vld [vmem:[#allocation9 + $0x80] sm:$0xf0]  ;;  %v451_v42 = vperm.slane %v4377_v34, 1 }
  0xdb   :  { %v429_v47 = vmul.f32 %v407_v44, %v386_v41  ;;  %v516_v59 = vpop.f32.mrf.mxu2  ;;  %v3221_v40 = vor.u32 %v3894_v38, %v3220_v37  ;;  %v3228_v41 = vld [vmem:[#allocation9 + $0x80] sm:$0xf]  ;;  %v450_v44 = vperm.slane %v4377_v34, 0  ;;  %v3886_v23 = vld [vmem:[#allocation9 + $0x40] sm:$0xf0] }
  0xdc   :  { %v418_v61 = vadd.f32 %v4054_v29, %v417_v32  ;;  %1065 = vmatpush.bf16.msra.mxu2 %v3237_v31  ;;  %v3222_v32 = vld [vmem:[#allocation9 + $0x84] sm:$0xf0]  ;;  %v3193_v25 = vor.u32 %v3886_v23, %v3192_v22  ;;  %v3883_v37 = vld [vmem:[#allocation9 + $0x28] sm:$0xf0] }
  0xdd   :  { %v430_v49 = vadd.f32 %v429_v47, %v178_v43  ;;  %v3225_v62 = vor.u32 %v3893_v39, %v3222_v32  ;;  %v3229_v43 = vor.u32 %v3895_v33, %v3228_v41  ;;  %v3208_v47 = vld [vmem:[#allocation9 + $0x60] sm:$0xf]  ;;  %v502_v59 = vadd.f32 %v4365_v45, %v450_v44  ;;  %v3174_v31 = vld [vmem:[#allocation9 + $0x24] sm:$0xf0]  ;;  %v3879_v32 = vld [vmem:[#allocation9 + $0x8] sm:$0xf0] }
  0xde   :  { %v422_v50 = vsel %vm421_vm8, %v4054_v29, %v418_v61  ;;  %v3240_v29 = vld [vmem:[#allocation9 + $0x98] sm:$0xf]  ;;  %v566_v61 = vperm.slane %v4382_v35, 0  ;;  %v3205_v45 = vor.u32 %v3889_v8, %v3204_v7  ;;  %v3878_v41 = vld [vmem:[#allocation9 + $0x4] sm:$0xf] }
  0xdf   :  { %4055 = vtanh.f32 %v430_v49  ;;  %v427_v17 = vsel %vm424_vm9, %v426_v51, %v422_v50  ;;  %v3241_v27 = vor.u32 %v3898_v30, %v3240_v29  ;;  %v3890_v49 = vld [vmem:[#allocation9 + $0x64] sm:$0xf]  ;;  %v3209_v50 = vor.u32 %v3891_v48, %v3208_v47  ;;  %v3210_v51 = vld [vmem:[#allocation9 + $0x6c] sm:$0xf0]  ;;  %v3881_v29 = vld [vmem:[#allocation9 + $0x1c] sm:$0xf] }
  0xe0   :  { %v432_v52 = vsub.f32 1.0, %v427_v17  ;;  %v434_v54 = vmul.f32 0.0, %v427_v17  ;;  %1066 = vmatpush.bf16.msra.mxu2 %v3225_v62  ;;  %v3216_v17 = vld [vmem:[#allocation9 + $0x68] sm:$0xf]  ;;  %v3177_v38 = vor.u32 %v3881_v29, %v3174_v31  ;;  %v3162_v62 = vld [vmem:[#allocation9 + $0xc] sm:$0xf0] }
  0xe1   :  { %1078 = vmatpush.bf16.msra.mxu3 %v3241_v27  ;;  %v3180_v27 = vld [vmem:[#allocation9 + $0x20] sm:$0xf]  ;;  %v3880_v44 = vld [vmem:[#allocation9 + $0x10] sm:$0xf0]  ;;  %v3165_v47 = vor.u32 %v3878_v41, %v3162_v62  ;;  %v3258_v29 = vld [vmem:[#allocation6] sm:$0xf] }
  0xe2   :  { %v3181_v39 = vor.u32 %v3883_v37, %v3180_v27  ;;  %v3927_v41 = vld [vmem:[#allocation9 + $0xb0] sm:$0xf0] }
  0xe3   :  { %3156 = vmatmul.msk.bf16.vlgmr.msrb.gmra.mxu3 %vm128_vm1, %v4371_v13 }
  0xe5   :  { %v4056_v53 = vpop.eup %4055  ;;  %1079 = vmatpush.bf16.msra.mxu3 %v3229_v43  ;;  %v3168_v43 = vld [vmem:[#allocation9 + $0x8] sm:$0xf] }
  0xe6   :  { %v433_v6 = vmul.f32 %v4056_v53, %v432_v52  ;;  %v3892_v52 = vld [vmem:[#allocation9 + $0x70] sm:$0xf0]  ;;  %v515_v53 = vadd.f32 %v4367_v58, %v451_v42  ;;  %v3169_v48 = vor.u32 %v3880_v44, %v3168_v43  ;;  %v3359_v43 = vld [vmem:[#allocation9 + $0xb4] sm:$0xf0]  ;;  %v3365_v44 = vld [vmem:[#allocation9 + $0xb0] sm:$0xf] }
  0xe8   :  { %v4361_v55 = vadd.f32 %v434_v54, %v433_v6  ;;  %v3213_v6 = vor.u32 %v3890_v49, %v3210_v51  ;;  %v3217_v54 = vor.u32 %v3892_v52, %v3216_v17 }
  0xea   :  { %v437_v56 = vpack.c.bf16 %v4361_v55, %v4361_v55  ;;  %1067 = vmatpush.bf16.msra.mxu2 %v3213_v6  ;;  %1080 = vmatpush.bf16.msra.mxu3 %v3217_v54 }
  0xec   :  { %438 = vst [vmem:[#allocation11] sm:$0xf] %v437_v56  ;;  %708 = vmatmul.bf16.vlgmr.msra.gmra.mxu0 %v437_v56  ;;  %721 = vmatmul.bf16.vlgmr.msra.gmra.mxu1 %v437_v56 }
  0xed   :  { %734 = vmatmul.bf16.vlgmr.msrb.gmra.mxu2 %v437_v56  ;;  %1051 = vmatpush.bf16.msra.mxu1 %v3245_v15  ;;  %v3885_v15 = vld [vmem:[#allocation9 + $0x38] sm:$0xf0] }
  0xee   :  { %1068 = vmatpush.bf16.msra.mxu2 %v3201_v10  ;;  %1081 = vmatpush.bf16.msra.mxu3 %v3205_v45  ;;  %v3185_v21 = vor.u32 %v3885_v15, %v3184_v14 }
  0xf1   :  { %1052 = vmatpush.bf16.msra.mxu1 %v3233_v26  ;;  %v3172_v26 = vld [vmem:[#allocation9 + $0x18] sm:$0xf] }
  0xf2   :  { %1069 = vmatpush.bf16.msra.mxu2 %v3189_v18  ;;  %1082 = vmatpush.bf16.msra.mxu3 %v3193_v25  ;;  %v3173_v30 = vor.u32 %v3882_v28, %v3172_v26 }
  0xf5   :  { %1053 = vmatpush.bf16.msra.mxu1 %v3221_v40  ;;  %v3160_v40 = vld [vmem:[#allocation9] sm:$0xf] }
  0xf6   :  { %1070 = vmatpush.bf16.msra.mxu2 %v3177_v38  ;;  %v3161_v42 = vor.u32 %v3879_v32, %v3160_v40  ;;  %1083 = vmatpush.bf16.msra.mxu3 %v3181_v39  ;;  %v3902_v38 = vld [vmem:[#allocation6 + $0x4] sm:$0xf]  ;;  %v3260_v39 = vld [vmem:[#allocation6 + $0xc] sm:$0xf0] }
  0xf7   :  { %v3263_v40 = vor.u32 %v3902_v38, %v3260_v39  ;;  %v3357_v32 = vld [vmem:[#allocation9 + $0xa8] sm:$0xf] }
  0xf8   :  { %v3358_v62 = vor.u32 %v3927_v41, %v3357_v32  ;;  %v3912_v32 = vld [vmem:[#allocation9 + $0x38] sm:$0xf0] }
  0xf9   :  { %1054 = vmatpush.bf16.msra.mxu1 %v3209_v50 }
  0xfa   :  { %1071 = vmatpush.bf16.msra.mxu2 %v3165_v47  ;;  %1084 = vmatpush.bf16.msra.mxu3 %v3169_v48  ;;  %v3345_v48 = vld [vmem:[#allocation9 + $0x90] sm:$0xf] }
  0xfc   :  { %3157 = vmatmul.msk.bf16.vlgmr.msrb.gmra.mxu1 %vm128_vm1, %v4371_v13 }
  0xfd   :  { %1055 = vmatpush.bf16.msra.mxu1 %v3197_v4 }
  0xfe   :  { %1402 = vmatpush.bf16.msrb.mxu2 %v3358_v62  ;;  %v3911_v62 = vld [vmem:[#allocation9 + $0x34] sm:$0xf] }
 0x101   :  { %1056 = vmatpush.bf16.msra.mxu1 %v3185_v21 }
 0x105   :  { %1057 = vmatpush.bf16.msra.mxu1 %v3173_v30  ;;  %v3903_v30 = vld [vmem:[#allocation6 + $0x8] sm:$0xf0] }
 0x106   :  { %v3259_v31 = vor.u32 %v3903_v30, %v3258_v29  ;;  %v3916_v29 = vld [vmem:[#allocation9 + $0x58] sm:$0xf0] }
 0x109   :  { %1058 = vmatpush.bf16.msra.mxu1 %v3161_v42  ;;  %v4416_v42 = vld [vmem:[#allocation3 + $0xc] sm:$0xf] }
 0x146   :  { %v4384_v36 = vpop.f32.mrf.mxu3 }
 0x14e   :  { %v529_v0 = vpop.f32.mrf.mxu3 }
 0x156   :  { %v4404_v21 = vpop.f32.mrf.mxu3 }
 0x15e   :  { %v854_v22 = vpop.f32.mrf.mxu3 }
 0x15f   :  { %v3309_v22 = vld [vmem:[#allocation9 + $0x48] sm:$0xf] }
 0x166   :  { %v4406_v23 = vpop.f32.mrf.mxu3 }
 0x169   :  { %v709_v56 = vpop.f32.mrf.mxu0  ;;  %v722_v57 = vpop.f32.mrf.mxu1 }
 0x16a   :  { %v710_v60 = vadd.f32 %v709_v56, %v566_v61  ;;  %v723_v63 = vadd.f32 %v722_v57, %v567_v46  ;;  %v568_v56 = vperm.slane %v4382_v35, 2 }
 0x16c   :  { %v739_v58 = vadd.f32 %v710_v60, %v502_v59  ;;  %v759_v9 = vadd.f32 %v723_v63, %v515_v53  ;;  %v452_v63 = vperm.slane %v4377_v34, 2 }
 0x16e   :  { %v3141_v11 = vmul.f32 -1.442695, %v739_v58  ;;  %v3142_v12 = vmul.f32 -1.442695, %v759_v9  ;;  %v528_v5 = vadd.f32 %v4384_v36, %v452_v63 }
 0x170   :  { %4057 = vpow2.f32 %v3141_v11  ;;  %v735_v20 = vpop.f32.mrf.mxu2 }
 0x171   :  { %4059 = vpow2.f32 %v3142_v12  ;;  %v711_v24 = vpop.f32.mrf.mxu0  ;;  %v724_v13 = vpop.f32.mrf.mxu1  ;;  %v736_v3 = vadd.f32 %v735_v20, %v568_v56  ;;  %v4423_v56 = vld [vmem:[%s4637_s4] sm:$0x7] }
 0x172   :  { %v867_v24 = vpop.f32.mrf.mxu3  ;;  %v1148_v13 = vld [vmem:[#allocation6 + $0x18] sm:$0xff] }
 0x173   :  { %v1171_v28 = vunpack.c.h.b16 %v1148_v13  ;;  %v3915_v24 = vld [vmem:[#allocation9 + $0x50] sm:$0xf0] }
 0x175   :  { %v1177_v27 = vpack.c.b16 %v1171_v28, %v1171_v28  ;;  %v3317_v28 = vld [vmem:[#allocation9 + $0x50] sm:$0xf] }
 0x176   :  { %v4058_v33 = vpop.eup %4057  ;;  %v3318_v38 = vor.u32 %v3916_v29, %v3317_v28  ;;  %v919_v29 = vperm.slane %v4423_v56, 2 }
 0x177   :  { %v4060_v61 = vpop.eup %4059  ;;  %v743_v46 = vadd.f32 1.0, %v4058_v33  ;;  %v4413_v37 = vsel %vm132_vm0, %v1177_v27, 0  ;;  %v3926_v33 = vld [vmem:[#allocation9 + $0xac] sm:$0xf] }
 0x178   :  { %v763_v49 = vadd.f32 1.0, %v4060_v61  ;;  %v737_v50 = vpop.f32.mrf.mxu2  ;;  %v3362_v61 = vor.u32 %v3926_v33, %v3359_v43  ;;  %v3299_v43 = vld [vmem:[#allocation9 + $0x3c] sm:$0xf0] }
 0x179   :  { %4061 = vrcp.f32 %v743_v46  ;;  %v755_v57 = vand.u32 2147483648, %v743_v46  ;;  %v753_v60 = vand.u32 2147483647, %v743_v46  ;;  %vm749_vm11 = vweird.f32 %v743_v46  ;;  %v4402_v20 = vpop.f32.mrf.mxu1  ;;  %v3923_v50 = vld [vmem:[#allocation9 + $0x94] sm:$0xf] }
 0x17a   :  { %4063 = vrcp.f32 %v763_v49  ;;  %v775_v35 = vand.u32 2147483648, %v763_v49  ;;  %vm769_vm15 = vweird.f32 %v763_v49  ;;  %v773_v9 = vand.u32 2147483647, %v763_v49  ;;  %1415 = vmatpush.bf16.msrb.mxu3 %v3362_v61 }
 0x17b   :  { %v756_v2 = vor.u32 1.1754944e-38, %v755_v57  ;;  %vm754_vm13 = vcmp.eq.f32.partialorder %v753_v60, 8.507059e+37  ;;  %v3333_v57 = vld [vmem:[#allocation9 + $0x78] sm:$0xf]  ;;  %v3920_v60 = vld [vmem:[#allocation9 + $0x7c] sm:$0xf] }
 0x17c   :  { %v776_v45 = vor.u32 1.1754944e-38, %v775_v35  ;;  %vm774_vm3 = vcmp.eq.f32.partialorder %v773_v9, 8.507059e+37  ;;  %v3321_v35 = vld [vmem:[#allocation9 + $0x60] sm:$0xf]  ;;  %v3917_v9 = vld [vmem:[#allocation9 + $0x64] sm:$0xf] }
 0x17f   :  { %v4062_v51 = vpop.eup %4061 }
 0x180   :  { %v4064_v17 = vpop.eup %4063  ;;  %v745_v52 = vmul.f32 %v4062_v51, %v743_v46  ;;  %vm750_vm10 = vweird.f32 %v4062_v51  ;;  %v3928_v46 = vld [vmem:[#allocation9 + $0xb8] sm:$0xf0] }
 0x181   :  { %v765_v53 = vmul.f32 %v4064_v17, %v763_v49  ;;  %vm751_vm12 = vmor %vm749_vm11, %vm750_vm10  ;;  %vm770_vm14 = vweird.f32 %v4064_v17  ;;  %v880_v18 = vpop.f32.mrf.mxu1  ;;  %v3366_v47 = vor.u32 %v3928_v46, %v3365_v44  ;;  %v3924_v49 = vld [vmem:[#allocation9 + $0x98] sm:$0xf0]  ;;  %v3305_v44 = vld [vmem:[#allocation9 + $0x38] sm:$0xf] }
 0x182   :  { %v746_v6 = vsub.f32 1.0, %v745_v52  ;;  %vm771_vm2 = vmor %vm769_vm15, %vm770_vm14  ;;  %v3353_v52 = vld [vmem:[#allocation9 + $0x98] sm:$0xf] }
 0x183   :  { %v766_v54 = vsub.f32 1.0, %v765_v53  ;;  %v3925_v53 = vld [vmem:[#allocation9 + $0xa0] sm:$0xf0] }
 0x184   :  { %v747_v59 = vmul.f32 %v4062_v51, %v746_v6 }
 0x185   :  { %v767_v0 = vmul.f32 %v4064_v17, %v766_v54  ;;  %v3354_v54 = vor.u32 %v3925_v53, %v3353_v52  ;;  %v3908_v52 = vld [vmem:[#allocation9 + $0x1c] sm:$0xf]  ;;  %v3287_v53 = vld [vmem:[#allocation9 + $0x24] sm:$0xf0] }
 0x186   :  { %v748_v1 = vadd.f32 %v4062_v51, %v747_v59  ;;  %v3921_v59 = vld [vmem:[#allocation9 + $0x80] sm:$0xf0] }
 0x187   :  { %v768_v8 = vadd.f32 %v4064_v17, %v767_v0  ;;  %v3334_v63 = vor.u32 %v3921_v59, %v3333_v57  ;;  %v3335_v0 = vld [vmem:[#allocation9 + $0x84] sm:$0xf0]  ;;  %v3290_v57 = vor.u32 %v3908_v52, %v3287_v53  ;;  %v3910_v59 = vld [vmem:[#allocation9 + $0x28] sm:$0xf0] }
 0x188   :  { %v752_v4 = vsel %vm751_vm12, %v4062_v51, %v748_v1  ;;  %v3346_v51 = vor.u32 %v3924_v49, %v3345_v48  ;;  %v3341_v1 = vld [vmem:[#allocation9 + $0x80] sm:$0xf]  ;;  %v3913_v48 = vld [vmem:[#allocation9 + $0x40] sm:$0xf0]  ;;  %v3285_v49 = vld [vmem:[#allocation9 + $0x18] sm:$0xf] }
 0x189   :  { %v757_v7 = vsel %vm754_vm13, %v756_v2, %v752_v4  ;;  %v772_v34 = vsel %vm771_vm2, %v4064_v17, %v768_v8  ;;  %v3347_v17 = vld [vmem:[#allocation9 + $0x9c] sm:$0xf0]  ;;  %v3922_v2 = vld [vmem:[#allocation9 + $0x88] sm:$0xf0]  ;;  %v3338_v4 = vor.u32 %v3920_v60, %v3335_v0  ;;  %v917_v8 = vperm.slane %v4423_v56, 0 }
 0x18a   :  { %v779_v58 = vmul.f32 %v757_v7, %v736_v3  ;;  %v777_v11 = vsel %vm774_vm3, %v776_v45, %v772_v34  ;;  %v3350_v6 = vor.u32 %v3923_v50, %v3347_v17  ;;  %1403 = vmatpush.bf16.msrb.mxu2 %v3346_v51  ;;  %v4425_v3 = vld [vmem:[#allocation8] sm:$0x7]  ;;  %v3323_v34 = vld [vmem:[#allocation9 + $0x6c] sm:$0xf0]  ;;  %v3329_v45 = vld [vmem:[#allocation9 + $0x68] sm:$0xf] }
 0x18b   :  { %v782_v12 = vsub.f32 1.0, %v777_v11  ;;  %v784_v16 = vmul.f32 %v777_v11, %v4361_v55  ;;  %v1170_v55 = vunpack.c.l.b16 %v1148_v13  ;;  %v801_v7 = vperm.slane %v4425_v3, 0  ;;  %v3919_v11 = vld [vmem:[#allocation9 + $0x70] sm:$0xf0]  ;;  %v3914_v13 = vld [vmem:[#allocation9 + $0x4c] sm:$0xf] }
 0x18c   :  { %v780_v10 = vadd.f32 %v779_v58, %v528_v5  ;;  %1416 = vmatpush.bf16.msrb.mxu3 %v3350_v6  ;;  %v3342_v5 = vor.u32 %v3922_v2, %v3341_v1  ;;  %v3918_v58 = vld [vmem:[#allocation9 + $0x68] sm:$0xf0]  ;;  %v3909_v50 = vld [vmem:[#allocation9 + $0x20] sm:$0xf0]  ;;  %v3293_v6 = vld [vmem:[#allocation9 + $0x20] sm:$0xf] }
 0x18d   :  { %v1176_v25 = vpack.c.b16 %v1170_v55, %v1170_v55  ;;  %v3310_v55 = vor.u32 %v3915_v24, %v3309_v22  ;;  %v3286_v17 = vor.u32 %v3909_v50, %v3285_v49  ;;  %v3273_v60 = vld [vmem:[#allocation9] sm:$0xf]  ;;  %v3294_v0 = vor.u32 %v3910_v59, %v3293_v6  ;;  %v3905_v1 = vld [vmem:[#allocation9 + $0x4] sm:$0xf]  ;;  %v3275_v2 = vld [vmem:[#allocation9 + $0xc] sm:$0xf0] }
 0x18e   :  { %4065 = vtanh.f32 %v780_v10  ;;  %1404 = vmatpush.bf16.msrb.mxu2 %v3334_v63  ;;  %v3322_v10 = vor.u32 %v3918_v58, %v3321_v35  ;;  %v3906_v63 = vld [vmem:[#allocation9 + $0x8] sm:$0xf0]  ;;  %v3278_v58 = vor.u32 %v3905_v1, %v3275_v2  ;;  %v3266_v22 = vld [vmem:[#allocation6 + $0x8] sm:$0xf]  ;;  %v3371_v59 = vld [vmem:[#allocation6] sm:$0xf] }
 0x18f   :  { %v4409_v26 = vsel %vm132_vm0, %v1176_v25, 0  ;;  %v3311_v25 = vld [vmem:[#allocation9 + $0x54] sm:$0xf0]  ;;  %v3904_v24 = vld [vmem:[#allocation6 + $0x10] sm:$0xf0] }
 0x190   :  { %1200 = vmatpush.bf16.msrb.mxu0 %v4409_v26  ;;  %1417 = vmatpush.bf16.msrb.mxu3 %v3338_v4  ;;  %v3314_v27 = vor.u32 %v3914_v13, %v3311_v25  ;;  %v3267_v28 = vor.u32 %v3904_v24, %v3266_v22  ;;  %v3470_v2 = vld [vmem:[#allocation9 + $0xa8] sm:$0xf]  ;;  %v4459_v24 = vld [vmem:[#allocation8] sm:$0x7] }
 0x192   :  { %1405 = vmatpush.bf16.msrb.mxu2 %v3322_v10 }
 0x194   :  { %v4066_v14 = vpop.eup %4065  ;;  %1201 = vmatpush.bf16.msrb.mxu0 %v3259_v31  ;;  %v918_v31 = vperm.slane %v4423_v56, 1 }
 0x195   :  { %v783_v15 = vmul.f32 %v4066_v14, %v782_v12  ;;  %v3326_v12 = vor.u32 %v3917_v9, %v3323_v34  ;;  %v3330_v14 = vor.u32 %v3919_v11, %v3329_v45 }
 0x196   :  { %1406 = vmatpush.bf16.msrb.mxu2 %v3310_v55 }
 0x197   :  { %v4398_v36 = vadd.f32 %v784_v16, %v783_v15  ;;  %3268 = vmatmul.msk.bf16.vlgmr.msrb.gmra.mxu0 %vm128_vm1, %v4416_v42  ;;  %v802_v15 = vperm.slane %v4425_v3, 1  ;;  %1418 = vmatpush.bf16.msrb.mxu3 %v3326_v12  ;;  %v1149_v12 = vld [vmem:[#allocation6 + $0x20] sm:$0xf] }
 0x198   :  { %1213 = vmatpush.bf16.msra.mxu0 %v4413_v37 }
 0x199   :  { %v787_v19 = vpack.c.bf16 %v4398_v36, %v4398_v36 }
 0x19b   :  { %789 = vst [vmem:[#allocation11 + $0x4] sm:$0xf] %v787_v19  ;;  %1059 = vmatmul.bf16.vlgmr.msra.gmra.mxu1 %v787_v19  ;;  %1072 = vmatmul.bf16.vlgmr.msra.gmra.mxu2 %v787_v19 }
 0x19c   :  { %1085 = vmatmul.bf16.vlgmr.msra.gmra.mxu3 %v787_v19  ;;  %1214 = vmatpush.bf16.msra.mxu0 %v3263_v40  ;;  %v853_v19 = vadd.f32 %v4404_v21, %v801_v7  ;;  %v866_v21 = vadd.f32 %v4406_v23, %v802_v15  ;;  %v3297_v40 = vld [vmem:[#allocation9 + $0x30] sm:$0xf]  ;;  %v3306_v23 = vor.u32 %v3913_v48, %v3305_v44  ;;  %v3907_v7 = vld [vmem:[#allocation9 + $0x10] sm:$0xf0]  ;;  %v1172_v15 = vunpack.c.l.b16 %v1149_v12 }
 0x19d   :  { %1419 = vmatpush.bf16.msrb.mxu3 %v3314_v27  ;;  %v3298_v33 = vor.u32 %v3912_v32, %v3297_v40  ;;  %v3950_v12 = vld [vmem:[#allocation9 + $0x94] sm:$0xf] }
 0x19f   :  { %1407 = vmatpush.bf16.msrb.mxu2 %v3298_v33 }
 0x1a0   :  { %1428 = vmatpush.bf16.msrb.mxu0 %v3366_v47  ;;  %v3302_v47 = vor.u32 %v3911_v62, %v3299_v43 }
 0x1a2   :  { %1420 = vmatpush.bf16.msrb.mxu3 %v3302_v47 }
 0x1a3   :  { %1408 = vmatpush.bf16.msrb.mxu2 %v3286_v17 }
 0x1a4   :  { %1429 = vmatpush.bf16.msrb.mxu0 %v3354_v54 }
 0x1a6   :  { %1421 = vmatpush.bf16.msrb.mxu3 %v3290_v57 }
 0x1a7   :  { %3269 = vmatmul.msk.bf16.vlgmr.msra.gmra.mxu0 %vm128_vm1, %v4416_v42 }
 0x1a8   :  { %1430 = vmatpush.bf16.msrb.mxu0 %v3342_v5  ;;  %v3281_v5 = vld [vmem:[#allocation9 + $0x8] sm:$0xf] }
 0x1a9   :  { %v3282_v34 = vor.u32 %v3907_v7, %v3281_v5  ;;  %v3953_v5 = vld [vmem:[#allocation9 + $0xac] sm:$0xf]  ;;  %v4455_v7 = vld [vmem:[#allocation3 + $0x10] sm:$0xf] }
 0x1aa   :  { %1422 = vmatpush.bf16.msrb.mxu3 %v3278_v58  ;;  %v3478_v58 = vld [vmem:[#allocation9 + $0xb0] sm:$0xf] }
 0x1ac   :  { %1431 = vmatpush.bf16.msrb.mxu0 %v3330_v14 }
 0x1b0   :  { %1432 = vmatpush.bf16.msrb.mxu0 %v3318_v38  ;;  %v803_v38 = vperm.slane %v4425_v3, 2 }
 0x1b2   :  { %v879_v56 = vadd.f32 %v4402_v20, %v803_v38  ;;  %v1153_v38 = vperm.slane %v4459_v24, 1 }
 0x1b4   :  { %1433 = vmatpush.bf16.msrb.mxu0 %v3306_v23 }
 0x1b8   :  { %1434 = vmatpush.bf16.msrb.mxu0 %v3294_v0  ;;  %v3373_v0 = vld [vmem:[#allocation6 + $0xc] sm:$0xf0] }
 0x1bc   :  { %1435 = vmatpush.bf16.msrb.mxu0 %v3282_v34 }
 0x214   :  { %v4450_v53 = vpop.f32.mrf.mxu0 }
 0x218   :  { %v1060_v16 = vpop.f32.mrf.mxu1 }
 0x219   :  { %v1061_v18 = vadd.f32 %v1060_v16, %v917_v8  ;;  %v3274_v8 = vor.u32 %v3906_v63, %v3273_v60  ;;  %v3930_v60 = vld [vmem:[#allocation6 + $0x8] sm:$0xf0] }
 0x21a   :  { %v3372_v63 = vor.u32 %v3930_v60, %v3371_v59  ;;  %v3942_v59 = vld [vmem:[#allocation9 + $0x50] sm:$0xf0]  ;;  %v3941_v60 = vld [vmem:[#allocation9 + $0x4c] sm:$0xf] }
 0x21b   :  { %v1090_v30 = vadd.f32 %v1061_v18, %v853_v19  ;;  %1409 = vmatpush.bf16.msrb.mxu2 %v3274_v8  ;;  %v1178_v18 = vpack.c.b16 %v1172_v15, %v1172_v15  ;;  %v3460_v15 = vld [vmem:[#allocation9 + $0x9c] sm:$0xf0] }
 0x21c   :  { %v1205_v6 = vpop.f32.mrf.mxu0 }
 0x21d   :  { %v3254_v39 = vmul.f32 -1.442695, %v1090_v30  ;;  %v1192_v55 = vsel %vm132_vm0, %v1178_v18, 0  ;;  %v3463_v18 = vor.u32 %v3950_v12, %v3460_v15  ;;  %v3418_v12 = vld [vmem:[#allocation9 + $0x38] sm:$0xf] }
 0x21e   :  { %v1073_v41 = vpop.f32.mrf.mxu2  ;;  %1226 = vmatpush.bf16.msrb.mxu1 %v1192_v55  ;;  %v3446_v55 = vld [vmem:[#allocation9 + $0x78] sm:$0xf] }
 0x21f   :  { %4067 = vpow2.f32 %v3254_v39  ;;  %v1074_v61 = vadd.f32 %v1073_v41, %v918_v31  ;;  %v4435_v46 = vpop.f32.mrf.mxu3 }
 0x220   :  { %v1062_v51 = vpop.f32.mrf.mxu1  ;;  %v1087_v41 = vadd.f32 %v4435_v46, %v919_v29 }
 0x221   :  { %v1110_v54 = vadd.f32 %v1074_v61, %v866_v21 }
 0x222   :  { %1227 = vmatpush.bf16.msrb.mxu1 %v3267_v28  ;;  %v3947_v28 = vld [vmem:[#allocation9 + $0x7c] sm:$0xf] }
 0x223   :  { %v3255_v4 = vmul.f32 -1.442695, %v1110_v54 }
 0x224   :  { %v4452_v54 = vpop.f32.mrf.mxu0 }
 0x225   :  { %v4068_v35 = vpop.eup %4067  ;;  %4069 = vpow2.f32 %v3255_v4  ;;  %3270 = vmatmul.msk.bf16.vlgmr.msrb.gmra.mxu1 %vm128_vm1, %v4416_v42  ;;  %v3954_v4 = vld [vmem:[#allocation9 + $0xb0] sm:$0xf0] }
 0x226   :  { %v1094_v9 = vadd.f32 1.0, %v4068_v35  ;;  %v1075_v10 = vpop.f32.mrf.mxu2  ;;  %1551 = vmatpush.bf16.msra.mxu1 %v4409_v26  ;;  %v3471_v8 = vor.u32 %v3954_v4, %v3470_v2  ;;  %v3472_v35 = vld [vmem:[#allocation9 + $0xb4] sm:$0xf0] }
 0x227   :  { %v1088_v45 = vpop.f32.mrf.mxu3  ;;  %v3955_v10 = vld [vmem:[#allocation9 + $0xb8] sm:$0xf0] }
 0x228   :  { %4071 = vrcp.f32 %v1094_v9  ;;  %v1106_v25 = vand.u32 2147483648, %v1094_v9  ;;  %v1104_v31 = vand.u32 2147483647, %v1094_v9  ;;  %vm1100_vm5 = vweird.f32 %v1094_v9  ;;  %1753 = vmatpush.bf16.msra.mxu3 %v3471_v8  ;;  %v3458_v45 = vld [vmem:[#allocation9 + $0x90] sm:$0xf] }
 0x229   :  { %v3479_v34 = vor.u32 %v3955_v10, %v3478_v58  ;;  %v3410_v58 = vld [vmem:[#allocation9 + $0x30] sm:$0xf]  ;;  %v3938_v10 = vld [vmem:[#allocation9 + $0x34] sm:$0xf] }
 0x22a   :  { %v1107_v40 = vor.u32 1.1754944e-38, %v1106_v25  ;;  %vm1105_vm7 = vcmp.eq.f32.partialorder %v1104_v31, 8.507059e+37  ;;  %1552 = vmatpush.bf16.msra.mxu1 %v3372_v63  ;;  %v3948_v25 = vld [vmem:[#allocation9 + $0x80] sm:$0xf0]  ;;  %v3454_v31 = vld [vmem:[#allocation9 + $0x80] sm:$0xf] }
 0x22b   :  { %v4070_v11 = vpop.eup %4069  ;;  %v3447_v29 = vor.u32 %v3948_v25, %v3446_v55  ;;  %v3935_v55 = vld [vmem:[#allocation9 + $0x1c] sm:$0xf] }
 0x22c   :  { %v1114_v14 = vadd.f32 1.0, %v4070_v11  ;;  %v1218_v57 = vpop.f32.mrf.mxu0  ;;  %v3951_v11 = vld [vmem:[#allocation9 + $0x98] sm:$0xf0] }
 0x22d   :  { %v3422_v57 = vld [vmem:[#allocation9 + $0x48] sm:$0xf] }
 0x22e   :  { %v4072_v16 = vpop.eup %4071  ;;  %4073 = vrcp.f32 %v1114_v14  ;;  %v1126_v3 = vand.u32 2147483648, %v1114_v14  ;;  %v1124_v61 = vand.u32 2147483647, %v1114_v14  ;;  %vm1120_vm9 = vweird.f32 %v1114_v14  ;;  %1564 = vmatpush.bf16.msrb.mxu1 %v4413_v37 }
 0x22f   :  { %v1096_v19 = vmul.f32 %v4072_v16, %v1094_v9  ;;  %vm1101_vm4 = vweird.f32 %v4072_v16  ;;  %v3475_v9 = vor.u32 %v3953_v5, %v3472_v35  ;;  %v3423_v63 = vor.u32 %v3942_v59, %v3422_v57 }
 0x230   :  { %vm1102_vm6 = vmor %vm1100_vm5, %vm1101_vm4  ;;  %v1127_v49 = vor.u32 1.1754944e-38, %v1126_v3  ;;  %vm1125_vm11 = vcmp.eq.f32.partialorder %v1124_v61, 8.507059e+37  ;;  %v3436_v61 = vld [vmem:[#allocation9 + $0x6c] sm:$0xf0] }
 0x231   :  { %v1097_v13 = vsub.f32 1.0, %v1096_v19  ;;  %1766 = vmatpush.bf16.msra.mxu0 %v3475_v9  ;;  %v3952_v19 = vld [vmem:[#allocation9 + $0xa0] sm:$0xf0]  ;;  %v3939_v9 = vld [vmem:[#allocation9 + $0x38] sm:$0xf0] }
 0x233   :  { %v1098_v30 = vmul.f32 %v4072_v16, %v1097_v13 }
 0x234   :  { %v4074_v27 = vpop.eup %4073 }
 0x235   :  { %v1116_v21 = vmul.f32 %v4074_v27, %v1114_v14  ;;  %v1099_v39 = vadd.f32 %v4072_v16, %v1098_v30  ;;  %vm1121_vm8 = vweird.f32 %v4074_v27  ;;  %3381 = vmatmul.msk.bf16.vlgmr.msra.gmra.mxu1 %vm128_vm1, %v4455_v7  ;;  %v3459_v14 = vor.u32 %v3951_v11, %v3458_v45  ;;  %1767 = vmatpush.bf16.msra.mxu0 %v3463_v18  ;;  %v3448_v30 = vld [vmem:[#allocation9 + $0x84] sm:$0xf0]  ;;  %v3398_v18 = vld [vmem:[#allocation9 + $0x18] sm:$0xf] }
 0x236   :  { %vm1122_vm10 = vmor %vm1120_vm9, %vm1121_vm8  ;;  %v3411_v45 = vor.u32 %v3939_v9, %v3410_v58 }
 0x237   :  { %v1117_v32 = vsub.f32 1.0, %v1116_v21  ;;  %v1103_v33 = vsel %vm1102_vm6, %v4072_v16, %v1099_v39  ;;  %v3466_v16 = vld [vmem:[#allocation9 + $0x98] sm:$0xf]  ;;  %1754 = vmatpush.bf16.msra.mxu3 %v3459_v14  ;;  %v3940_v14 = vld [vmem:[#allocation9 + $0x40] sm:$0xf0] }
 0x238   :  { %v1108_v62 = vsel %vm1105_vm7, %v1107_v40, %v1103_v33  ;;  %v3467_v22 = vor.u32 %v3952_v19, %v3466_v16  ;;  %v4467_v21 = vld [vmem:[%s4637_s4] sm:$0x7]  ;;  %v3451_v40 = vor.u32 %v3947_v28, %v3448_v30  ;;  %v3419_v19 = vor.u32 %v3940_v14, %v3418_v12  ;;  %v3400_v28 = vld [vmem:[#allocation9 + $0x24] sm:$0xf0]  ;;  %v3937_v30 = vld [vmem:[#allocation9 + $0x28] sm:$0xf0] }
 0x239   :  { %v1118_v43 = vmul.f32 %v4074_v27, %v1117_v32  ;;  %v1130_v44 = vmul.f32 %v1108_v62, %v1087_v41  ;;  %v1152_v41 = vperm.slane %v4459_v24, 0  ;;  %v1268_v33 = vperm.slane %v4467_v21, 0  ;;  %v3434_v62 = vld [vmem:[#allocation9 + $0x60] sm:$0xf] }
 0x23a   :  { %1768 = vmatpush.bf16.msra.mxu0 %v3451_v40  ;;  %v3933_v40 = vld [vmem:[#allocation9 + $0x8] sm:$0xf0] }
 0x23b   :  { %v1131_v47 = vadd.f32 %v1130_v44, %v879_v56  ;;  %v1119_v48 = vadd.f32 %v4074_v27, %v1118_v43  ;;  %v1269_v56 = vperm.slane %v4467_v21, 1  ;;  %1755 = vmatpush.bf16.msra.mxu3 %v3447_v29  ;;  %v3945_v43 = vld [vmem:[#allocation9 + $0x68] sm:$0xf0]  ;;  %v3944_v44 = vld [vmem:[#allocation9 + $0x64] sm:$0xf] }
 0x23c   :  { %v3435_v3 = vor.u32 %v3945_v43, %v3434_v62  ;;  %v3406_v29 = vld [vmem:[#allocation9 + $0x20] sm:$0xf]  ;;  %v3394_v62 = vld [vmem:[#allocation9 + $0x8] sm:$0xf]  ;;  %v3934_v43 = vld [vmem:[#allocation9 + $0x10] sm:$0xf0] }
 0x23d   :  { %4075 = vtanh.f32 %v1131_v47  ;;  %v1123_v46 = vsel %vm1122_vm10, %v4074_v27, %v1119_v48  ;;  %v3949_v27 = vld [vmem:[#allocation9 + $0x88] sm:$0xf0]  ;;  %v3442_v47 = vld [vmem:[#allocation9 + $0x68] sm:$0xf]  ;;  %v3946_v48 = vld [vmem:[#allocation9 + $0x70] sm:$0xf0] }
 0x23e   :  { %v1128_v50 = vsel %vm1125_vm11, %v1127_v49, %v1123_v46  ;;  %v3455_v32 = vor.u32 %v3949_v27, %v3454_v31  ;;  %v1217_v46 = vadd.f32 %v4452_v54, %v1153_v38  ;;  %v3439_v49 = vor.u32 %v3944_v44, %v3436_v61  ;;  %v3386_v38 = vld [vmem:[#allocation9] sm:$0xf] }
 0x23f   :  { %v1133_v51 = vsub.f32 1.0, %v1128_v50  ;;  %v1135_v17 = vmul.f32 %v1128_v50, %v4398_v36  ;;  %v3929_v36 = vld [vmem:[#allocation6 + $0x4] sm:$0xf]  ;;  %v3443_v50 = vor.u32 %v3946_v48, %v3442_v47  ;;  %1756 = vmatpush.bf16.msra.mxu3 %v3435_v3  ;;  %v3403_v31 = vor.u32 %v3935_v55, %v3400_v28  ;;  %v3957_v28 = vld [vmem:[#allocation6 + $0x8] sm:$0xf0] }
 0x240   :  { %v3376_v1 = vor.u32 %v3929_v36, %v3373_v0  ;;  %1769 = vmatpush.bf16.msra.mxu0 %v3439_v49  ;;  %v3424_v36 = vld [vmem:[#allocation9 + $0x54] sm:$0xf0]  ;;  %v3430_v0 = vld [vmem:[#allocation9 + $0x50] sm:$0xf]  ;;  %v3407_v27 = vor.u32 %v3937_v30, %v3406_v29  ;;  %v3395_v47 = vor.u32 %v3934_v43, %v3394_v62  ;;  %v3956_v30 = vld [vmem:[#allocation6 + $0x4] sm:$0xf] }
 0x241   :  { %v3427_v5 = vor.u32 %v3941_v60, %v3424_v36  ;;  %v3591_v62 = vld [vmem:[#allocation9 + $0xb0] sm:$0xf] }
 0x242   :  { %1565 = vmatpush.bf16.msrb.mxu1 %v3376_v1  ;;  %v3943_v1 = vld [vmem:[#allocation9 + $0x58] sm:$0xf0] }
 0x243   :  { %v4076_v20 = vpop.eup %4075  ;;  %1757 = vmatpush.bf16.msra.mxu3 %v3423_v63  ;;  %v1270_v63 = vperm.slane %v4467_v21, 2 }
 0x244   :  { %v1134_v23 = vmul.f32 %v4076_v20, %v1133_v51  ;;  %1770 = vmatpush.bf16.msra.mxu0 %v3427_v5 }
 0x245   :  { %3382 = vmatmul.msk.bf16.vlgmr.msrb.gmra.mxu1 %vm128_vm1, %v4455_v7 }
 0x246   :  { %v4446_v52 = vadd.f32 %v1135_v17, %v1134_v23  ;;  %1779 = vmatpush.bf16.msra.mxu1 %v3479_v34  ;;  %v1204_v23 = vadd.f32 %v4450_v53, %v1152_v41  ;;  %v3431_v53 = vor.u32 %v3943_v1, %v3430_v0  ;;  %v3412_v34 = vld [vmem:[#allocation9 + $0x3c] sm:$0xf0]  ;;  %v1154_v1 = vperm.slane %v4459_v24, 2 }
 0x247   :  { %v3415_v11 = vor.u32 %v3938_v10, %v3412_v34  ;;  %1758 = vmatpush.bf16.msra.mxu3 %v3411_v45 }
 0x248   :  { %v1138_v42 = vpack.c.bf16 %v4446_v52, %v4446_v52 }
 0x249   :  { %1771 = vmatpush.bf16.msra.mxu0 %v3415_v11 }
 0x24a   :  { %1140 = vst [vmem:[#allocation11 + $0x8] sm:$0xf] %v1138_v42  ;;  %1410 = vmatmul.bf16.vlgmr.msrb.gmra.mxu2 %v1138_v42  ;;  %1423 = vmatmul.bf16.vlgmr.msrb.gmra.mxu3 %v1138_v42 }
 0x24b   :  { %1436 = vmatmul.bf16.vlgmr.msrb.gmra.mxu0 %v1138_v42  ;;  %1780 = vmatpush.bf16.msra.mxu1 %v3467_v22  ;;  %v3936_v22 = vld [vmem:[#allocation9 + $0x20] sm:$0xf0] }
 0x24c   :  { %v3399_v25 = vor.u32 %v3936_v22, %v3398_v18 }
 0x24d   :  { %1772 = vmatpush.bf16.msra.mxu0 %v3403_v31  ;;  %v3486_v31 = vld [vmem:[#allocation6 + $0xc] sm:$0xf0] }
 0x24e   :  { %1759 = vmatpush.bf16.msra.mxu3 %v3399_v25  ;;  %v3484_v25 = vld [vmem:[#allocation6] sm:$0xf] }
 0x24f   :  { %1781 = vmatpush.bf16.msra.mxu1 %v3455_v32  ;;  %v3932_v32 = vld [vmem:[#allocation9 + $0x4] sm:$0xf]  ;;  %v3485_v29 = vor.u32 %v3957_v28, %v3484_v25  ;;  %v3968_v25 = vld [vmem:[#allocation9 + $0x4c] sm:$0xf] }
 0x253   :  { %1782 = vmatpush.bf16.msra.mxu1 %v3443_v50 }
 0x257   :  { %1783 = vmatpush.bf16.msra.mxu1 %v3431_v53 }
 0x25b   :  { %1784 = vmatpush.bf16.msra.mxu1 %v3419_v19 }
 0x25f   :  { %1785 = vmatpush.bf16.msra.mxu1 %v3407_v27  ;;  %v3489_v27 = vor.u32 %v3956_v30, %v3486_v31  ;;  %v3537_v30 = vld [vmem:[#allocation9 + $0x54] sm:$0xf0]  ;;  %v3543_v31 = vld [vmem:[#allocation9 + $0x50] sm:$0xf] }
 0x263   :  { %1786 = vmatpush.bf16.msra.mxu1 %v3395_v47  ;;  %v3571_v47 = vld [vmem:[#allocation9 + $0x90] sm:$0xf] }
 0x2a2   :  { %v4461_v13 = vpop.f32.mrf.mxu1 }
 0x2aa   :  { %v1231_v6 = vpop.f32.mrf.mxu1 }
 0x2b2   :  { %v4491_v19 = vpop.f32.mrf.mxu1 }
 0x2ba   :  { %v1556_v18 = vpop.f32.mrf.mxu1 }
 0x2c2   :  { %v1567_v22 = vpop.f32.mrf.mxu1 }
 0x2c8   :  { %v4469_v39 = vpop.f32.mrf.mxu0 }
 0x2ca   :  { %v1569_v55 = vpop.f32.mrf.mxu1 }
 0x2cb   :  { %v3969_v55 = vld [vmem:[#allocation9 + $0x50] sm:$0xf0] }
 0x2cd   :  { %v1411_v51 = vpop.f32.mrf.mxu2  ;;  %v1424_v20 = vpop.f32.mrf.mxu3 }
 0x2ce   :  { %v1412_v17 = vadd.f32 %v1411_v51, %v1268_v33  ;;  %v1425_v42 = vadd.f32 %v1424_v20, %v1269_v56  ;;  %v3387_v33 = vor.u32 %v3933_v40, %v3386_v38  ;;  %v3388_v56 = vld [vmem:[#allocation9 + $0xc] sm:$0xf0]  ;;  %v3379_v20 = vld [vmem:[#allocation6 + $0x8] sm:$0xf]  ;;  %v3583_v38 = vld [vmem:[#allocation9 + $0xa8] sm:$0xf] }
 0x2cf   :  { %v3391_v61 = vor.u32 %v3932_v32, %v3388_v56  ;;  %v3981_v40 = vld [vmem:[#allocation9 + $0xb0] sm:$0xf0]  ;;  %v3980_v32 = vld [vmem:[#allocation9 + $0xac] sm:$0xf]  ;;  %v3585_v56 = vld [vmem:[#allocation9 + $0xb4] sm:$0xf0] }
 0x2d0   :  { %v1441_v54 = vadd.f32 %v1412_v17, %v1204_v23  ;;  %v1461_v2 = vadd.f32 %v1425_v42, %v1217_v46  ;;  %v1439_v4 = vpop.f32.mrf.mxu0  ;;  %1760 = vmatpush.bf16.msra.mxu3 %v3387_v33  ;;  %v1500_v46 = vld [vmem:[#allocation6 + $0x20] sm:$0xf]  ;;  %v3931_v23 = vld [vmem:[#allocation6 + $0x10] sm:$0xf0]  ;;  %v3584_v33 = vor.u32 %v3981_v40, %v3583_v38  ;;  %v3588_v43 = vor.u32 %v3980_v32, %v3585_v56  ;;  %v3523_v56 = vld [vmem:[#allocation9 + $0x30] sm:$0xf] }
 0x2d1   :  { %1773 = vmatpush.bf16.msra.mxu0 %v3391_v61  ;;  %v1523_v49 = vunpack.c.l.b16 %v1500_v46  ;;  %v3380_v60 = vor.u32 %v3931_v23, %v3379_v20  ;;  %v3977_v46 = vld [vmem:[#allocation9 + $0x94] sm:$0xf]  ;;  %v3579_v20 = vld [vmem:[#allocation9 + $0x98] sm:$0xf]  ;;  %v3979_v23 = vld [vmem:[#allocation9 + $0xa0] sm:$0xf0]  ;;  %v3540_v32 = vor.u32 %v3968_v25, %v3537_v30 }
 0x2d2   :  { %v3367_v8 = vmul.f32 -1.442695, %v1441_v54  ;;  %v3368_v35 = vmul.f32 -1.442695, %v1461_v2  ;;  %2117 = vmatpush.bf16.msrb.mxu1 %v3588_v43 }
 0x2d3   :  { %v1529_v51 = vpack.c.b16 %v1523_v49, %v1523_v49 }
 0x2d4   :  { %4077 = vpow2.f32 %v3367_v8  ;;  %v1438_v8 = vadd.f32 %v4469_v39, %v1270_v63  ;;  %v3974_v63 = vld [vmem:[#allocation9 + $0x7c] sm:$0xf] }
 0x2d5   :  { %4079 = vpow2.f32 %v3368_v35  ;;  %v1413_v15 = vpop.f32.mrf.mxu2  ;;  %v1426_v16 = vpop.f32.mrf.mxu3  ;;  %v1543_v57 = vsel %vm132_vm0, %v1529_v51, 0  ;;  %v1230_v35 = vadd.f32 %v4461_v13, %v1154_v1  ;;  %2104 = vmatpush.bf16.msrb.mxu0 %v3584_v33  ;;  %v3573_v51 = vld [vmem:[#allocation9 + $0x9c] sm:$0xf0]  ;;  %v3561_v1 = vld [vmem:[#allocation9 + $0x84] sm:$0xf0] }
 0x2d6   :  { %1577 = vmatpush.bf16.msra.mxu2 %v1543_v57 }
 0x2da   :  { %v4078_v41 = vpop.eup %4077  ;;  %1578 = vmatpush.bf16.msra.mxu2 %v3380_v60  ;;  %v3975_v60 = vld [vmem:[#allocation9 + $0x80] sm:$0xf0] }
 0x2db   :  { %v4080_v44 = vpop.eup %4079  ;;  %v1445_v3 = vadd.f32 1.0, %v4078_v41  ;;  %v4496_v41 = vld [vmem:[#allocation3 + $0x14] sm:$0xf] }
 0x2dc   :  { %v1465_v48 = vadd.f32 1.0, %v4080_v44  ;;  %v3982_v44 = vld [vmem:[#allocation9 + $0xb8] sm:$0xf0] }
 0x2dd   :  { %4081 = vrcp.f32 %v1445_v3  ;;  %v1457_v0 = vand.u32 2147483648, %v1445_v3  ;;  %v1455_v2 = vand.u32 2147483647, %v1445_v3  ;;  %vm1451_vm13 = vweird.f32 %v1445_v3  ;;  %3383 = vmatmul.msk.bf16.vlgmr.msra.gmra.mxu2 %vm128_vm1, %v4455_v7 }
 0x2de   :  { %4083 = vrcp.f32 %v1465_v48  ;;  %1902 = vmatpush.bf16.msrb.mxu2 %v4409_v26  ;;  %v1477_v24 = vand.u32 2147483648, %v1465_v48  ;;  %vm1471_vm3 = vweird.f32 %v1465_v48  ;;  %v1475_v34 = vand.u32 2147483647, %v1465_v48 }
 0x2df   :  { %v1458_v53 = vor.u32 1.1754944e-38, %v1457_v0  ;;  %vm1456_vm15 = vcmp.eq.f32.partialorder %v1455_v2, 8.507059e+37  ;;  %v3592_v61 = vor.u32 %v3982_v44, %v3591_v62  ;;  %v3976_v2 = vld [vmem:[#allocation9 + $0x88] sm:$0xf0]  ;;  %v3966_v62 = vld [vmem:[#allocation9 + $0x38] sm:$0xf0] }
 0x2e0   :  { %v1478_v26 = vor.u32 1.1754944e-38, %v1477_v24  ;;  %vm1476_vm5 = vcmp.eq.f32.partialorder %v1475_v34, 8.507059e+37  ;;  %v3972_v24 = vld [vmem:[#allocation9 + $0x68] sm:$0xf0]  ;;  %v3524_v43 = vor.u32 %v3966_v62, %v3523_v56  ;;  %v3965_v44 = vld [vmem:[#allocation9 + $0x34] sm:$0xf] }
 0x2e2   :  { %1903 = vmatpush.bf16.msrb.mxu2 %v3485_v29 }
 0x2e3   :  { %v4082_v50 = vpop.eup %4081 }
 0x2e4   :  { %v4084_v17 = vpop.eup %4083  ;;  %v1447_v42 = vmul.f32 %v4082_v50, %v1445_v3  ;;  %vm1452_vm12 = vweird.f32 %v4082_v50  ;;  %v4504_v3 = vld [vmem:[%s4637_s4] sm:$0x7] }
 0x2e5   :  { %v1467_v6 = vmul.f32 %v4084_v17, %v1465_v48  ;;  %vm1453_vm14 = vmor %vm1451_vm13, %vm1452_vm12  ;;  %vm1472_vm2 = vweird.f32 %v4084_v17  ;;  %v3978_v48 = vld [vmem:[#allocation9 + $0x98] sm:$0xf0] }
 0x2e6   :  { %v1448_v59 = vsub.f32 1.0, %v1447_v42  ;;  %vm1473_vm4 = vmor %vm1471_vm3, %vm1472_vm2  ;;  %1915 = vmatpush.bf16.msra.mxu2 %v4413_v37  ;;  %v3576_v42 = vor.u32 %v3977_v46, %v3573_v51  ;;  %v3967_v46 = vld [vmem:[#allocation9 + $0x40] sm:$0xf0] }
 0x2e7   :  { %v1468_v36 = vsub.f32 1.0, %v1467_v6  ;;  %v3580_v6 = vor.u32 %v3979_v23, %v3579_v20  ;;  %v3511_v23 = vld [vmem:[#allocation9 + $0x18] sm:$0xf] }
 0x2e8   :  { %v1449_v54 = vmul.f32 %v4082_v50, %v1448_v59  ;;  %2118 = vmatpush.bf16.msrb.mxu1 %v3576_v42  ;;  %v3559_v59 = vld [vmem:[#allocation9 + $0x78] sm:$0xf]  ;;  %v3962_v42 = vld [vmem:[#allocation9 + $0x1c] sm:$0xf] }
 0x2e9   :  { %v1469_v4 = vmul.f32 %v4084_v17, %v1468_v36  ;;  %v3560_v0 = vor.u32 %v3975_v60, %v3559_v59  ;;  %v3519_v60 = vld [vmem:[#allocation9 + $0x20] sm:$0xf] }
 0x2ea   :  { %v1450_v5 = vadd.f32 %v4082_v50, %v1449_v54  ;;  %1916 = vmatpush.bf16.msra.mxu2 %v3489_v27  ;;  %v3567_v54 = vld [vmem:[#allocation9 + $0x80] sm:$0xf]  ;;  %v3970_v27 = vld [vmem:[#allocation9 + $0x58] sm:$0xf0] }
 0x2eb   :  { %v1470_v9 = vadd.f32 %v4084_v17, %v1469_v4  ;;  %v3544_v33 = vor.u32 %v3970_v27, %v3543_v31 }
 0x2ec   :  { %v1454_v21 = vsel %vm1453_vm14, %v4082_v50, %v1450_v5  ;;  %v3572_v50 = vor.u32 %v3978_v48, %v3571_v47 }
 0x2ed   :  { %v1459_v58 = vsel %vm1456_vm15, %v1458_v53, %v1454_v21  ;;  %v1474_v11 = vsel %vm1473_vm4, %v4084_v17, %v1470_v9  ;;  %3494 = vmatmul.msk.bf16.vlgmr.msrb.gmra.mxu2 %vm128_vm1, %v4496_v41  ;;  %v1620_v17 = vperm.slane %v4504_v3, 1  ;;  %v3564_v53 = vor.u32 %v3974_v63, %v3561_v1  ;;  %v3547_v9 = vld [vmem:[#allocation9 + $0x60] sm:$0xf]  ;;  %v3964_v63 = vld [vmem:[#allocation9 + $0x28] sm:$0xf0] }
 0x2ee   :  { %v1481_v10 = vmul.f32 %v1459_v58, %v1438_v8  ;;  %v1479_v39 = vsel %vm1476_vm5, %v1478_v26, %v1474_v11  ;;  %2130 = vmatpush.bf16.msrb.mxu2 %v3592_v61  ;;  %2105 = vmatpush.bf16.msrb.mxu0 %v3572_v50  ;;  %v3568_v8 = vor.u32 %v3976_v2, %v3567_v54  ;;  %v1619_v21 = vperm.slane %v4504_v3, 0  ;;  %v3549_v11 = vld [vmem:[#allocation9 + $0x6c] sm:$0xf0]  ;;  %v3555_v26 = vld [vmem:[#allocation9 + $0x68] sm:$0xf] }
 0x2ef   :  { %v1484_v13 = vsub.f32 1.0, %v1479_v39  ;;  %v1486_v15 = vmul.f32 %v1479_v39, %v4446_v52  ;;  %v4494_v52 = vld [vmem:[#allocation8] sm:$0x7]  ;;  %2119 = vmatpush.bf16.msrb.mxu1 %v3564_v53  ;;  %v3973_v39 = vld [vmem:[#allocation9 + $0x70] sm:$0xf0] }
 0x2f0   :  { %v1482_v45 = vadd.f32 %v1481_v10, %v1230_v35  ;;  %v1504_v37 = vperm.slane %v4494_v52, 1  ;;  %v1503_v35 = vperm.slane %v4494_v52, 0  ;;  %v3971_v10 = vld [vmem:[#allocation9 + $0x64] sm:$0xf]  ;;  %v3531_v61 = vld [vmem:[#allocation9 + $0x38] sm:$0xf] }
 0x2f1   :  { %v3532_v20 = vor.u32 %v3967_v46, %v3531_v61  ;;  %v3960_v1 = vld [vmem:[#allocation9 + $0x8] sm:$0xf0]  ;;  %v3501_v53 = vld [vmem:[#allocation9 + $0xc] sm:$0xf0]  ;;  %v1505_v25 = vperm.slane %v4494_v52, 2 }
 0x2f2   :  { %4085 = vtanh.f32 %v1482_v45  ;;  %v1568_v57 = vadd.f32 %v1567_v22, %v1504_v37  ;;  %2131 = vmatpush.bf16.msrb.mxu2 %v3580_v6  ;;  %2106 = vmatpush.bf16.msrb.mxu0 %v3560_v0  ;;  %v3548_v45 = vor.u32 %v3972_v24, %v3547_v9  ;;  %v3535_v22 = vld [vmem:[#allocation9 + $0x48] sm:$0xf]  ;;  %v3525_v37 = vld [vmem:[#allocation9 + $0x3c] sm:$0xf0] }
 0x2f3   :  { %v3536_v29 = vor.u32 %v3969_v55, %v3535_v22  ;;  %v3528_v48 = vor.u32 %v3965_v44, %v3525_v37  ;;  %v3513_v6 = vld [vmem:[#allocation9 + $0x24] sm:$0xf0]  ;;  %v3499_v0 = vld [vmem:[#allocation9] sm:$0xf]  ;;  %v1621_v22 = vperm.slane %v4504_v3, 2 }
 0x2f4   :  { %v3516_v59 = vor.u32 %v3962_v42, %v3513_v6  ;;  %v3500_v2 = vor.u32 %v3960_v1, %v3499_v0  ;;  %v3983_v0 = vld [vmem:[#allocation6 + $0x4] sm:$0xf]  ;;  %v3599_v1 = vld [vmem:[#allocation6 + $0xc] sm:$0xf0] }
 0x2f6   :  { %2132 = vmatpush.bf16.msrb.mxu2 %v3568_v8  ;;  %2107 = vmatpush.bf16.msrb.mxu0 %v3548_v45  ;;  %v3507_v8 = vld [vmem:[#allocation9 + $0x8] sm:$0xf] }
 0x2f8   :  { %v4086_v12 = vpop.eup %4085 }
 0x2f9   :  { %v1485_v14 = vmul.f32 %v4086_v12, %v1484_v13  ;;  %v3552_v12 = vor.u32 %v3971_v10, %v3549_v11  ;;  %v1851_v10 = vld [vmem:[#allocation6 + $0x20] sm:$0xf] }
 0x2fa   :  { %2108 = vmatpush.bf16.msrb.mxu0 %v3536_v29  ;;  %v1874_v45 = vunpack.c.l.b16 %v1851_v10 }
 0x2fb   :  { %v4487_v16 = vadd.f32 %v1486_v15, %v1485_v14  ;;  %v3556_v14 = vor.u32 %v3973_v39, %v3555_v26  ;;  %2120 = vmatpush.bf16.msrb.mxu1 %v3552_v12  ;;  %v3492_v39 = vld [vmem:[#allocation6 + $0x8] sm:$0xf] }
 0x2fc   :  { %v1880_v26 = vpack.c.b16 %v1874_v45, %v1874_v45  ;;  %v4005_v45 = vld [vmem:[#allocation9 + $0x98] sm:$0xf0] }
 0x2fd   :  { %v1489_v7 = vpack.c.bf16 %v4487_v16, %v4487_v16  ;;  %2133 = vmatpush.bf16.msrb.mxu2 %v3556_v14 }
 0x2fe   :  { %3495 = vmatmul.msk.bf16.vlgmr.msra.gmra.mxu2 %vm128_vm1, %v4496_v41  ;;  %2109 = vmatpush.bf16.msrb.mxu0 %v3524_v43 }
 0x2ff   :  { %1491 = vst [vmem:[#allocation11 + $0xc] sm:$0xf] %v1489_v7  ;;  %1761 = vmatmul.bf16.vlgmr.msra.gmra.mxu3 %v1489_v7  ;;  %1774 = vmatmul.bf16.vlgmr.msra.gmra.mxu0 %v1489_v7 }
 0x300   :  { %1787 = vmatmul.bf16.vlgmr.msra.gmra.mxu1 %v1489_v7  ;;  %v1555_v7 = vadd.f32 %v4491_v19, %v1503_v35 }
 0x301   :  { %2121 = vmatpush.bf16.msrb.mxu1 %v3540_v32  ;;  %2134 = vmatpush.bf16.msrb.mxu2 %v3544_v33 }
 0x305   :  { %2122 = vmatpush.bf16.msrb.mxu1 %v3528_v48  ;;  %2135 = vmatpush.bf16.msrb.mxu2 %v3532_v20 }
 0x309   :  { %2123 = vmatpush.bf16.msrb.mxu1 %v3516_v59  ;;  %v3984_v59 = vld [vmem:[#allocation6 + $0x8] sm:$0xf0] }
 0x360   :  { %v4506_v49 = vpop.f32.mrf.mxu2 }
 0x368   :  { %v1582_v34 = vpop.f32.mrf.mxu2 }
 0x370   :  { %v4535_v46 = vpop.f32.mrf.mxu2 }
 0x37c   :  { %v1775_v36 = vpop.f32.mrf.mxu0 }
 0x37d   :  { %v1776_v4 = vadd.f32 %v1775_v36, %v1620_v17  ;;  %v4509_v5 = vpop.f32.mrf.mxu1  ;;  %v3963_v17 = vld [vmem:[#allocation9 + $0x20] sm:$0xf0]  ;;  %v3520_v36 = vor.u32 %v3964_v63, %v3519_v60 }
 0x37f   :  { %v1812_v58 = vadd.f32 %v1776_v4, %v1568_v57  ;;  %v3512_v57 = vor.u32 %v3963_v17, %v3511_v23  ;;  %v3959_v4 = vld [vmem:[#allocation9 + $0x4] sm:$0xf]  ;;  %2136 = vmatpush.bf16.msrb.mxu2 %v3520_v36  ;;  %v2201_v23 = vld [vmem:[#allocation6 + $0x18] sm:$0xff] }
 0x380   :  { %v2223_v17 = vunpack.c.l.b16 %v2201_v23  ;;  %v2224_v6 = vunpack.c.h.b16 %v2201_v23 }
 0x381   :  { %v3481_v13 = vmul.f32 -1.442695, %v1812_v58  ;;  %2110 = vmatpush.bf16.msrb.mxu0 %v3512_v57  ;;  %v3961_v58 = vld [vmem:[#allocation9 + $0x10] sm:$0xf0]  ;;  %v3597_v57 = vld [vmem:[#allocation6] sm:$0xf] }
 0x382   :  { %v1762_v15 = vpop.f32.mrf.mxu3  ;;  %v3508_v9 = vor.u32 %v3961_v58, %v3507_v8  ;;  %v2229_v42 = vpack.c.b16 %v2223_v17, %v2223_v17  ;;  %v3598_v60 = vor.u32 %v3984_v59, %v3597_v57  ;;  %v2230_v63 = vpack.c.b16 %v2224_v6, %v2224_v6  ;;  %v4547_v8 = vld [vmem:[#allocation3 + $0x18] sm:$0xf]  ;;  %v3648_v6 = vld [vmem:[#allocation9 + $0x48] sm:$0xf]  ;;  %v3996_v57 = vld [vmem:[#allocation9 + $0x50] sm:$0xf0] }
 0x383   :  { %4087 = vpow2.f32 %v3481_v13  ;;  %v1763_v18 = vadd.f32 %v1762_v15, %v1619_v21  ;;  %v3504_v21 = vor.u32 %v3959_v4, %v3501_v53  ;;  %v3958_v13 = vld [vmem:[#allocation6 + $0x10] sm:$0xf0]  ;;  %v1894_v15 = vsel %vm132_vm0, %v1880_v26, 0  ;;  %v4008_v4 = vld [vmem:[#allocation9 + $0xb0] sm:$0xf0] }
 0x384   :  { %v1777_v28 = vpop.f32.mrf.mxu0  ;;  %2137 = vmatpush.bf16.msrb.mxu2 %v3508_v9  ;;  %1928 = vmatpush.bf16.msrb.mxu3 %v1894_v15  ;;  %v4544_v36 = vsel %vm132_vm0, %v2230_v63, 0  ;;  %v4007_v53 = vld [vmem:[#allocation9 + $0xac] sm:$0xf]  ;;  %v3704_v58 = vld [vmem:[#allocation9 + $0xb0] sm:$0xf] }
 0x385   :  { %v1792_v38 = vadd.f32 %v1763_v18, %v1555_v7  ;;  %v1790_v40 = vpop.f32.mrf.mxu1  ;;  %2111 = vmatpush.bf16.msrb.mxu0 %v3500_v2  ;;  %2124 = vmatpush.bf16.msrb.mxu1 %v3504_v21  ;;  %v3493_v18 = vor.u32 %v3958_v13, %v3492_v39  ;;  %v3696_v2 = vld [vmem:[#allocation9 + $0xa8] sm:$0xf]  ;;  %v3698_v21 = vld [vmem:[#allocation9 + $0xb4] sm:$0xf0]  ;;  %v3686_v39 = vld [vmem:[#allocation9 + $0x9c] sm:$0xf0] }
 0x386   :  { %v1581_v40 = vadd.f32 %v4506_v49, %v1505_v25  ;;  %v3701_v9 = vor.u32 %v4007_v53, %v3698_v21  ;;  %v3692_v13 = vld [vmem:[#allocation9 + $0x98] sm:$0xf]  ;;  %v4002_v25 = vld [vmem:[#allocation9 + $0x80] sm:$0xf0]  ;;  %v3995_v59 = vld [vmem:[#allocation9 + $0x4c] sm:$0xf] }
 0x387   :  { %v3480_v19 = vmul.f32 -1.442695, %v1792_v38  ;;  %v1789_v38 = vadd.f32 %v4509_v5, %v1621_v22  ;;  %v3650_v63 = vld [vmem:[#allocation9 + $0x54] sm:$0xf0]  ;;  %v3993_v21 = vld [vmem:[#allocation9 + $0x38] sm:$0xf0] }
 0x388   :  { %1929 = vmatpush.bf16.msrb.mxu3 %v3493_v18  ;;  %2468 = vmatpush.bf16.msra.mxu2 %v3701_v9  ;;  %v4556_v18 = vld [vmem:[%s4637_s4] sm:$0x7]  ;;  %v3638_v9 = vld [vmem:[#allocation9 + $0x3c] sm:$0xf0] }
 0x389   :  { %v4088_v47 = vpop.eup %4087  ;;  %4089 = vpow2.f32 %v3480_v19 }
 0x38a   :  { %v4516_v50 = vadd.f32 1.0, %v4088_v47  ;;  %v1764_v51 = vpop.f32.mrf.mxu3 }
 0x38b   :  { %3496 = vmatmul.msk.bf16.vlgmr.msrb.gmra.mxu3 %vm128_vm1, %v4496_v41 }
 0x38c   :  { %4091 = vrcp.f32 %v4516_v50  ;;  %v1828_v52 = vand.u32 2147483648, %v4516_v50  ;;  %vm1822_vm11 = vweird.f32 %v4516_v50  ;;  %v1826_v56 = vand.u32 2147483647, %v4516_v50 }
 0x38e   :  { %v1829_v43 = vor.u32 1.1754944e-38, %v1828_v52  ;;  %vm1827_vm13 = vcmp.eq.f32.partialorder %v1826_v56, 8.507059e+37  ;;  %v1971_v52 = vperm.slane %v4556_v18, 1  ;;  %v3999_v56 = vld [vmem:[#allocation9 + $0x68] sm:$0xf0] }
 0x38f   :  { %v4090_v54 = vpop.eup %4089 }
 0x390   :  { %v1796_v35 = vadd.f32 1.0, %v4090_v54  ;;  %v3602_v54 = vor.u32 %v3983_v0, %v3599_v1  ;;  %v3656_v0 = vld [vmem:[#allocation9 + $0x50] sm:$0xf]  ;;  %v3997_v1 = vld [vmem:[#allocation9 + $0x58] sm:$0xf0] }
 0x392   :  { %4093 = vrcp.f32 %v1796_v35  ;;  %v4092_v24 = vpop.eup %4091  ;;  %v1808_v55 = vand.u32 2147483648, %v1796_v35  ;;  %v1806_v29 = vand.u32 2147483647, %v1796_v35  ;;  %vm1802_vm7 = vweird.f32 %v1796_v35 }
 0x393   :  { %v1818_v34 = vmul.f32 %v4092_v24, %v4516_v50  ;;  %vm1823_vm10 = vweird.f32 %v4092_v24  ;;  %v1907_v50 = vpop.f32.mrf.mxu2 }
 0x394   :  { %v1809_v27 = vor.u32 1.1754944e-38, %v1808_v55  ;;  %vm1807_vm9 = vcmp.eq.f32.partialorder %v1806_v29, 8.507059e+37  ;;  %vm1824_vm12 = vmor %vm1822_vm11, %vm1823_vm10  ;;  %v3672_v55 = vld [vmem:[#allocation9 + $0x78] sm:$0xf] }
 0x395   :  { %v1819_v14 = vsub.f32 1.0, %v1818_v34  ;;  %v3684_v34 = vld [vmem:[#allocation9 + $0x90] sm:$0xf]  ;;  %v3673_v29 = vor.u32 %v4002_v25, %v3672_v55  ;;  %v3626_v25 = vld [vmem:[#allocation9 + $0x24] sm:$0xf0] }
 0x396   :  { %v3685_v26 = vor.u32 %v4005_v45, %v3684_v34  ;;  %v3644_v45 = vld [vmem:[#allocation9 + $0x38] sm:$0xf] }
 0x397   :  { %v1820_v30 = vmul.f32 %v4092_v24, %v1819_v14 }
 0x398   :  { %v4094_v11 = vpop.eup %4093 }
 0x399   :  { %v1798_v12 = vmul.f32 %v4094_v11, %v1796_v35  ;;  %vm1803_vm6 = vweird.f32 %v4094_v11  ;;  %v1821_v3 = vadd.f32 %v4092_v24, %v1820_v30  ;;  %v3697_v35 = vor.u32 %v4008_v4, %v3696_v2  ;;  %v3674_v30 = vld [vmem:[#allocation9 + $0x84] sm:$0xf0] }
 0x39a   :  { %vm1804_vm8 = vmor %vm1802_vm7, %vm1803_vm6  ;;  %v3653_v2 = vor.u32 %v3995_v59, %v3650_v63  ;;  %v3657_v4 = vor.u32 %v3997_v1, %v3656_v0  ;;  %v1972_v63 = vperm.slane %v4556_v18, 2 }
 0x39b   :  { %v1799_v7 = vsub.f32 1.0, %v1798_v12  ;;  %v1825_v5 = vsel %vm1824_vm12, %v4092_v24, %v1821_v3  ;;  %v4537_v51 = vpop.f32.mrf.mxu2  ;;  %v4009_v24 = vld [vmem:[#allocation9 + $0xb8] sm:$0xf0]  ;;  %2455 = vmatpush.bf16.msra.mxu1 %v3697_v35  ;;  %v4006_v12 = vld [vmem:[#allocation9 + $0xa0] sm:$0xf0]  ;;  %v1970_v3 = vperm.slane %v4556_v18, 0 }
 0x39c   :  { %v1830_v49 = vsel %vm1827_vm13, %v1829_v43, %v1825_v5  ;;  %v3705_v10 = vor.u32 %v4009_v24, %v3704_v58  ;;  %v3693_v15 = vor.u32 %v4006_v12, %v3692_v13  ;;  %v3662_v43 = vld [vmem:[#allocation9 + $0x6c] sm:$0xf0]  ;;  %v3992_v58 = vld [vmem:[#allocation9 + $0x34] sm:$0xf]  ;;  %v3624_v12 = vld [vmem:[#allocation9 + $0x18] sm:$0xf] }
 0x39d   :  { %v1800_v28 = vmul.f32 %v4094_v11, %v1799_v7  ;;  %v1835_v44 = vsub.f32 1.0, %v1830_v49  ;;  %v1837_v47 = vmul.f32 %v1830_v49, %v4487_v16  ;;  %v4540_v16 = vsel %vm132_vm0, %v2229_v42, 0  ;;  %v4551_v7 = vld [vmem:[#allocation8] sm:$0x7]  ;;  %v3668_v49 = vld [vmem:[#allocation9 + $0x68] sm:$0xf] }
 0x39e   :  { %2253 = vmatpush.bf16.msra.mxu3 %v4540_v16  ;;  %v3636_v35 = vld [vmem:[#allocation9 + $0x30] sm:$0xf]  ;;  %v3641_v34 = vor.u32 %v3992_v58, %v3638_v9 }
 0x39f   :  { %v1801_v31 = vadd.f32 %v4094_v11, %v1800_v28  ;;  %2456 = vmatpush.bf16.msra.mxu1 %v3685_v26  ;;  %v4001_v28 = vld [vmem:[#allocation9 + $0x7c] sm:$0xf] }
 0x3a1   :  { %v1805_v32 = vsel %vm1804_vm8, %v4094_v11, %v1801_v31  ;;  %v4004_v11 = vld [vmem:[#allocation9 + $0x94] sm:$0xf]  ;;  %v3680_v31 = vld [vmem:[#allocation9 + $0x80] sm:$0xf] }
 0x3a2   :  { %v1810_v33 = vsel %vm1807_vm9, %v1809_v27, %v1805_v32  ;;  %2254 = vmatpush.bf16.msra.mxu3 %v3598_v60  ;;  %v3689_v14 = vor.u32 %v4004_v11, %v3686_v39  ;;  %v4003_v27 = vld [vmem:[#allocation9 + $0x88] sm:$0xf0]  ;;  %v3649_v60 = vor.u32 %v3996_v57, %v3648_v6  ;;  %v3994_v11 = vld [vmem:[#allocation9 + $0x40] sm:$0xf0] }
 0x3a3   :  { %v1832_v19 = vmul.f32 %v1810_v33, %v1789_v38  ;;  %v1920_v20 = vpop.f32.mrf.mxu2  ;;  %v1855_v38 = vperm.slane %v4551_v7, 1  ;;  %v3681_v32 = vor.u32 %v4003_v27, %v3680_v31  ;;  %v1854_v33 = vperm.slane %v4551_v7, 0  ;;  %2457 = vmatpush.bf16.msra.mxu1 %v3673_v29  ;;  %v3991_v29 = vld [vmem:[#allocation9 + $0x28] sm:$0xf0]  ;;  %v3612_v27 = vld [vmem:[#allocation9] sm:$0xf] }
 0x3a4   :  { %2469 = vmatpush.bf16.msra.mxu2 %v3689_v14  ;;  %v3645_v13 = vor.u32 %v3994_v11, %v3644_v45  ;;  %v3990_v14 = vld [vmem:[#allocation9 + $0x20] sm:$0xf0] }
 0x3a5   :  { %v1833_v62 = vadd.f32 %v1832_v19, %v1581_v40  ;;  %3607 = vmatmul.msk.bf16.vlgmr.msra.gmra.mxu3 %vm128_vm1, %v4547_v8  ;;  %v3677_v40 = vor.u32 %v4001_v28, %v3674_v30  ;;  %v3660_v19 = vld [vmem:[#allocation9 + $0x60] sm:$0xf]  ;;  %v1906_v20 = vadd.f32 %v4535_v46, %v1854_v33  ;;  %v3625_v55 = vor.u32 %v3990_v14, %v3624_v12 }
 0x3a6   :  { %2266 = vmatpush.bf16.msrb.mxu3 %v4544_v36  ;;  %v3661_v5 = vor.u32 %v3999_v56, %v3660_v19  ;;  %v3632_v28 = vld [vmem:[#allocation9 + $0x20] sm:$0xf]  ;;  %v3988_v19 = vld [vmem:[#allocation9 + $0x10] sm:$0xf0] }
 0x3a7   :  { %4095 = vtanh.f32 %v1833_v62  ;;  %v3998_v62 = vld [vmem:[#allocation9 + $0x64] sm:$0xf]  ;;  %v3633_v31 = vor.u32 %v3991_v29, %v3632_v28 }
 0x3a8   :  { %2470 = vmatpush.bf16.msra.mxu2 %v3677_v40  ;;  %2458 = vmatpush.bf16.msra.mxu1 %v3661_v5  ;;  %v3986_v40 = vld [vmem:[#allocation9 + $0x4] sm:$0xf] }
 0x3a9   :  { %v4011_v28 = vld [vmem:[#allocation6 + $0x8] sm:$0xf0] }
 0x3aa   :  { %2267 = vmatpush.bf16.msrb.mxu3 %v3602_v54 }
 0x3ac   :  { %2459 = vmatpush.bf16.msra.mxu1 %v3649_v60 }
 0x3ad   :  { %v4096_v37 = vpop.eup %4095 }
 0x3ae   :  { %v1836_v61 = vmul.f32 %v4096_v37, %v1835_v44  ;;  %2481 = vmatpush.bf16.msra.mxu3 %v3705_v10  ;;  %v4000_v44 = vld [vmem:[#allocation9 + $0x70] sm:$0xf0]  ;;  %v1919_v37 = vadd.f32 %v4537_v51, %v1855_v38  ;;  %v3637_v10 = vor.u32 %v3993_v21, %v3636_v35  ;;  %v3987_v38 = vld [vmem:[#allocation9 + $0x8] sm:$0xf0] }
 0x3af   :  { %v3613_v33 = vor.u32 %v3987_v38, %v3612_v27  ;;  %v3809_v27 = vld [vmem:[#allocation9 + $0xa8] sm:$0xf]  ;;  %v4035_v38 = vld [vmem:[#allocation9 + $0xb0] sm:$0xf0] }
 0x3b0   :  { %v4531_v41 = vadd.f32 %v1837_v47, %v1836_v61  ;;  %v3665_v61 = vor.u32 %v3998_v62, %v3662_v43  ;;  %v3669_v47 = vor.u32 %v4000_v44, %v3668_v49  ;;  %2460 = vmatpush.bf16.msra.mxu1 %v3637_v10 }
 0x3b2   :  { %v1840_v48 = vpack.c.bf16 %v4531_v41, %v4531_v41  ;;  %2482 = vmatpush.bf16.msra.mxu3 %v3693_v15  ;;  %2471 = vmatpush.bf16.msra.mxu2 %v3665_v61  ;;  %v3989_v15 = vld [vmem:[#allocation9 + $0x1c] sm:$0xf] }
 0x3b3   :  { %v3629_v30 = vor.u32 %v3989_v15, %v3626_v25  ;;  %v3710_v25 = vld [vmem:[#allocation6] sm:$0xf] }
 0x3b4   :  { %1842 = vst [vmem:[#allocation11 + $0x10] sm:$0xf] %v1840_v48  ;;  %2112 = vmatmul.bf16.vlgmr.msrb.gmra.mxu0 %v1840_v48  ;;  %2125 = vmatmul.bf16.vlgmr.msrb.gmra.mxu1 %v1840_v48  ;;  %v3711_v29 = vor.u32 %v4011_v28, %v3710_v25 }
 0x3b5   :  { %2138 = vmatmul.bf16.vlgmr.msrb.gmra.mxu2 %v1840_v48  ;;  %3608 = vmatmul.msk.bf16.vlgmr.msrb.gmra.mxu3 %vm128_vm1, %v4547_v8 }
 0x3b6   :  { %2483 = vmatpush.bf16.msra.mxu3 %v3681_v32  ;;  %2472 = vmatpush.bf16.msra.mxu2 %v3653_v2 }
 0x3b7   :  { %2461 = vmatpush.bf16.msra.mxu1 %v3625_v55 }
 0x3ba   :  { %2484 = vmatpush.bf16.msra.mxu3 %v3669_v47  ;;  %2473 = vmatpush.bf16.msra.mxu2 %v3641_v34 }
 0x3bb   :  { %2462 = vmatpush.bf16.msra.mxu1 %v3613_v33  ;;  %v3810_v33 = vor.u32 %v4035_v38, %v3809_v27 }
 0x3be   :  { %2485 = vmatpush.bf16.msra.mxu3 %v3657_v4  ;;  %2474 = vmatpush.bf16.msra.mxu2 %v3629_v30  ;;  %v3712_v30 = vld [vmem:[#allocation6 + $0xc] sm:$0xf0] }
 0x3c2   :  { %2486 = vmatpush.bf16.msra.mxu3 %v3645_v13 }
 0x3c6   :  { %2487 = vmatpush.bf16.msra.mxu3 %v3633_v31 }
 0x40e   :  { %v4558_v22 = vpop.f32.mrf.mxu3 }
 0x416   :  { %v1933_v42 = vpop.f32.mrf.mxu3 }
 0x428   :  { %v4583_v12 = vpop.f32.mrf.mxu3 }
 0x430   :  { %v2258_v14 = vpop.f32.mrf.mxu3 }
 0x431   :  { %v2113_v48 = vpop.f32.mrf.mxu0  ;;  %v2126_v50 = vpop.f32.mrf.mxu1  ;;  %v4024_v14 = vld [vmem:[#allocation9 + $0x58] sm:$0xf0] }
 0x432   :  { %v2114_v23 = vadd.f32 %v2113_v48, %v1970_v3  ;;  %v2127_v17 = vadd.f32 %v2126_v50, %v1971_v52  ;;  %v3614_v3 = vld [vmem:[#allocation9 + $0xc] sm:$0xf0]  ;;  %v3620_v52 = vld [vmem:[#allocation9 + $0x8] sm:$0xf]  ;;  %v3605_v50 = vld [vmem:[#allocation6 + $0x8] sm:$0xf] }
 0x433   :  { %v3617_v5 = vor.u32 %v3986_v40, %v3614_v3  ;;  %v3621_v43 = vor.u32 %v3988_v19, %v3620_v52  ;;  %v4034_v40 = vld [vmem:[#allocation9 + $0xac] sm:$0xf]  ;;  %v3811_v3 = vld [vmem:[#allocation9 + $0xb4] sm:$0xf0]  ;;  %v3817_v52 = vld [vmem:[#allocation9 + $0xb0] sm:$0xf] }
 0x434   :  { %v2143_v51 = vadd.f32 %v2114_v23, %v1906_v20  ;;  %v2163_v54 = vadd.f32 %v2127_v17, %v1919_v37  ;;  %v2202_v37 = vld [vmem:[#allocation6 + $0x20] sm:$0xf]  ;;  %v3985_v20 = vld [vmem:[#allocation6 + $0x10] sm:$0xf0]  ;;  %v3814_v19 = vor.u32 %v4034_v40, %v3811_v3  ;;  %v4019_v40 = vld [vmem:[#allocation9 + $0x34] sm:$0xf] }
 0x435   :  { %2475 = vmatpush.bf16.msra.mxu2 %v3617_v5  ;;  %2488 = vmatpush.bf16.msra.mxu3 %v3621_v43  ;;  %v2225_v61 = vunpack.c.l.b16 %v2202_v37  ;;  %v3606_v59 = vor.u32 %v3985_v20, %v3605_v50  ;;  %v4032_v5 = vld [vmem:[#allocation9 + $0x98] sm:$0xf0]  ;;  %v4031_v43 = vld [vmem:[#allocation9 + $0x94] sm:$0xf]  ;;  %v3805_v37 = vld [vmem:[#allocation9 + $0x98] sm:$0xf] }
 0x436   :  { %v3593_v46 = vmul.f32 -1.442695, %v2143_v51  ;;  %v3594_v53 = vmul.f32 -1.442695, %v2163_v54  ;;  %v1856_v54 = vperm.slane %v4551_v7, 2 }
 0x437   :  { %v2231_v48 = vpack.c.b16 %v2225_v61, %v2225_v61  ;;  %v4033_v61 = vld [vmem:[#allocation9 + $0xa0] sm:$0xf0]  ;;  %v4592_v50 = vld [vmem:[#allocation8] sm:$0x7]  ;;  %v4597_v20 = vld [vmem:[%s4637_s4] sm:$0x7] }
 0x438   :  { %4097 = vpow2.f32 %v3593_v46  ;;  %v4568_v24 = vpop.f32.mrf.mxu2  ;;  %v1932_v18 = vadd.f32 %v4558_v22, %v1856_v54  ;;  %v4585_v15 = vpop.f32.mrf.mxu3  ;;  %v2321_v54 = vperm.slane %v4597_v20, 0  ;;  %v2322_v25 = vperm.slane %v4597_v20, 1  ;;  %v3757_v3 = vld [vmem:[#allocation9 + $0x38] sm:$0xf] }
 0x439   :  { %4099 = vpow2.f32 %v3594_v53  ;;  %v2115_v26 = vpop.f32.mrf.mxu0  ;;  %v2128_v39 = vpop.f32.mrf.mxu1  ;;  %v2245_v6 = vsel %vm132_vm0, %v2231_v48, 0  ;;  %v2140_v53 = vadd.f32 %v4568_v24, %v1972_v63  ;;  %2806 = vmatpush.bf16.msrb.mxu2 %v3810_v33  ;;  %2819 = vmatpush.bf16.msrb.mxu3 %v3814_v19  ;;  %v3806_v48 = vor.u32 %v4033_v61, %v3805_v37  ;;  %v4030_v63 = vld [vmem:[#allocation9 + $0x88] sm:$0xf0]  ;;  %v3751_v33 = vld [vmem:[#allocation9 + $0x3c] sm:$0xf0] }
 0x43a   :  { %2279 = vmatpush.bf16.msra.mxu0 %v2245_v6  ;;  %v4028_v6 = vld [vmem:[#allocation9 + $0x7c] sm:$0xf]  ;;  %v3739_v61 = vld [vmem:[#allocation9 + $0x24] sm:$0xf0] }
 0x43e   :  { %v4098_v32 = vpop.eup %4097  ;;  %2280 = vmatpush.bf16.msra.mxu0 %v3606_v59  ;;  %v3787_v59 = vld [vmem:[#allocation9 + $0x84] sm:$0xf0] }
 0x43f   :  { %v4100_v56 = vpop.eup %4099  ;;  %v2147_v62 = vadd.f32 1.0, %v4098_v32  ;;  %v4588_v32 = vld [vmem:[#allocation3 + $0x1c] sm:$0xf] }
 0x440   :  { %v2167_v49 = vadd.f32 1.0, %v4100_v56  ;;  %v2141_v44 = vpop.f32.mrf.mxu2  ;;  %v2271_v55 = vpop.f32.mrf.mxu3  ;;  %v4036_v56 = vld [vmem:[#allocation9 + $0xb8] sm:$0xf0] }
 0x441   :  { %4101 = vrcp.f32 %v2147_v62  ;;  %v2159_v0 = vand.u32 2147483648, %v2147_v62  ;;  %v2157_v51 = vand.u32 2147483647, %v2147_v62  ;;  %vm2153_vm15 = vweird.f32 %v2147_v62  ;;  %3609 = vmatmul.msk.bf16.vlgmr.msra.gmra.mxu0 %vm128_vm1, %v4547_v8  ;;  %v3799_v44 = vld [vmem:[#allocation9 + $0x9c] sm:$0xf0] }
 0x442   :  { %4103 = vrcp.f32 %v2167_v49  ;;  %2604 = vmatpush.bf16.msrb.mxu0 %v4540_v16  ;;  %v2179_v7 = vand.u32 2147483648, %v2167_v49  ;;  %vm2173_vm5 = vweird.f32 %v2167_v49  ;;  %v2177_v10 = vand.u32 2147483647, %v2167_v49 }
 0x443   :  { %v2160_v46 = vor.u32 1.1754944e-38, %v2159_v0  ;;  %vm2158_vm3 = vcmp.eq.f32.partialorder %v2157_v51, 8.507059e+37  ;;  %v3790_v0 = vor.u32 %v4028_v6, %v3787_v59  ;;  %v2205_v51 = vperm.slane %v4592_v50, 0  ;;  %v4014_v59 = vld [vmem:[#allocation9 + $0x8] sm:$0xf0] }
 0x444   :  { %v2180_v16 = vor.u32 1.1754944e-38, %v2179_v7  ;;  %vm2178_vm7 = vcmp.eq.f32.partialorder %v2177_v10, 8.507059e+37 }
 0x446   :  { %2605 = vmatpush.bf16.msrb.mxu0 %v3711_v29 }
 0x447   :  { %v4102_v47 = vpop.eup %4101 }
 0x448   :  { %v4104_v23 = vpop.eup %4103  ;;  %v2149_v17 = vmul.f32 %v4102_v47, %v2147_v62  ;;  %vm2154_vm14 = vweird.f32 %v4102_v47  ;;  %v3818_v62 = vor.u32 %v4036_v56, %v3817_v52  ;;  %v3754_v56 = vor.u32 %v4019_v40, %v3751_v33 }
 0x449   :  { %v2169_v42 = vmul.f32 %v4104_v23, %v2167_v49  ;;  %vm2155_vm2 = vmor %vm2153_vm15, %vm2154_vm14  ;;  %vm2174_vm4 = vweird.f32 %v4104_v23 }
 0x44a   :  { %v2150_v57 = vsub.f32 1.0, %v2149_v17  ;;  %vm2175_vm6 = vmor %vm2173_vm5, %vm2174_vm4  ;;  %2617 = vmatpush.bf16.msra.mxu0 %v4544_v36  ;;  %v3797_v36 = vld [vmem:[#allocation9 + $0x90] sm:$0xf]  ;;  %v3785_v17 = vld [vmem:[#allocation9 + $0x78] sm:$0xf] }
 0x44b   :  { %v2170_v60 = vsub.f32 1.0, %v2169_v42  ;;  %v3798_v49 = vor.u32 %v4032_v5, %v3797_v36  ;;  %v4029_v42 = vld [vmem:[#allocation9 + $0x80] sm:$0xf0] }
 0x44c   :  { %v2151_v1 = vmul.f32 %v4102_v47, %v2150_v57  ;;  %v3786_v57 = vor.u32 %v4029_v42, %v3785_v17 }
 0x44d   :  { %v2171_v2 = vmul.f32 %v4104_v23, %v2170_v60  ;;  %2807 = vmatpush.bf16.msrb.mxu2 %v3798_v49  ;;  %v3793_v60 = vld [vmem:[#allocation9 + $0x80] sm:$0xf]  ;;  %v4017_v49 = vld [vmem:[#allocation9 + $0x20] sm:$0xf0] }
 0x44e   :  { %v2152_v4 = vadd.f32 %v4102_v47, %v2151_v1  ;;  %v3794_v1 = vor.u32 %v4030_v63, %v3793_v60  ;;  %v4013_v60 = vld [vmem:[#allocation9 + $0x4] sm:$0xf] }
 0x44f   :  { %v2172_v58 = vadd.f32 %v4104_v23, %v2171_v2  ;;  %v3773_v2 = vld [vmem:[#allocation9 + $0x60] sm:$0xf] }
 0x450   :  { %v2156_v35 = vsel %vm2155_vm2, %v4102_v47, %v2152_v4  ;;  %v3802_v47 = vor.u32 %v4031_v43, %v3799_v44  ;;  %v4026_v4 = vld [vmem:[#allocation9 + $0x68] sm:$0xf0]  ;;  %v3737_v43 = vld [vmem:[#allocation9 + $0x18] sm:$0xf]  ;;  %v4016_v44 = vld [vmem:[#allocation9 + $0x1c] sm:$0xf] }
 0x451   :  { %v2161_v21 = vsel %vm2158_vm3, %v2160_v46, %v2156_v35  ;;  %v2176_v45 = vsel %vm2175_vm6, %v4104_v23, %v2172_v58  ;;  %3720 = vmatmul.msk.bf16.vlgmr.msrb.gmra.mxu0 %vm128_vm1, %v4588_v32  ;;  %2808 = vmatpush.bf16.msrb.mxu2 %v3786_v57  ;;  %v4025_v46 = vld [vmem:[#allocation9 + $0x64] sm:$0xf]  ;;  %v3775_v35 = vld [vmem:[#allocation9 + $0x6c] sm:$0xf0]  ;;  %v3738_v37 = vor.u32 %v4017_v49, %v3737_v43  ;;  %v3725_v57 = vld [vmem:[#allocation9] sm:$0xf] }
 0x452   :  { %v2183_v9 = vmul.f32 %v2161_v21, %v2140_v53  ;;  %v2181_v24 = vsel %vm2178_vm7, %v2180_v16, %v2176_v45  ;;  %2820 = vmatpush.bf16.msrb.mxu3 %v3802_v47  ;;  %v3774_v53 = vor.u32 %v4026_v4, %v3773_v2  ;;  %v4027_v21 = vld [vmem:[#allocation9 + $0x70] sm:$0xf0]  ;;  %v3778_v58 = vor.u32 %v4025_v46, %v3775_v35  ;;  %v3745_v47 = vld [vmem:[#allocation9 + $0x20] sm:$0xf] }
 0x453   :  { %v2186_v11 = vsub.f32 1.0, %v2181_v24  ;;  %v2188_v39 = vmul.f32 %v2181_v24, %v4531_v41  ;;  %v4010_v41 = vld [vmem:[#allocation6 + $0x4] sm:$0xf]  ;;  %v3761_v24 = vld [vmem:[#allocation9 + $0x48] sm:$0xf]  ;;  %v3742_v42 = vor.u32 %v4016_v44, %v3739_v61 }
 0x454   :  { %v2184_v34 = vadd.f32 %v2183_v9, %v1932_v18  ;;  %v3715_v31 = vor.u32 %v4010_v41, %v3712_v30  ;;  %v3781_v18 = vld [vmem:[#allocation9 + $0x68] sm:$0xf]  ;;  %v2206_v9 = vperm.slane %v4592_v50, 1  ;;  %v3749_v30 = vld [vmem:[#allocation9 + $0x30] sm:$0xf] }
 0x455   :  { %v3782_v7 = vor.u32 %v4027_v21, %v3781_v18  ;;  %2809 = vmatpush.bf16.msrb.mxu2 %v3774_v53  ;;  %v2553_v21 = vld [vmem:[#allocation6 + $0x20] sm:$0xf] }
 0x456   :  { %4105 = vtanh.f32 %v2184_v34  ;;  %2618 = vmatpush.bf16.msra.mxu0 %v3715_v31  ;;  %2821 = vmatpush.bf16.msrb.mxu3 %v3790_v0  ;;  %v2257_v34 = vadd.f32 %v4583_v12, %v2205_v51  ;;  %v2270_v12 = vadd.f32 %v4585_v15, %v2206_v9  ;;  %v4020_v31 = vld [vmem:[#allocation9 + $0x38] sm:$0xf0]  ;;  %v3726_v0 = vor.u32 %v4014_v59, %v3725_v57  ;;  %v3733_v51 = vld [vmem:[#allocation9 + $0x8] sm:$0xf] }
 0x457   :  { %v3750_v38 = vor.u32 %v4020_v31, %v3749_v30 }
 0x45a   :  { %2832 = vmatpush.bf16.msrb.mxu0 %v3818_v62  ;;  %2822 = vmatpush.bf16.msrb.mxu3 %v3778_v58  ;;  %v4021_v62 = vld [vmem:[#allocation9 + $0x40] sm:$0xf0] }
 0x45b   :  { %v3758_v5 = vor.u32 %v4021_v62, %v3757_v3 }
 0x45c   :  { %v4106_v26 = vpop.eup %4105 }
 0x45d   :  { %v2187_v22 = vmul.f32 %v4106_v26, %v2186_v11  ;;  %v4023_v11 = vld [vmem:[#allocation9 + $0x50] sm:$0xf0]  ;;  %v4022_v26 = vld [vmem:[#allocation9 + $0x4c] sm:$0xf] }
 0x45e   :  { %2833 = vmatpush.bf16.msrb.mxu0 %v3806_v48  ;;  %v4018_v48 = vld [vmem:[#allocation9 + $0x28] sm:$0xf0] }
 0x45f   :  { %v4579_v13 = vadd.f32 %v2188_v39, %v2187_v22  ;;  %v3762_v22 = vor.u32 %v4023_v11, %v3761_v24  ;;  %v3763_v39 = vld [vmem:[#allocation9 + $0x54] sm:$0xf0]  ;;  %v3746_v6 = vor.u32 %v4018_v48, %v3745_v47  ;;  %v2554_v48 = vld [vmem:[#allocation8] sm:$0x7] }
 0x460   :  { %v3766_v28 = vor.u32 %v4022_v26, %v3763_v39 }
 0x461   :  { %v2191_v8 = vpack.c.bf16 %v4579_v13, %v4579_v13  ;;  %3721 = vmatmul.msk.bf16.vlgmr.msra.gmra.mxu0 %vm128_vm1, %v4588_v32  ;;  %2810 = vmatpush.bf16.msrb.mxu2 %v3762_v22  ;;  %v2207_v22 = vperm.slane %v4592_v50, 2 }
 0x462   :  { %2834 = vmatpush.bf16.msrb.mxu0 %v3794_v1  ;;  %2823 = vmatpush.bf16.msrb.mxu3 %v3766_v28  ;;  %v3727_v1 = vld [vmem:[#allocation9 + $0xc] sm:$0xf0] }
 0x463   :  { %2193 = vst [vmem:[#allocation11 + $0x14] sm:$0xf] %v2191_v8  ;;  %2463 = vmatmul.bf16.vlgmr.msra.gmra.mxu1 %v2191_v8  ;;  %2476 = vmatmul.bf16.vlgmr.msra.gmra.mxu2 %v2191_v8  ;;  %v3730_v46 = vor.u32 %v4013_v60, %v3727_v1 }
 0x464   :  { %2489 = vmatmul.bf16.vlgmr.msra.gmra.mxu3 %v2191_v8  ;;  %v3769_v8 = vld [vmem:[#allocation9 + $0x50] sm:$0xf] }
 0x465   :  { %v3770_v29 = vor.u32 %v4024_v14, %v3769_v8  ;;  %2811 = vmatpush.bf16.msrb.mxu2 %v3750_v38  ;;  %v2323_v8 = vperm.slane %v4597_v20, 2 }
 0x466   :  { %2835 = vmatpush.bf16.msrb.mxu0 %v3782_v7  ;;  %2824 = vmatpush.bf16.msrb.mxu3 %v3754_v56  ;;  %v2576_v7 = vunpack.c.l.b16 %v2553_v21 }
 0x469   :  { %2812 = vmatpush.bf16.msrb.mxu2 %v3738_v37 }
 0x46a   :  { %2836 = vmatpush.bf16.msrb.mxu0 %v3770_v29  ;;  %2825 = vmatpush.bf16.msrb.mxu3 %v3742_v42 }
 0x46d   :  { %2813 = vmatpush.bf16.msrb.mxu2 %v3726_v0 }
 0x46e   :  { %2837 = vmatpush.bf16.msrb.mxu0 %v3758_v5  ;;  %2826 = vmatpush.bf16.msrb.mxu3 %v3730_v46 }
 0x472   :  { %2838 = vmatpush.bf16.msrb.mxu0 %v3746_v6  ;;  %v2556_v6 = vperm.slane %v2554_v48, 0 }
 0x4be   :  { %v4599_v23 = vpop.f32.mrf.mxu0 }
 0x4c6   :  { %v2284_v16 = vpop.f32.mrf.mxu0 }
 0x4c7   :  { %v4012_v16 = vld [vmem:[#allocation6 + $0x10] sm:$0xf0] }
 0x4ce   :  { %v2607_v49 = vpop.f32.mrf.mxu0 }
 0x4cf   :  { %v2608_v1 = vadd.f32 %v2607_v49, %v2556_v6 }
 0x4d6   :  { %v2609_v44 = vpop.f32.mrf.mxu0 }
 0x4de   :  { %v2620_v37 = vpop.f32.mrf.mxu0 }
 0x4e0   :  { %v2464_v10 = vpop.f32.mrf.mxu1 }
 0x4e1   :  { %v2465_v45 = vadd.f32 %v2464_v10, %v2321_v54  ;;  %v4015_v54 = vld [vmem:[#allocation9 + $0x10] sm:$0xf0] }
 0x4e2   :  { %v3734_v53 = vor.u32 %v4015_v54, %v3733_v51 }
 0x4e3   :  { %v2494_v55 = vadd.f32 %v2465_v45, %v2257_v34  ;;  %v2582_v34 = vpack.c.b16 %v2576_v7, %v2576_v7  ;;  %v3718_v45 = vld [vmem:[#allocation6 + $0x8] sm:$0xf] }
 0x4e4   :  { %2839 = vmatpush.bf16.msrb.mxu0 %v3734_v53  ;;  %v3719_v39 = vor.u32 %v4012_v16, %v3718_v45 }
 0x4e5   :  { %v3706_v41 = vmul.f32 -1.442695, %v2494_v55  ;;  %v2596_v11 = vsel %vm132_vm0, %v2582_v34, 0 }
 0x4e6   :  { %v2477_v27 = vpop.f32.mrf.mxu2  ;;  %2630 = vmatpush.bf16.msrb.mxu1 %v2596_v11  ;;  %v2622_v61 = vpop.f32.mrf.mxu0 }
 0x4e7   :  { %4107 = vpow2.f32 %v3706_v41  ;;  %v2478_v52 = vadd.f32 %v2477_v27, %v2322_v25  ;;  %v4609_v19 = vpop.f32.mrf.mxu3  ;;  %v2283_v41 = vadd.f32 %v4599_v23, %v2207_v22 }
 0x4e8   :  { %v2466_v36 = vpop.f32.mrf.mxu1  ;;  %v2491_v31 = vadd.f32 %v4609_v19, %v2323_v8 }
 0x4e9   :  { %v2514_v15 = vadd.f32 %v2478_v52, %v2270_v12 }
 0x4ea   :  { %2631 = vmatpush.bf16.msrb.mxu1 %v3719_v39 }
 0x4eb   :  { %v3707_v17 = vmul.f32 -1.442695, %v2514_v15 }
 0x4ed   :  { %v4108_v63 = vpop.eup %4107  ;;  %4109 = vpow2.f32 %v3707_v17  ;;  %3722 = vmatmul.msk.bf16.vlgmr.msrb.gmra.mxu1 %vm128_vm1, %v4588_v32  ;;  %v2557_v17 = vperm.slane %v2554_v48, 1 }
 0x4ee   :  { %v2498_v2 = vadd.f32 1.0, %v4108_v63  ;;  %v2479_v4 = vpop.f32.mrf.mxu2 }
 0x4ef   :  { %v2492_v35 = vpop.f32.mrf.mxu3  ;;  %v2621_v60 = vadd.f32 %v2620_v37, %v2557_v17 }
 0x4f0   :  { %4111 = vrcp.f32 %v2498_v2  ;;  %v2510_v26 = vand.u32 2147483648, %v2498_v2  ;;  %v2508_v55 = vand.u32 2147483647, %v2498_v2  ;;  %vm2504_vm9 = vweird.f32 %v2498_v2 }
 0x4f2   :  { %v2511_v12 = vor.u32 1.1754944e-38, %v2510_v26  ;;  %vm2509_vm0 = vcmp.eq.f32.partialorder %v2508_v55, 8.507059e+37 }
 0x4f3   :  { %v4110_v18 = vpop.eup %4109 }
 0x4f4   :  { %v2518_v58 = vadd.f32 1.0, %v4110_v18 }
 0x4f6   :  { %v4112_v9 = vpop.eup %4111  ;;  %4113 = vrcp.f32 %v2518_v58  ;;  %v2530_v20 = vand.u32 2147483648, %v2518_v58  ;;  %v2528_v33 = vand.u32 2147483647, %v2518_v58  ;;  %vm2524_vm12 = vweird.f32 %v2518_v58 }
 0x4f7   :  { %v2500_v10 = vmul.f32 %v4112_v9, %v2498_v2  ;;  %vm2505_vm8 = vweird.f32 %v4112_v9 }
 0x4f8   :  { %vm2506_vm10 = vmor %vm2504_vm9, %vm2505_vm8  ;;  %v2531_v56 = vor.u32 1.1754944e-38, %v2530_v20  ;;  %vm2529_vm14 = vcmp.eq.f32.partialorder %v2528_v33, 8.507059e+37 }
 0x4f9   :  { %v2501_v24 = vsub.f32 1.0, %v2500_v10 }
 0x4fb   :  { %v2502_v14 = vmul.f32 %v4112_v9, %v2501_v24 }
 0x4fc   :  { %v4114_v25 = vpop.eup %4113 }
 0x4fd   :  { %v2520_v28 = vmul.f32 %v4114_v25, %v2518_v58  ;;  %v2503_v29 = vadd.f32 %v4112_v9, %v2502_v14  ;;  %vm2525_vm11 = vweird.f32 %v4114_v25  ;;  %v2558_v14 = vperm.slane %v2554_v48, 2 }
 0x4fe   :  { %vm2526_vm13 = vmor %vm2524_vm12, %vm2525_vm11 }
 0x4ff   :  { %v2521_v30 = vsub.f32 1.0, %v2520_v28  ;;  %v2507_v50 = vsel %vm2506_vm10, %v4112_v9, %v2503_v29 }
 0x500   :  { %v2512_v27 = vsel %vm2509_vm0, %v2511_v12, %v2507_v50 }
 0x501   :  { %v2522_v38 = vmul.f32 %v4114_v25, %v2521_v30  ;;  %v2534_v40 = vmul.f32 %v2512_v27, %v2491_v31 }
 0x503   :  { %v2523_v3 = vadd.f32 %v4114_v25, %v2522_v38  ;;  %v2535_v52 = vadd.f32 %v2534_v40, %v2283_v41 }
 0x505   :  { %v2527_v23 = vsel %vm2526_vm13, %v4114_v25, %v2523_v3  ;;  %4115 = vtanh.f32 %v2535_v52 }
 0x506   :  { %v2532_v19 = vsel %vm2529_vm14, %v2531_v56, %v2527_v23 }
 0x507   :  { %v2537_v62 = vsub.f32 1.0, %v2532_v19  ;;  %v2539_v15 = vmul.f32 %v2532_v19, %v4579_v13  ;;  %v2670_v13 = vld [vmem:[%s4637_s4] sm:$0x7]  ;;  %s4264_s4 = smov [#allocation11]  }
 0x508   :  { %v2672_v57 = vperm.slane %v2670_v13, 0  ;;  %v2673_v59 = vperm.slane %v2670_v13, 1  ;;  %v2674_v22 = vperm.slane %v2670_v13, 2  ;;  %s2900_s29 = sshll.u32 %s4264_s4, 4  ;;  %s2901_s29 = int_to_ptr.vmem [resolvable:$true] %s2900_s29 }
 0x50b   :  { %v4116_v36 = vpop.eup %4115 }
 0x50c   :  { %v2538_v5 = vmul.f32 %v4116_v36, %v2537_v62 }
 0x50e   :  { %v4619_v43 = vadd.f32 %v2539_v15, %v2538_v5 }
 0x510   :  { %v2542_v32 = vpack.c.bf16 %v4619_v43, %v4619_v43 }
 0x512   :  { %2544 = vst [vmem:[#allocation11 + $0x18] sm:$0xf] %v2542_v32  ;;  %2814 = vmatmul.bf16.vlgmr.msrb.gmra.mxu2 %v2542_v32  ;;  %2827 = vmatmul.bf16.vlgmr.msrb.gmra.mxu3 %v2542_v32 }
 0x513   :  { %2840 = vmatmul.bf16.vlgmr.msrb.gmra.mxu0 %v2542_v32 }
 0x56a   :  { %v2633_v47 = vpop.f32.mrf.mxu1 }
 0x56b   :  { %v2634_v30 = vadd.f32 %v2633_v47, %v2558_v14 }
 0x572   :  { %v2635_v2 = vpop.f32.mrf.mxu1 }
 0x590   :  { %v2841_v42 = vpop.f32.mrf.mxu0 }
 0x591   :  { %v2842_v41 = vadd.f32 %v2841_v42, %v2674_v22 }
 0x595   :  { %v2815_v63 = vpop.f32.mrf.mxu2  ;;  %v2828_v0 = vpop.f32.mrf.mxu3 }
 0x596   :  { %v2816_v51 = vadd.f32 %v2815_v63, %v2672_v57  ;;  %v2829_v54 = vadd.f32 %v2828_v0, %v2673_v59 }
 0x598   :  { %v2845_v4 = vadd.f32 %v2816_v51, %v2608_v1  ;;  %v2865_v46 = vadd.f32 %v2829_v54, %v2621_v60  ;;  %v2843_v53 = vpop.f32.mrf.mxu0 }
 0x59a   :  { %v3819_v35 = vmul.f32 -1.442695, %v2845_v4  ;;  %v3820_v18 = vmul.f32 -1.442695, %v2865_v46 }
 0x59c   :  { %4117 = vpow2.f32 %v3819_v35 }
 0x59d   :  { %4119 = vpow2.f32 %v3820_v18  ;;  %v2817_v21 = vpop.f32.mrf.mxu2  ;;  %v2830_v58 = vpop.f32.mrf.mxu3 }
 0x5a2   :  { %v4118_v7 = vpop.eup %4117 }
 0x5a3   :  { %v4120_v9 = vpop.eup %4119  ;;  %v2849_v10 = vadd.f32 1.0, %v4118_v7 }
 0x5a4   :  { %v2869_v34 = vadd.f32 1.0, %v4120_v9 }
 0x5a5   :  { %4121 = vrcp.f32 %v2849_v10  ;;  %v2861_v8 = vand.u32 2147483648, %v2849_v10  ;;  %v2859_v25 = vand.u32 2147483647, %v2849_v10  ;;  %vm2855_vm15 = vweird.f32 %v2849_v10 }
 0x5a6   :  { %4123 = vrcp.f32 %v2869_v34  ;;  %v2881_v38 = vand.u32 2147483648, %v2869_v34  ;;  %vm2875_vm5 = vweird.f32 %v2869_v34  ;;  %v2879_v40 = vand.u32 2147483647, %v2869_v34 }
 0x5a7   :  { %v2862_v12 = vor.u32 1.1754944e-38, %v2861_v8  ;;  %vm2860_vm3 = vcmp.eq.f32.partialorder %v2859_v25, 8.507059e+37 }
 0x5a8   :  { %v2882_v52 = vor.u32 1.1754944e-38, %v2881_v38  ;;  %vm2880_vm7 = vcmp.eq.f32.partialorder %v2879_v40, 8.507059e+37 }
 0x5ab   :  { %v4122_v45 = vpop.eup %4121 }
 0x5ac   :  { %v4124_v16 = vpop.eup %4123  ;;  %v2851_v24 = vmul.f32 %v4122_v45, %v2849_v10  ;;  %vm2856_vm1 = vweird.f32 %v4122_v45 }
 0x5ad   :  { %v2871_v11 = vmul.f32 %v4124_v16, %v2869_v34  ;;  %vm2857_vm2 = vmor %vm2855_vm15, %vm2856_vm1  ;;  %vm2876_vm4 = vweird.f32 %v4124_v16 }
 0x5ae   :  { %v2852_v26 = vsub.f32 1.0, %v2851_v24  ;;  %vm2877_vm6 = vmor %vm2875_vm5, %vm2876_vm4 }
 0x5af   :  { %v2872_v39 = vsub.f32 1.0, %v2871_v11 }
 0x5b0   :  { %v2853_v55 = vmul.f32 %v4122_v45, %v2852_v26 }
 0x5b1   :  { %v2873_v28 = vmul.f32 %v4124_v16, %v2872_v39 }
 0x5b2   :  { %v2854_v29 = vadd.f32 %v4122_v45, %v2853_v55 }
 0x5b3   :  { %v2874_v27 = vadd.f32 %v4124_v16, %v2873_v28 }
 0x5b4   :  { %v2858_v31 = vsel %vm2857_vm2, %v4122_v45, %v2854_v29 }
 0x5b5   :  { %v2863_v50 = vsel %vm2860_vm3, %v2862_v12, %v2858_v31  ;;  %v2878_v3 = vsel %vm2877_vm6, %v4124_v16, %v2874_v27 }
 0x5b6   :  { %v2885_v20 = vmul.f32 %v2863_v50, %v2842_v41  ;;  %v2883_v23 = vsel %vm2880_vm7, %v2882_v52, %v2878_v3 }
 0x5b7   :  { %v2888_v56 = vsub.f32 1.0, %v2883_v23  ;;  %v2890_v36 = vmul.f32 %v2883_v23, %v4619_v43 }
 0x5b8   :  { %v2886_v33 = vadd.f32 %v2885_v20, %v2634_v30 }
 0x5ba   :  { %4125 = vtanh.f32 %v2886_v33 }
 0x5c0   :  { %v4126_v19 = vpop.eup %4125 }
 0x5c1   :  { %v2889_v62 = vmul.f32 %v4126_v19, %v2888_v56 }
 0x5c3   :  { %v2891_v5 = vadd.f32 %v2890_v36, %v2889_v62 }
 0x5c5   :  { %v2893_v15 = vpack.c.bf16 %v2891_v5, %v2891_v5 }
 0x5c7   :  { %2895 = vst [vmem:[#allocation11 + $0x1c] sm:$0xf] %v2893_v15 }
 0x5c8   :  { %2908 = dma.vmem_to_hbm [thread:$0]  %s2901_s29, 512, %s2903_s8, [#allocation5], %s4259_s30, %s4259_s30, %s4260_s6  }
 0x5c9   :  { %4253 = dma.done.wait [#allocation5], 512  }
 0x5ca   :  { %4254 = vsyncadd [#allocation5], 4294966784 }
 0x5cb   :  { %2913 = vsyncpa [#allocation4], 1 }
 0x5cc   :  { %2914 = vsyncpa [#allocation7], 1 }
 0x5cd   :  { %2915 = vsyncpa [#allocation10], 1 }
 0x5ce   :  { %2916 = vsyncpa [#allocation5], 1 }

</bundles_post_ra>
